<compile_context>
chip_gen: v7x
topology: tpu7x:2x2x1
jax: 0.10.0
libtpu: 0.0.40
codegen_flags: <defaults>
</compile_context>

<pallas_src>
import jax
import jax.numpy as jnp
from jax.experimental import pallas as pl
from jax.experimental.pallas import tpu as pltpu


# ------------------------------ config helpers ------------------------------

def _pick_cout_tile():
    # 256-wide lane-dense output tiles match the 2x256x256 MXU on v6e/v7x;
    # v5e's MXU is 128-wide, so keep 128 there.
    try:
        kind = jax.devices()[0].device_kind.lower()
    except Exception:
        kind = ""
    return 128 if "v5" in kind else 256


_COUT_TILE = _pick_cout_tile()
_TARGET_M_ROWS = 256            # ~one full MXU pass on v6e/v7x (two on v5e)
_ELEM_BLOCK_BYTES = 4 * 1024 * 1024


def _pick_bs(n, hw):
    """Samples per conv grid step so M_blk = bs*hw ~ _TARGET_M_ROWS (bs | n)."""
    bs = max(1, min(n, _TARGET_M_ROWS // max(hw, 1)))
    while n % bs:
        bs -= 1
    return bs


def _row_tile(m, c, bytes_per=2):
    if m * c * bytes_per <= _ELEM_BLOCK_BYTES:
        return m
    for rt in (16384, 8192, 4096, 2048, 1024, 512, 256, 128, 64, 32, 16, 8):
        if m % rt == 0 and rt * c * bytes_per <= _ELEM_BLOCK_BYTES:
            return rt
    return m


def _conv_vmem_limit(*block_bytes, scratch_bytes=0):
    # double-buffered I/O blocks + scratch + slack; cap below v7x's 64 MiB.
    need = 2 * sum(block_bytes) + scratch_bytes + (4 << 20)
    return int(min(max(need, 8 << 20), 56 << 20))


# ------------------------------ Pallas kernels ------------------------------

def _conv_epilogue(acc, o_ref, st_ref):
    """Store conv output + per-channel [sum, sum_sq] (8-sublane padded)."""
    o_ref[...] = acc.astype(o_ref.dtype)
    ssum = jnp.sum(acc, axis=0, keepdims=True)
    ssq = jnp.sum(acc * acc, axis=0, keepdims=True)
    row = jax.lax.broadcasted_iota(jnp.int32, (8, acc.shape[1]), 0)
    st_ref[0] = jnp.where(row == 0, ssum, jnp.where(row == 1, ssq, 0.0))


def _make_conv_kernel(kh, kw, stride, cin, bs, ho, wo, tn):
    """WS-conv from a pre-padded, phase-decomposed input block.

    x_ref   : (bs, s*s, Hq, Wq, cin)  bf16
    w_ref   : (kh*kw*cin, tn)         bf16  standardized weight slab (resident)
    o_ref   : (bs*ho*wo, tn)          bf16
    st_ref  : (1, 8, tn)              f32   rows 0/1 = sum / sum_sq
    slab_ref: (bs*ho*wo, kh*kw*cin)   bf16  im2col scratch
    """
    s = stride
    m_blk = bs * ho * wo

    def kernel(x_ref, w_ref, o_ref, st_ref, slab_ref):
        for ki in range(kh):
            for kj in range(kw):
                pi, di = ki % s, ki // s
                pj, dj = kj % s, kj // s
                patch = x_ref[:, pi * s + pj, di:di + ho, dj:dj + wo, :]
                col0 = (ki * kw + kj) * cin
                slab_ref[:, col0:col0 + cin] = patch.reshape(m_blk, cin)
        acc = jnp.dot(slab_ref[...], w_ref[...],
                      preferred_element_type=jnp.float32)
        _conv_epilogue(acc, o_ref, st_ref)

    return kernel


def _make_fused_conv_kernel(kh, kw, cin, bs, ho, wo, tn):
    """3x3 / stride-1 / pad-1 WS-conv whose prologue applies the producer's
    BN scale/shift + ReLU and does the zero padding in-kernel (pad_ref)."""
    m_blk = bs * ho * wo

    def kernel(x_ref, s_ref, b_ref, w_ref, o_ref, st_ref, pad_ref, slab_ref):
        sc = s_ref[...].reshape(1, 1, 1, cin)
        sh = b_ref[...].reshape(1, 1, 1, cin)
        a = jnp.maximum(x_ref[...].astype(jnp.float32) * sc + sh, 0.0)
        pad_ref[...] = jnp.zeros_like(pad_ref)          # borders stay zero
        pad_ref[:, 1:1 + ho, 1:1 + wo, :] = a.astype(pad_ref.dtype)
        for ki in range(kh):
            for kj in range(kw):
                col0 = (ki * kw + kj) * cin
                patch = pad_ref[:, ki:ki + ho, kj:kj + wo, :]
                slab_ref[:, col0:col0 + cin] = patch.reshape(m_blk, cin)
        acc = jnp.dot(slab_ref[...], w_ref[...],
                      preferred_element_type=jnp.float32)
        _conv_epilogue(acc, o_ref, st_ref)

    return kernel


def _affine_relu_kernel(x_ref, s_ref, b_ref, o_ref):
    y = x_ref[...].astype(jnp.float32) * s_ref[...] + b_ref[...]
    o_ref[...] = jnp.maximum(y, 0.0).astype(o_ref.dtype)


def _dual_affine_relu_kernel(xa_ref, sa_ref, ba_ref, xb_ref, sb_ref, bb_ref, o_ref):
    y = (xa_ref[...].astype(jnp.float32) * sa_ref[...] + ba_ref[...]
         + xb_ref[...].astype(jnp.float32) * sb_ref[...] + bb_ref[...])
    o_ref[...] = jnp.maximum(y, 0.0).astype(o_ref.dtype)


# -------------------------------- wrappers ----------------------------------

def conv2d_ws(x, wp, stride, padding):
    """x: (N,H,W,Cin) NHWC bf16.
    Returns ((N*Ho*Wo, Cout) bf16, (m_tiles, 8, Cout) f32 stats, Ho, Wo)."""
    n, hh, ww, cin = x.shape
    kh, kw, cout, cin_p = wp['kh'], wp['kw'], wp['cout'], wp['cin']
    ho = (hh + 2 * padding - kh) // stride + 1
    wo = (ww + 2 * padding - kw) // stride + 1
    if cin != cin_p or padding:
        x = jnp.pad(x, ((0, 0), (padding, padding), (padding, padding),
                        (0, cin_p - cin)))
    s = stride
    hp, wpad = x.shape[1], x.shape[2]
    assert hp % s == 0 and wpad % s == 0, "padded spatial dims must divide stride"
    hq, wq = hp // s, wpad // s
    # space-to-batch phase rearrangement (metadata-only for stride 1)
    x_ph = (x.reshape(n, hq, s, wq, s, cin_p)
             .transpose(0, 2, 4, 1, 3, 5)
             .reshape(n, s * s, hq, wq, cin_p))

    tn = min(cout, _COUT_TILE)
    bs = _pick_bs(n, ho * wo)
    m_blk = bs * ho * wo
    m_tiles = n // bs
    K = kh * kw * cin_p
    # TODO(synk): for large images the whole-sample-per-block strategy would
    # need within-sample spatial tiling (halo handling); fine at CIFAR scale.

    vmem = _conv_vmem_limit(bs * s * s * hq * wq * cin_p * 2, K * tn * 2,
                            m_blk * tn * 2, 8 * tn * 4,
                            scratch_bytes=m_blk * K * 2)

    kern = _make_conv_kernel(kh, kw, s, cin_p, bs, ho, wo, tn)
    out, stats = pl.pallas_call(
        kern,
        out_shape=(jax.ShapeDtypeStruct((n * ho * wo, cout), jnp.bfloat16),
                   jax.ShapeDtypeStruct((m_tiles, 8, cout), jnp.float32)),
        grid=(cout // tn, m_tiles),       # weight tile outer -> stays resident
        in_specs=[pl.BlockSpec((bs, s * s, hq, wq, cin_p),
                               lambda j, i: (i, 0, 0, 0, 0)),
                  pl.BlockSpec((K, tn), lambda j, i: (0, j))],
        out_specs=(pl.BlockSpec((m_blk, tn), lambda j, i: (i, j)),
                   pl.BlockSpec((1, 8, tn), lambda j, i: (i, 0, j))),
        scratch_shapes=[pltpu.VMEM((m_blk, K), jnp.bfloat16)],
        compiler_params=pltpu.CompilerParams(
            dimension_semantics=("parallel", "parallel"),
            vmem_limit_bytes=vmem),
    )(x_ph, wp['w'])
    return out, stats, ho, wo


def conv2d_ws_fused(x, wp, scale, shift):
    """3x3/stride-1/pad-1 WS-conv with fused producer BN-affine + ReLU prologue.
    x: (N,H,W,Cin) bf16 RAW producer conv output; scale/shift: (1,Cin) f32."""
    n, hh, ww, cin = x.shape
    kh, kw, cout = wp['kh'], wp['kw'], wp['cout']
    assert kh == 3 and kw == 3 and cin == wp['cin']
    ho, wo = hh, ww
    tn = min(cout, _COUT_TILE)
    bs = _pick_bs(n, ho * wo)
    m_blk = bs * ho * wo
    m_tiles = n // bs
    K = kh * kw * cin

    scratch = bs * (ho + 2) * (wo + 2) * cin * 2 + m_blk * K * 2
    vmem = _conv_vmem_limit(bs * ho * wo * cin * 2, K * tn * 2,
                            m_blk * tn * 2, 8 * tn * 4, scratch_bytes=scratch)

    kern = _make_fused_conv_kernel(kh, kw, cin, bs, ho, wo, tn)
    out, stats = pl.pallas_call(
        kern,
        out_shape=(jax.ShapeDtypeStruct((n * ho * wo, cout), jnp.bfloat16),
                   jax.ShapeDtypeStruct((m_tiles, 8, cout), jnp.float32)),
        grid=(cout // tn, m_tiles),
        in_specs=[pl.BlockSpec((bs, ho, wo, cin), lambda j, i: (i, 0, 0, 0)),
                  pl.BlockSpec((1, cin), lambda j, i: (0, 0)),
                  pl.BlockSpec((1, cin), lambda j, i: (0, 0)),
                  pl.BlockSpec((K, tn), lambda j, i: (0, j))],
        out_specs=(pl.BlockSpec((m_blk, tn), lambda j, i: (i, j)),
                   pl.BlockSpec((1, 8, tn), lambda j, i: (i, 0, j))),
        scratch_shapes=[pltpu.VMEM((bs, ho + 2, wo + 2, cin), jnp.bfloat16),
                        pltpu.VMEM((m_blk, K), jnp.bfloat16)],
        compiler_params=pltpu.CompilerParams(
            dimension_semantics=("parallel", "parallel"),
            vmem_limit_bytes=vmem),
    )(x, scale, shift, wp['w'])
    return out, stats, ho, wo


def _lane_factor(m, c):
    return 128 // c if (c < 128 and 128 % c == 0 and m % (128 // c) == 0) else 1


def affine_relu(x2d, scale, shift):
    m, c = x2d.shape
    f = _lane_factor(m, c)
    xr = x2d.reshape(m // f, c * f)
    sr, br = jnp.tile(scale, (1, f)), jnp.tile(shift, (1, f))
    mm, cc = xr.shape
    rt = _row_tile(mm, cc)
    out = pl.pallas_call(
        _affine_relu_kernel,
        out_shape=jax.ShapeDtypeStruct((mm, cc), jnp.bfloat16),
        grid=(mm // rt,),
        in_specs=[pl.BlockSpec((rt, cc), lambda i: (i, 0)),
                  pl.BlockSpec((1, cc), lambda i: (0, 0)),
                  pl.BlockSpec((1, cc), lambda i: (0, 0))],
        out_specs=pl.BlockSpec((rt, cc), lambda i: (i, 0)),
        compiler_params=pltpu.CompilerParams(dimension_semantics=("parallel",)),
    )(xr, sr, br)
    return out.reshape(m, c)


def dual_affine_relu(xa, sa, ba, xb, sb, bb):
    m, c = xa.shape
    f = _lane_factor(m, c)
    xa, xb = xa.reshape(m // f, c * f), xb.reshape(m // f, c * f)
    sa, ba = jnp.tile(sa, (1, f)), jnp.tile(ba, (1, f))
    sb, bb = jnp.tile(sb, (1, f)), jnp.tile(bb, (1, f))
    mm, cc = xa.shape
    rt = _row_tile(mm, cc)
    out = pl.pallas_call(
        _dual_affine_relu_kernel,
        out_shape=jax.ShapeDtypeStruct((mm, cc), jnp.bfloat16),
        grid=(mm // rt,),
        in_specs=[pl.BlockSpec((rt, cc), lambda i: (i, 0)),
                  pl.BlockSpec((1, cc), lambda i: (0, 0)),
                  pl.BlockSpec((1, cc), lambda i: (0, 0)),
                  pl.BlockSpec((rt, cc), lambda i: (i, 0)),
                  pl.BlockSpec((1, cc), lambda i: (0, 0)),
                  pl.BlockSpec((1, cc), lambda i: (0, 0))],
        out_specs=pl.BlockSpec((rt, cc), lambda i: (i, 0)),
        compiler_params=pltpu.CompilerParams(dimension_semantics=("parallel",)),
    )(xa, sa, ba, xb, sb, bb)
    return out.reshape(m, c)


def _bn_from_stats(stats, gamma, beta, count, eps=1e-5):
    """stats: (m_tiles, 8, C), rows 0/1 = sum / sum_sq.  -> (scale, shift) (1,C)."""
    tot = jnp.sum(stats, axis=0)
    mean = tot[0] / count
    var = jnp.maximum(tot[1] / count - mean * mean, 0.0)   # biased var (torch BN train)
    scale = gamma / jnp.sqrt(var + eps)
    shift = beta - mean * scale
    return (scale.reshape(1, -1).astype(jnp.float32),
            shift.reshape(1, -1).astype(jnp.float32))


# --------------------------------- model ------------------------------------

def basic_block(x, blk):
    """relu(bn2(conv2(relu(bn1(conv1(x))))) + shortcut(x)).  x: NHWC bf16."""
    n = x.shape[0]
    stride = blk['stride']
    cout = blk['conv1']['cout']

    h1, st1, ho, wo = conv2d_ws(x, blk['conv1'], stride=stride, padding=1)
    cnt = n * ho * wo
    s1, b1 = _bn_from_stats(st1, *blk['bn1'], count=cnt)

    # bn1 + relu fused into conv2's prologue -> no extra HBM round trip
    h2, st2, _, _ = conv2d_ws_fused(h1.reshape(n, ho, wo, cout),
                                    blk['conv2'], s1, b1)
    s2, b2 = _bn_from_stats(st2, *blk['bn2'], count=cnt)

    if 'sc_conv' in blk:
        sc2d, sts, _, _ = conv2d_ws(x, blk['sc_conv'], stride=stride, padding=0)
        ss, bsh = _bn_from_stats(sts, *blk['sc_bn'], count=cnt)
    else:
        sc2d = x.reshape(cnt, cout)
        ss = jnp.ones((1, cout), jnp.float32)
        bsh = jnp.zeros((1, cout), jnp.float32)

    out = dual_affine_relu(h2, s2, b2, sc2d, ss, bsh)
    return out.reshape(n, ho, wo, cout)


def resnet_ws_forward(prep, x_nchw):
    x = jnp.transpose(x_nchw, (0, 2, 3, 1)).astype(jnp.bfloat16)  # NCHW -> NHWC
    n = x.shape[0]

    h, st, ho, wo = conv2d_ws(x, prep['conv1'], stride=1, padding=1)
    c = prep['conv1']['cout']
    s, b = _bn_from_stats(st, *prep['bn1'], count=n * ho * wo)
    # stem activation must be materialized (feeds both the first block's conv1
    # and its identity shortcut), so it keeps a standalone affine+relu kernel
    act = affine_relu(h, s, b).reshape(n, ho, wo, c)

    for blocks in prep['layers']:
        for blk in blocks:
            act = basic_block(act, blk)

    # global average pool + tiny classifier: plain XLA (pallas_call here is
    # pure launch/DMA overhead per the perf review)
    feat = act.astype(jnp.float32).mean(axis=(1, 2))              # (N, 512)
    return jnp.dot(feat, prep['linear_wt']) + prep['linear_b']


# --------------------- parameter prep (hoisted, once) -----------------------

def _standardize_weight(w):
    """Weight standardization on OIHW f32 (matches the WS Conv2d.forward)."""
    mean = w.mean(axis=(1, 2, 3), keepdims=True)
    wc = w - mean
    std = jnp.std(wc.reshape(w.shape[0], -1), axis=1, ddof=1).reshape(-1, 1, 1, 1) + 1e-5
    return wc / std


def _prep_conv(w):
    """OIHW f32 -> standardized (kh*kw*cin_p, cout) bf16 GEMM slab (+ meta)."""
    cout, cin, kh, kw = w.shape
    ws = _standardize_weight(w)
    cin_p = ((cin + 15) // 16) * 16       # bf16 sublane packing (stem: 3 -> 16)
    if cin_p != cin:
        ws = jnp.pad(ws, ((0, 0), (0, cin_p - cin), (0, 0), (0, 0)))
    wm = jnp.transpose(ws, (2, 3, 1, 0)).reshape(kh * kw * cin_p, cout)
    return {'w': wm.astype(jnp.bfloat16), 'kh': kh, 'kw': kw,
            'cin': cin_p, 'cout': cout}


def prepare_params(p):
    out = {'conv1': _prep_conv(p['conv1']), 'bn1': p['bn1'], 'layers': []}
    for blocks in p['layers']:
        pbs = []
        for blk in blocks:
            pb = {'stride': blk['stride'],
                  'conv1': _prep_conv(blk['conv1']), 'bn1': blk['bn1'],
                  'conv2': _prep_conv(blk['conv2']), 'bn2': blk['bn2']}
            if 'sc_conv' in blk:
                pb['sc_conv'] = _prep_conv(blk['sc_conv'])
                pb['sc_bn'] = blk['sc_bn']
            pbs.append(pb)
        out['layers'].append(pbs)
    out['linear_wt'] = p['linear_w'].T.astype(jnp.float32)      # (512, nc)
    out['linear_b'] = p['linear_b'].reshape(1, -1).astype(jnp.float32)
    return out


# --------------------------- deterministic init ------------------------------

def _conv_init(key, cout, cin, kh, kw):
    fan_in = cin * kh * kw
    return (jax.random.normal(key, (cout, cin, kh, kw), jnp.float32)
            * (2.0 / fan_in) ** 0.5)


def _bn_init(key, c):
    k1, k2 = jax.random.split(key)
    gamma = 1.0 + 0.1 * jax.random.normal(k1, (c,), jnp.float32)
    beta = 0.1 * jax.random.normal(k2, (c,), jnp.float32)
    return (gamma, beta)


def init_params(key, num_blocks=(1, 1, 1, 1), num_classes=10, in_channels=3):
    keys = iter(jax.random.split(key, 512))
    p = {'conv1': _conv_init(next(keys), 64, in_channels, 3, 3),
         'bn1': _bn_init(next(keys), 64)}
    in_planes = 64
    layers = []
    for planes, nb, stride0 in zip((64, 128, 256, 512), num_blocks, (1, 2, 2, 2)):
        blocks = []
        for bi in range(nb):
            stride = stride0 if bi == 0 else 1
            blk = {'stride': stride,
                   'conv1': _conv_init(next(keys), planes, in_planes, 3, 3),
                   'bn1': _bn_init(next(keys), planes),
                   'conv2': _conv_init(next(keys), planes, planes, 3, 3),
                   'bn2': _bn_init(next(keys), planes)}
            if stride != 1 or in_planes != planes:
                blk['sc_conv'] = _conv_init(next(keys), planes, in_planes, 1, 1)
                blk['sc_bn'] = _bn_init(next(keys), planes)
            blocks.append(blk)
            in_planes = planes
        layers.append(blocks)
    p['layers'] = layers
    p['linear_w'] = (jax.random.normal(next(keys), (num_classes, 512), jnp.float32)
                     * (1.0 / 512) ** 0.5)
    p['linear_b'] = 0.01 * jax.random.normal(next(keys), (num_classes,), jnp.float32)
    return p


if __name__ == "__main__":
    key = jax.random.PRNGKey(0)
    pkey, xkey = jax.random.split(key)
    params = init_params(pkey, num_blocks=(1, 1, 1, 1), num_classes=10, in_channels=3)
    prep = prepare_params(params)                    # weight std / layout hoisted
    x = jax.random.normal(xkey, (2, 3, 16, 16), jnp.float32)  # NCHW, like PyTorch
    logits = resnet_ws_forward(prep, x)
    jax.block_until_ready(logits)
    assert logits.shape == (2, 10) and logits.dtype == jnp.float32
    print("KERNEL_OK")
</pallas_src>

<mosaic_0001>
module attributes {stable_mosaic.version = 11 : i64} {
  func.func @kernel(%arg0: i32, %arg1: i32, %arg2: memref<1x1x18x18x16xbf16, #tpu.memory_space<vmem>>, %arg3: memref<144x64xbf16, #tpu.memory_space<vmem>>, %arg4: memref<256x64xbf16, #tpu.memory_space<vmem>>, %arg5: memref<1x8x64xf32, #tpu.memory_space<vmem>>, %arg6: memref<256x144xbf16, #tpu.memory_space<vmem>>) attributes {dimension_semantics = [#tpu.dimension_semantics<parallel>, #tpu.dimension_semantics<parallel>], iteration_bounds = array<i64: 1, 2>, scalar_prefetch = 0 : i64, scratch_operands = 1 : i64, tpu.core_type = #tpu.core_type<tc>, window_params = [{transform_indices = @transform_0, window_bounds = array<i64: 1, 1, 18, 18, 16>}, {transform_indices = @transform_1, window_bounds = array<i64: 144, 64>}, {transform_indices = @transform_2, window_bounds = array<i64: 256, 64>}, {transform_indices = @transform_3, window_bounds = array<i64: 1, 8, 64>}]} {
    %c0 = arith.constant 0 : index
    %c0_0 = arith.constant 0 : index
    %c0_1 = arith.constant 0 : index
    %c0_2 = arith.constant 0 : index
    %c0_3 = arith.constant 0 : index
    %0 = vector.load %arg2[%c0, %c0_0, %c0_1, %c0_2, %c0_3] : memref<1x1x18x18x16xbf16, #tpu.memory_space<vmem>>, vector<1x1x16x16x16xbf16>
    %1 = vector.shape_cast %0 : vector<1x1x16x16x16xbf16> to vector<1x16x16x16xbf16>
    %2 = vector.shape_cast %1 : vector<1x16x16x16xbf16> to vector<256x16xbf16>
    %c0_4 = arith.constant 0 : index
    %c0_5 = arith.constant 0 : index
    %3 = vector.load %arg6[%c0_4, %c0_5] : memref<256x144xbf16, #tpu.memory_space<vmem>>, vector<256x16xbf16>
    tpu.vector_store %arg6[%c0_4, %c0_5], %2 {strides = array<i32>} : memref<256x144xbf16, #tpu.memory_space<vmem>>, vector<256x16xbf16>,
    %c0_6 = arith.constant 0 : index
    %c0_7 = arith.constant 0 : index
    %c0_8 = arith.constant 0 : index
    %c1 = arith.constant 1 : index
    %c0_9 = arith.constant 0 : index
    %4 = vector.load %arg2[%c0_6, %c0_7, %c0_8, %c1, %c0_9] : memref<1x1x18x18x16xbf16, #tpu.memory_space<vmem>>, vector<1x1x16x16x16xbf16>
    %5 = vector.shape_cast %4 : vector<1x1x16x16x16xbf16> to vector<1x16x16x16xbf16>
    %6 = vector.shape_cast %5 : vector<1x16x16x16xbf16> to vector<256x16xbf16>
    %c0_10 = arith.constant 0 : index
    %c16 = arith.constant 16 : index
    %7 = vector.load %arg6[%c0_10, %c16] : memref<256x144xbf16, #tpu.memory_space<vmem>>, vector<256x16xbf16>
    tpu.vector_store %arg6[%c0_10, %c16], %6 {strides = array<i32>} : memref<256x144xbf16, #tpu.memory_space<vmem>>, vector<256x16xbf16>,
    %c0_11 = arith.constant 0 : index
    %c0_12 = arith.constant 0 : index
    %c0_13 = arith.constant 0 : index
    %c2 = arith.constant 2 : index
    %c0_14 = arith.constant 0 : index
    %8 = vector.load %arg2[%c0_11, %c0_12, %c0_13, %c2, %c0_14] : memref<1x1x18x18x16xbf16, #tpu.memory_space<vmem>>, vector<1x1x16x16x16xbf16>
    %9 = vector.shape_cast %8 : vector<1x1x16x16x16xbf16> to vector<1x16x16x16xbf16>
    %10 = vector.shape_cast %9 : vector<1x16x16x16xbf16> to vector<256x16xbf16>
    %c0_15 = arith.constant 0 : index
    %c32 = arith.constant 32 : index
    %11 = vector.load %arg6[%c0_15, %c32] : memref<256x144xbf16, #tpu.memory_space<vmem>>, vector<256x16xbf16>
    tpu.vector_store %arg6[%c0_15, %c32], %10 {strides = array<i32>} : memref<256x144xbf16, #tpu.memory_space<vmem>>, vector<256x16xbf16>,
    %c0_16 = arith.constant 0 : index
    %c0_17 = arith.constant 0 : index
    %c1_18 = arith.constant 1 : index
    %c0_19 = arith.constant 0 : index
    %c0_20 = arith.constant 0 : index
    %12 = vector.load %arg2[%c0_16, %c0_17, %c1_18, %c0_19, %c0_20] : memref<1x1x18x18x16xbf16, #tpu.memory_space<vmem>>, vector<1x1x16x16x16xbf16>
    %13 = vector.shape_cast %12 : vector<1x1x16x16x16xbf16> to vector<1x16x16x16xbf16>
    %14 = vector.shape_cast %13 : vector<1x16x16x16xbf16> to vector<256x16xbf16>
    %c0_21 = arith.constant 0 : index
    %c48 = arith.constant 48 : index
    %15 = vector.load %arg6[%c0_21, %c48] : memref<256x144xbf16, #tpu.memory_space<vmem>>, vector<256x16xbf16>
    tpu.vector_store %arg6[%c0_21, %c48], %14 {strides = array<i32>} : memref<256x144xbf16, #tpu.memory_space<vmem>>, vector<256x16xbf16>,
    %c0_22 = arith.constant 0 : index
    %c0_23 = arith.constant 0 : index
    %c1_24 = arith.constant 1 : index
    %c1_25 = arith.constant 1 : index
    %c0_26 = arith.constant 0 : index
    %16 = vector.load %arg2[%c0_22, %c0_23, %c1_24, %c1_25, %c0_26] : memref<1x1x18x18x16xbf16, #tpu.memory_space<vmem>>, vector<1x1x16x16x16xbf16>
    %17 = vector.shape_cast %16 : vector<1x1x16x16x16xbf16> to vector<1x16x16x16xbf16>
    %18 = vector.shape_cast %17 : vector<1x16x16x16xbf16> to vector<256x16xbf16>
    %c0_27 = arith.constant 0 : index
    %c64 = arith.constant 64 : index
    %19 = vector.load %arg6[%c0_27, %c64] : memref<256x144xbf16, #tpu.memory_space<vmem>>, vector<256x16xbf16>
    tpu.vector_store %arg6[%c0_27, %c64], %18 {strides = array<i32>} : memref<256x144xbf16, #tpu.memory_space<vmem>>, vector<256x16xbf16>,
    %c0_28 = arith.constant 0 : index
    %c0_29 = arith.constant 0 : index
    %c1_30 = arith.constant 1 : index
    %c2_31 = arith.constant 2 : index
    %c0_32 = arith.constant 0 : index
    %20 = vector.load %arg2[%c0_28, %c0_29, %c1_30, %c2_31, %c0_32] : memref<1x1x18x18x16xbf16, #tpu.memory_space<vmem>>, vector<1x1x16x16x16xbf16>
    %21 = vector.shape_cast %20 : vector<1x1x16x16x16xbf16> to vector<1x16x16x16xbf16>
    %22 = vector.shape_cast %21 : vector<1x16x16x16xbf16> to vector<256x16xbf16>
    %c0_33 = arith.constant 0 : index
    %c80 = arith.constant 80 : index
    %23 = vector.load %arg6[%c0_33, %c80] : memref<256x144xbf16, #tpu.memory_space<vmem>>, vector<256x16xbf16>
    tpu.vector_store %arg6[%c0_33, %c80], %22 {strides = array<i32>} : memref<256x144xbf16, #tpu.memory_space<vmem>>, vector<256x16xbf16>,
    %c0_34 = arith.constant 0 : index
    %c0_35 = arith.constant 0 : index
    %c2_36 = arith.constant 2 : index
    %c0_37 = arith.constant 0 : index
    %c0_38 = arith.constant 0 : index
    %24 = vector.load %arg2[%c0_34, %c0_35, %c2_36, %c0_37, %c0_38] : memref<1x1x18x18x16xbf16, #tpu.memory_space<vmem>>, vector<1x1x16x16x16xbf16>
    %25 = vector.shape_cast %24 : vector<1x1x16x16x16xbf16> to vector<1x16x16x16xbf16>
    %26 = vector.shape_cast %25 : vector<1x16x16x16xbf16> to vector<256x16xbf16>
    %c0_39 = arith.constant 0 : index
    %c96 = arith.constant 96 : index
    %27 = vector.load %arg6[%c0_39, %c96] : memref<256x144xbf16, #tpu.memory_space<vmem>>, vector<256x16xbf16>
    tpu.vector_store %arg6[%c0_39, %c96], %26 {strides = array<i32>} : memref<256x144xbf16, #tpu.memory_space<vmem>>, vector<256x16xbf16>,
    %c0_40 = arith.constant 0 : index
    %c0_41 = arith.constant 0 : index
    %c2_42 = arith.constant 2 : index
    %c1_43 = arith.constant 1 : index
    %c0_44 = arith.constant 0 : index
    %28 = vector.load %arg2[%c0_40, %c0_41, %c2_42, %c1_43, %c0_44] : memref<1x1x18x18x16xbf16, #tpu.memory_space<vmem>>, vector<1x1x16x16x16xbf16>
    %29 = vector.shape_cast %28 : vector<1x1x16x16x16xbf16> to vector<1x16x16x16xbf16>
    %30 = vector.shape_cast %29 : vector<1x16x16x16xbf16> to vector<256x16xbf16>
    %c0_45 = arith.constant 0 : index
    %c112 = arith.constant 112 : index
    %31 = vector.load %arg6[%c0_45, %c112] : memref<256x144xbf16, #tpu.memory_space<vmem>>, vector<256x16xbf16>
    tpu.vector_store %arg6[%c0_45, %c112], %30 {strides = array<i32>} : memref<256x144xbf16, #tpu.memory_space<vmem>>, vector<256x16xbf16>,
    %c0_46 = arith.constant 0 : index
    %c0_47 = arith.constant 0 : index
    %c2_48 = arith.constant 2 : index
    %c2_49 = arith.constant 2 : index
    %c0_50 = arith.constant 0 : index
    %32 = vector.load %arg2[%c0_46, %c0_47, %c2_48, %c2_49, %c0_50] : memref<1x1x18x18x16xbf16, #tpu.memory_space<vmem>>, vector<1x1x16x16x16xbf16>
    %33 = vector.shape_cast %32 : vector<1x1x16x16x16xbf16> to vector<1x16x16x16xbf16>
    %34 = vector.shape_cast %33 : vector<1x16x16x16xbf16> to vector<256x16xbf16>
    %c0_51 = arith.constant 0 : index
    %c128 = arith.constant 128 : index
    %35 = vector.load %arg6[%c0_51, %c128] : memref<256x144xbf16, #tpu.memory_space<vmem>>, vector<256x16xbf16>
    tpu.vector_store %arg6[%c0_51, %c128], %34 {strides = array<i32>} : memref<256x144xbf16, #tpu.memory_space<vmem>>, vector<256x16xbf16>,
    %c0_52 = arith.constant 0 : index
    %c0_53 = arith.constant 0 : index
    %36 = vector.load %arg6[%c0_52, %c0_53] : memref<256x144xbf16, #tpu.memory_space<vmem>>, vector<256x144xbf16>
    %c0_54 = arith.constant 0 : index
    %c0_55 = arith.constant 0 : index
    %37 = vector.load %arg3[%c0_54, %c0_55] : memref<144x64xbf16, #tpu.memory_space<vmem>>, vector<144x64xbf16>
    %cst = arith.constant dense<0.000000e+00> : vector<256x64xf32>
    %38 = tpu.matmul %36, %37, %cst {dimension_numbers = #tpu.dot_dimension_numbers<[1], [0], [0], [1], [0, 0, 1, 1], [], []>} : vector<256x144xbf16>, vector<144x64xbf16>, vector<256x64xf32> -> vector<256x64xf32>
    %39 = arith.truncf %38 : vector<256x64xf32> to vector<256x64xbf16>
    %c0_56 = arith.constant 0 : index
    %c0_57 = arith.constant 0 : index
    %40 = vector.load %arg4[%c0_56, %c0_57] : memref<256x64xbf16, #tpu.memory_space<vmem>>, vector<256x64xbf16>
    tpu.vector_store %arg4[%c0_56, %c0_57], %39 {strides = array<i32>} : memref<256x64xbf16, #tpu.memory_space<vmem>>, vector<256x64xbf16>,
    %cst_58 = arith.constant dense<0.000000e+00> : vector<64xf32>
    %41 = vector.multi_reduction <add>, %38, %cst_58 [0] : vector<256x64xf32> to vector<64xf32>
    %42 = vector.shape_cast %41 : vector<64xf32> to vector<1x64xf32>
    %43 = arith.mulf %38, %38 : vector<256x64xf32>
    %cst_59 = arith.constant dense<0.000000e+00> : vector<64xf32>
    %44 = vector.multi_reduction <add>, %43, %cst_59 [0] : vector<256x64xf32> to vector<64xf32>
    %45 = vector.shape_cast %44 : vector<64xf32> to vector<1x64xf32>
    %46 = tpu.iota {dimensions = array<i32: 0>} : vector<8x64xi32>
    %c0_i32 = arith.constant 0 : i32
    %47 = vector.broadcast %c0_i32 : i32 to vector<8x64xi32>
    %48 = arith.cmpi eq, %46, %47 : vector<8x64xi32>
    %c1_i32 = arith.constant 1 : i32
    %49 = vector.broadcast %c1_i32 : i32 to vector<8x64xi32>
    %50 = arith.cmpi eq, %46, %49 : vector<8x64xi32>
    %cst_60 = arith.constant 0.000000e+00 : f32
    %51 = vector.shape_cast %45 : vector<1x64xf32> to vector<1x64xf32>
    %52 = vector.broadcast %51 : vector<1x64xf32> to vector<8x64xf32>
    %53 = vector.broadcast %cst_60 : f32 to vector<8x64xf32>
    %54 = arith.select %50, %52, %53 : vector<8x64xi1>, vector<8x64xf32>
    %55 = vector.shape_cast %42 : vector<1x64xf32> to vector<1x64xf32>
    %56 = vector.broadcast %55 : vector<1x64xf32> to vector<8x64xf32>
    %57 = arith.select %48, %56, %54 : vector<8x64xi1>, vector<8x64xf32>
    %c0_61 = arith.constant 0 : index
    %c0_62 = arith.constant 0 : index
    %c0_63 = arith.constant 0 : index
    %58 = vector.load %arg5[%c0_61, %c0_62, %c0_63] : memref<1x8x64xf32, #tpu.memory_space<vmem>>, vector<1x8x64xf32>
    %59 = vector.shape_cast %58 : vector<1x8x64xf32> to vector<8x64xf32>
    %60 = vector.shape_cast %57 : vector<8x64xf32> to vector<1x8x64xf32>
    tpu.vector_store %arg5[%c0_61, %c0_62, %c0_63], %60 {strides = array<i32>} : memref<1x8x64xf32, #tpu.memory_space<vmem>>, vector<1x8x64xf32>,
    return
  }
  func.func @transform_0(%arg0: i32, %arg1: i32) -> (i32, i32, i32, i32, i32) {
    %c0_i32 = arith.constant 0 : i32
    %c0_i32_0 = arith.constant 0 : i32
    %c0_i32_1 = arith.constant 0 : i32
    %c0_i32_2 = arith.constant 0 : i32
    %c0_i32_3 = arith.constant 0 : i32
    return %arg1, %c0_i32, %c0_i32_0, %c0_i32_1, %c0_i32_2 : i32, i32, i32, i32, i32
  }
  func.func @transform_1(%arg0: i32, %arg1: i32) -> (i32, i32) {
    %c0_i32 = arith.constant 0 : i32
    %c0_i32_0 = arith.constant 0 : i32
    return %c0_i32, %arg0 : i32, i32
  }
  func.func @transform_2(%arg0: i32, %arg1: i32) -> (i32, i32) {
    %c0_i32 = arith.constant 0 : i32
    return %arg1, %arg0 : i32, i32
  }
  func.func @transform_3(%arg0: i32, %arg1: i32) -> (i32, i32, i32) {
    %c0_i32 = arith.constant 0 : i32
    %c0_i32_0 = arith.constant 0 : i32
    return %arg1, %c0_i32, %arg0 : i32, i32, i32
  }
}

</mosaic_0001>

<bundles_post_ra>
// kernel: tpu_custom_call.1
= control target key start
LH: loop header
LB: loop body
LE: loop exit
PB: predicated region body
PF: predicated region fallthrough
CT: control target
= control target key end

     0   :  { %9 = vsyncpa [#allocation4], 0  ;;  %s6297_s0 = inlined_call_operand.vmem [shape: bf16[2,1,18,18,16], index: 0, kind: input, shape index: {}]   ;;  %s6298_s1 = inlined_call_operand.vmem [shape: bf16[144,64], index: 1, kind: input, shape index: {}]   ;;  %s6299_s2 = inlined_call_operand.vmem [shape: bf16[512,64], index: 2, kind: output, shape index: {0}]   ;;  %s6300_s3 = inlined_call_operand.hbm [shape: f32[2,8,64], index: 3, kind: output, shape index: {1}]  }
   0x1   :  { %11 = vsyncpa [#allocation4 + $0x1], 0  ;;  %s4888_s12 = smov 0   ;;  %s4890_s13 = smov 0  }
   0x2   :  { %s4892_s14 = smov 0   ;;  %s4894_s15 = smov 0  }
   0x3   :  { %s4896_s16 = smov 0   ;;  %s4898_s17 = smov 0  }
   0x4 LB: > { %s4089_s18 = sadd.s32 4294967295, %s4857_s17   ;;  %s4090_s19 = sadd.s32 4294967294, %s4857_s17   ;;  %s4857_s17 = sphi %s4898_s17, %s17_s17   ;;  %s4853_s16 = sphi %s4896_s16, %s6311_s16   ;;  %s4849_s15 = sphi %s4894_s15, %s6310_s15   ;;  %s4845_s14 = sphi %s4892_s14, %s6309_s14   ;;  %s4841_s13 = sphi %s4890_s13, %s6308_s13   ;;  %s4837_s12 = sphi %s4888_s12, %s6307_s12  }
   0x5   : > { %s26_s20 = sadd.s32 1, %s4853_s16  ;;  %s118_s21 = sadd.s32 1, %s4845_s14 }
   0x6   : > { %p27_p0 = scmp.ge.s32.totalorder %s26_s20, 2  ;;  %p128_p1 = scmp.ne.s32.totalorder %s4845_s14, %s4841_s13 }
   0x7   : > { %p129_p2 = scmp.eq.s32.totalorder %s4089_s18, 1  ;;  %p134_p3 = scmp.ne.s32.totalorder %s4841_s13, %s4837_s12 }
   0x8   : > { %s6313_s20 = smov (%p27_p0, %s26_s20), 0  ;;  %p135_p5 = scmp.eq.s32.totalorder %s4090_s19, 1 }
   0x9   : > { %p4928_p4 = por %p129_p2, %p128_p1  ;;  %s113_s23 = ssub.s32 %s4853_s16, %s6313_s20 }
   0xa   : > { %p4094_p6 = scmp.ge.s32.totalorder %s4857_s17, 1  ;;  %p116_p7 = scmp.eq.s32.totalorder %s113_s23, 0 }
   0xb   : > { %p4935_p8 = por %p135_p5, %p134_p3  ;;  %p168_p9 = scmp.lt.s32.totalorder %s4857_s17, 3 }
   0xc   : > { %s4941_s25 = scalar_select %p116_p7, %s4845_s14, %s118_s21  }
   0xd   : > { %p169_p10 = pnand %p4094_p6, %p168_p9 }
   0xe   : > { %p204_p11 = scmp.lt.s32.totalorder (!%p169_p10), %s4849_s15, 1  ;;  %vm1012_vm0 = vcmask (!%p169_p10), 1042432   ;;  %vm1013_vm1 = vcmask (!%p169_p10), 1046532   ;;  %s4859_s4 = smov (!%p169_p10), 48   ;;  %vm416_vm3 = vsmask.f32 (!%p169_p10), 3328 }
   0xf   : > { %172 = sbr.rel (%p169_p10) target bundleno = 677 (0x2a5), region = 28  ;;  %vm4945_vm2 = vmor (!%p169_p10), %vm1012_vm0, %vm1013_vm1  ;;  %vm417_vm4 = vsmask.f32 (!%p169_p10), 7440  ;;  %s4860_s5 = smov (!%p169_p10), 96   ;;  %vm351_vm6 = vcmask (!%p169_p10), 130048   ;;  %vm899_vm7 = vcmask (!%p169_p10), 261248  }
  0x10   : > { %s4861_s6 = smov (!%p169_p10), 32   ;;  %vm4987_vm5 = vmor (!%p169_p10), %vm416_vm3, %vm417_vm4  ;;  %s4862_s7 = smov (!%p169_p10), 80   ;;  %vm1223_vm8 = vcmask (!%p169_p10), 392448   ;;  %vm1401_vm9 = vcmask (!%p169_p10), 523648   ;;  %vm1946_vm10 = vcmask (!%p169_p10), 654848   ;;  %vm2267_vm11 = vcmask (!%p169_p10), 786048  }
  0x11   : > { %s4863_s8 = smov (!%p169_p10), 64   ;;  %s4864_s9 = smov (!%p169_p10), 16   ;;  %vm2445_vm12 = vcmask (!%p169_p10), 917248   ;;  %vm2990_vm13 = vcmask (!%p169_p10), 1048448   ;;  %vm3736_vm14 = vcmask (!%p169_p10), 519168   ;;  %vm3769_vm15 = vcmask (!%p169_p10), 523264  }
  0x12   : > { %s4865_s10 = smov (!%p169_p10), 112  }
  0x16   : > { %s205_s26 = scalar_select %p204_p11, %s4849_s15, 1 }
  0x18   : > { %s4658_s27 = smul.u32 216, %s205_s26 }
  0x1a   : > { %s4952_s30 = scalar_lea.vmem %s6297_s0, %s4658_s27  ;;  %s4867_s27 = smov [#allocation3]  }
  0x1b   : > { %v4722_v1 = vld [vmem:[%s4952_s30 + $0xc] sm:$0xff]   ;;  %v4723_v2 = vld [vmem:[%s4952_s30 + $0x18] sm:$0xff]   ;;  %v916_v3 = vld [vmem:[%s4952_s30] sm:$0xe]  ;;  %s4783_s28 = sshll.u32 %s4867_s27, 4  ;;  %s4784_s28 = int_to_ptr.vmem [resolvable:$false] %s4783_s28 }
  0x1c   : > { %1353 = vrot.lane.b32.xlu1 %v4722_v1, %s4859_s4  ;;  %v917_v4 = vld [vmem:[%s4952_s30 + $0x4] sm:$0xf]  ;;  %v918_v5 = vld [vmem:[%s4952_s30 + $0x8] sm:$0x1]  ;;  %v4131_v6 = vrot.slane %v916_v3, 9  ;;  %v4724_v16 = vld [vmem:[%s4952_s30 + $0x18] sm:$0xff]  }
  0x1d   : > { %v1017_v7 = vrot.slane %v917_v4, 5  ;;  %v1020_v8 = vrot.slane %v918_v5, 5  ;;  %v4275_v9 = vld [vmem:[%s4952_s30 + $0xc] sm:$0xe]  ;;  %v4276_v10 = vld [vmem:[%s4952_s30 + $0x10] sm:$0xf] }
  0x1e   : > { %v4277_v13 = vld [vmem:[%s4952_s30 + $0x14] sm:$0x1]  ;;  %v4323_v14 = vrot.slane %v4275_v9, 9  ;;  %v2061_v15 = vrot.slane %v4276_v10, 5  ;;  %v4211_v18 = vld [vmem:[%s4952_s30 + $0xc] sm:$0xf] }
  0x1f   : > { %v1018_v11 = vsel %vm4945_vm2, %v4131_v6, %v1017_v7  ;;  %v1019_v12 = vrot.slane %v1017_v7, 4  ;;  %v2064_v17 = vrot.slane %v4277_v13, 5  ;;  %v4212_v19 = vld [vmem:[%s4952_s30 + $0x10] sm:$0xf]  ;;  %v4213_v23 = vld [vmem:[%s4952_s30 + $0x14] sm:$0x1] }
  0x20   : > { %2397 = vrot.lane.b32.xlu1 %v4723_v2, %s4860_s5  ;;  %v2062_v21 = vsel %vm4945_vm2, %v4323_v14, %v2061_v15  ;;  %v2063_v22 = vrot.slane %v2061_v15, 4  ;;  %v1467_v24 = vshrl.u32 %v4211_v18, 16  ;;  %v919_v25 = vld [vmem:[%s4952_s30 + $0xc] sm:$0xe]  ;;  %v1470_v27 = vshll.u32 %v4211_v18, 16  ;;  %s4785_s29 = scalar_lea.vmem %s4784_s28, 256 }
  0x21   : > { %v1021_v20 = vsel %vm4945_vm2, %v1019_v12, %v1020_v8  ;;  %v1476_v28 = vshll.u32 %v4212_v19, 16  ;;  %v1480_v29 = vshrl.u32 %v4212_v19, 16  ;;  %v920_v30 = vld [vmem:[%s4952_s30 + $0x10] sm:$0xf]  ;;  %v1486_v33 = vshll.u32 %v4213_v23, 16 }
  0x22   : > { %v4147_v26 = vcombine.low %v1018_v11, %v1021_v20  ;;  %v2065_v31 = vsel %vm4945_vm2, %v2063_v22, %v2064_v17  ;;  %v1469_v32 = vrot.slane %v1467_v24, 4  ;;  %v921_v34 = vld [vmem:[%s4952_s30 + $0x14] sm:$0x1]  ;;  %v4132_v35 = vrot.slane %v919_v25, 9  ;;  %v371_v40 = vld [vmem:[%s4952_s30 + $0xc] sm:$0xf] }
  0x23   : > { %v4339_v36 = vcombine.low %v2062_v21, %v2065_v31  ;;  %v1472_v37 = vrot.slane %v1470_v27, 5  ;;  %v1478_v38 = vrot.slane %v1476_v28, 5  ;;  %v1482_v39 = vrot.slane %v1480_v29, 4  ;;  %v372_v44 = vld [vmem:[%s4952_s30 + $0x10] sm:$0xf] }
  0x24   : > { %1175 = vrot.lane.b32.xlu0 %v4147_v26, %s4861_s6  ;;  %1355 = vrot.lane.b32.xlu1 %v4724_v16, %s4859_s4  ;;  %v1488_v41 = vrot.slane %v1486_v33, 5  ;;  %v1024_v42 = vrot.slane %v920_v30, 5  ;;  %v1027_v43 = vrot.slane %v921_v34, 5  ;;  %v444_v45 = vshrl.u32 %v371_v40, 16  ;;  %v373_v48 = vld [vmem:[%s4952_s30 + $0x14] sm:$0x1] }
  0x25   : > { %v1473_v46 = vor.u32 %v1472_v37, %v1469_v32  ;;  %v1483_v47 = vor.u32 %v1482_v39, %v1478_v38  ;;  %v447_v49 = vshll.u32 %v371_v40, 16  ;;  %v453_v50 = vshll.u32 %v372_v44, 16  ;;  %v368_v51 = vld [vmem:[%s4952_s30] sm:$0xf]  ;;  %v369_v1 = vld [vmem:[%s4952_s30 + $0x4] sm:$0xf] }
  0x26   : > { %v1025_v53 = vsel %vm4945_vm2, %v4132_v35, %v1024_v42  ;;  %v1026_v54 = vrot.slane %v1024_v42, 4  ;;  %v446_v55 = vrot.slane %v444_v45, 4  ;;  %v457_v56 = vshrl.u32 %v372_v44, 16  ;;  %v370_v7 = vld [vmem:[%s4952_s30 + $0x8] sm:$0x1] }
  0x27   : > { %v1474_v57 = vrot.slane %v1473_v46, 4  ;;  %v1484_v58 = vrot.slane %v1483_v47, 4  ;;  %v449_v59 = vrot.slane %v447_v49, 5  ;;  %v455_v60 = vrot.slane %v453_v50, 5  ;;  %v4403_v8 = vld [vmem:[%s4952_s30 + $0x18] sm:$0xf] }
  0x28   : > { %2219 = vrot.lane.b32.xlu0 %v4339_v36, %s4862_s7  ;;  %v1028_v61 = vsel %vm4945_vm2, %v1026_v54, %v1027_v43  ;;  %v459_v62 = vrot.slane %v457_v56, 4  ;;  %v463_v63 = vshll.u32 %v373_v48, 16  ;;  %v420_v2 = vshrl.u32 %v368_v51, 16  ;;  %v4404_v17 = vld [vmem:[%s4952_s30 + $0x1c] sm:$0xf] }
  0x29   : > { %v1479_v3 = vsel %vm4987_vm5, %v1474_v57, %v1478_v38  ;;  %v1489_v4 = vsel %vm4987_vm5, %v1484_v58, %v1488_v41  ;;  %v4148_v5 = vcombine.low %v1025_v53, %v1028_v61  ;;  %v450_v6 = vor.u32 %v449_v59, %v446_v55  ;;  %v4405_v20 = vld [vmem:[%s4952_s30 + $0x20] sm:$0x1]  ;;  %v4278_v27 = vld [vmem:[%s4952_s30 + $0x18] sm:$0xe]  ;;  %v4279_v32 = vld [vmem:[%s4952_s30 + $0x1c] sm:$0xf] }
  0x2a   : > { %v4259_v9 = vcombine.low %v1479_v3, %v1489_v4  ;;  %v460_v10 = vor.u32 %v459_v62, %v455_v60  ;;  %v465_v11 = vrot.slane %v463_v63, 5  ;;  %v422_v12 = vrot.slane %v420_v2, 4  ;;  %v4280_v37 = vld [vmem:[%s4952_s30 + $0x20] sm:$0x1]  ;;  %v4214_v38 = vld [vmem:[%s4952_s30 + $0x18] sm:$0xf] }
  0x2b   : > { %v451_v13 = vrot.slane %v450_v6, 4  ;;  %v423_v14 = vshll.u32 %v368_v51, 16  ;;  %v429_v15 = vshll.u32 %v369_v1, 16  ;;  %v433_v16 = vshrl.u32 %v369_v1, 16  ;;  %v4215_v51 = vld [vmem:[%s4952_s30 + $0x1c] sm:$0xf] }
  0x2c   : > { %1177 = vrot.lane.b32.xlu0 %v4148_v5, %s4861_s6  ;;  %1898 = vrot.lane.b32.xlu1 %v4259_v9, %s4863_s8  ;;  %v461_v18 = vrot.slane %v460_v10, 4  ;;  %v439_v19 = vshll.u32 %v370_v7, 16  ;;  %v2511_v21 = vshrl.u32 %v4403_v8, 16  ;;  %v2514_v22 = vshll.u32 %v4403_v8, 16  ;;  %v4216_v57 = vld [vmem:[%s4952_s30 + $0x20] sm:$0x1] }
  0x2d   : > { %v456_v23 = vsel %vm4987_vm5, %v451_v13, %v455_v60  ;;  %v425_v24 = vrot.slane %v423_v14, 5  ;;  %v431_v25 = vrot.slane %v429_v15, 5  ;;  %v435_v26 = vrot.slane %v433_v16, 4  ;;  %v4406_v62 = vld [vmem:[%s4952_s30 + $0x24] sm:$0xf] }
  0x2e   : > { %v466_v28 = vsel %vm4987_vm5, %v461_v18, %v465_v11  ;;  %v441_v29 = vrot.slane %v439_v19, 5  ;;  %v2513_v30 = vrot.slane %v2511_v21, 4  ;;  %v2516_v31 = vrot.slane %v2514_v22, 5  ;;  %v4407_v63 = vld [vmem:[%s4952_s30 + $0x28] sm:$0xf] }
  0x2f   : > { %v4116_v33 = vcombine.low %v456_v23, %v466_v28  ;;  %v426_v34 = vor.u32 %v425_v24, %v422_v12  ;;  %v436_v35 = vor.u32 %v435_v26, %v431_v25  ;;  %v2520_v36 = vshll.u32 %v4404_v17, 16  ;;  %v4408_v5 = vld [vmem:[%s4952_s30 + $0x2c] sm:$0x1]  ;;  %v922_v10 = vld [vmem:[%s4952_s30 + $0x18] sm:$0xe] }
  0x30   : > { %v2517_v39 = vor.u32 %v2516_v31, %v2513_v30  ;;  %v2524_v40 = vshrl.u32 %v4404_v17, 16  ;;  %v2530_v41 = vshll.u32 %v4405_v20, 16  ;;  %v4324_v42 = vrot.slane %v4278_v27, 9  ;;  %v923_v15 = vld [vmem:[%s4952_s30 + $0x1c] sm:$0xf] }
  0x31   : > { %853 = vrot.lane.b32.xlu1 %v4116_v33, %s4864_s9  ;;  %v427_v43 = vrot.slane %v426_v34, 4  ;;  %v437_v44 = vrot.slane %v436_v35, 4  ;;  %v2522_v45 = vrot.slane %v2520_v36, 5  ;;  %v2068_v46 = vrot.slane %v4279_v32, 5  ;;  %v924_v20 = vld [vmem:[%s4952_s30 + $0x20] sm:$0x1] }
  0x32   : > { %v2518_v47 = vrot.slane %v2517_v39, 4  ;;  %v2526_v48 = vrot.slane %v2524_v40, 4  ;;  %v2532_v49 = vrot.slane %v2530_v41, 5  ;;  %v2071_v50 = vrot.slane %v4280_v37, 5 }
  0x33   : > { %v432_v53 = vsel %vm4987_vm5, %v427_v43, %v431_v25  ;;  %v442_v54 = vsel %vm4987_vm5, %v437_v44, %v441_v29  ;;  %v2069_v55 = vsel %vm4945_vm2, %v4324_v42, %v2068_v46  ;;  %v2070_v56 = vrot.slane %v2068_v46, 4  ;;  %v374_v25 = vld [vmem:[%s4952_s30 + $0x18] sm:$0xf]  ;;  %v376_v46 = vld [vmem:[%s4952_s30 + $0x20] sm:$0x1] }
  0x34   : > { %v4115_v58 = vcombine.low %v432_v53, %v442_v54  ;;  %v2523_v59 = vsel %vm4987_vm5, %v2518_v47, %v2522_v45  ;;  %v2527_v60 = vor.u32 %v2526_v48, %v2522_v45  ;;  %v1491_v61 = vshrl.u32 %v4214_v38, 16  ;;  %v4217_v48 = vld [vmem:[%s4952_s30 + $0x24] sm:$0xf] }
  0x35   : > { %v2072_v1 = vsel %vm4945_vm2, %v2070_v56, %v2071_v50  ;;  %v1494_v2 = vshll.u32 %v4214_v38, 16  ;;  %v1500_v3 = vshll.u32 %v4215_v51, 16  ;;  %v1504_v4 = vshrl.u32 %v4215_v51, 16  ;;  %v375_v38 = vld [vmem:[%s4952_s30 + $0x1c] sm:$0xf] }
  0x36   : > { %851 = vrot.lane.b32.xlu0 %v4115_v58, %s4864_s9  ;;  %v2528_v6 = vrot.slane %v2527_v60, 4  ;;  %v4340_v7 = vcombine.low %v2069_v55, %v2072_v1  ;;  %v1493_v8 = vrot.slane %v1491_v61, 4  ;;  %v1510_v9 = vshll.u32 %v4216_v57, 16  ;;  %v4218_v55 = vld [vmem:[%s4952_s30 + $0x28] sm:$0xf] }
  0x37   : > { %v1496_v11 = vrot.slane %v1494_v2, 5  ;;  %v1502_v12 = vrot.slane %v1500_v3, 5  ;;  %v1506_v13 = vrot.slane %v1504_v4, 4  ;;  %v2535_v14 = vshrl.u32 %v4406_v62, 16  ;;  %v4219_v60 = vld [vmem:[%s4952_s30 + $0x2c] sm:$0x1] }
  0x38   : > { %v2533_v16 = vsel %vm4987_vm5, %v2528_v6, %v2532_v49  ;;  %2221 = vrot.lane.b32.xlu1 %v4340_v7, %s4862_s7  ;;  %v1512_v17 = vrot.slane %v1510_v9, 5  ;;  %v2538_v18 = vshll.u32 %v4406_v62, 16  ;;  %v2544_v19 = vshll.u32 %v4407_v63, 16  ;;  %v4725_v49 = vld [vmem:[%s4952_s30 + $0x24] sm:$0xff]  }
  0x39   : > { %v4451_v21 = vcombine.low %v2523_v59, %v2533_v16  ;;  %v1497_v22 = vor.u32 %v1496_v11, %v1493_v8  ;;  %v1507_v23 = vor.u32 %v1506_v13, %v1502_v12  ;;  %v2537_v24 = vrot.slane %v2535_v14, 4  ;;  %v4281_v61 = vld [vmem:[%s4952_s30 + $0x24] sm:$0xe]  ;;  %v4282_v3 = vld [vmem:[%s4952_s30 + $0x28] sm:$0xf] }
  0x3a   : > { %v2540_v26 = vrot.slane %v2538_v18, 5  ;;  %v2546_v27 = vrot.slane %v2544_v19, 5  ;;  %v2548_v28 = vshrl.u32 %v4407_v63, 16  ;;  %v2554_v29 = vshll.u32 %v4408_v5, 16 }
  0x3b   : > { %2942 = vrot.lane.b32.xlu0 %v4451_v21, %s4865_s10  ;;  %v1498_v30 = vrot.slane %v1497_v22, 4  ;;  %v1508_v31 = vrot.slane %v1507_v23, 4  ;;  %v4133_v32 = vrot.slane %v922_v10, 9  ;;  %v1031_v33 = vrot.slane %v923_v15, 5 }
  0x3c   : > { %v2541_v34 = vor.u32 %v2540_v26, %v2537_v24  ;;  %v2550_v35 = vrot.slane %v2548_v28, 4  ;;  %v2556_v36 = vrot.slane %v2554_v29, 5  ;;  %v1034_v37 = vrot.slane %v924_v20, 5  ;;  %v378_v26 = vld [vmem:[%s4952_s30 + $0x28] sm:$0xf] }
  0x3d   : > { %v1503_v39 = vsel %vm4987_vm5, %v1498_v30, %v1502_v12  ;;  %v1513_v40 = vsel %vm4987_vm5, %v1508_v31, %v1512_v17  ;;  %v1032_v41 = vsel %vm4945_vm2, %v4133_v32, %v1031_v33  ;;  %v1033_v42 = vrot.slane %v1031_v33, 4  ;;  %v4283_v12 = vld [vmem:[%s4952_s30 + $0x2c] sm:$0x1]  ;;  %v377_v17 = vld [vmem:[%s4952_s30 + $0x24] sm:$0xf] }
  0x3e   : > { %v4260_v43 = vcombine.low %v1503_v39, %v1513_v40  ;;  %v2542_v44 = vrot.slane %v2541_v34, 4  ;;  %v2551_v45 = vor.u32 %v2550_v35, %v2546_v27  ;;  %v468_v47 = vshrl.u32 %v374_v25, 16  ;;  %v379_v30 = vld [vmem:[%s4952_s30 + $0x2c] sm:$0x1] }
  0x3f   : > { %v1035_v50 = vsel %vm4945_vm2, %v1033_v42, %v1034_v37  ;;  %v471_v51 = vshll.u32 %v374_v25, 16  ;;  %v477_v53 = vshll.u32 %v375_v38, 16  ;;  %v481_v54 = vshrl.u32 %v375_v38, 16 }
  0x40   : > { %1900 = vrot.lane.b32.xlu0 %v4260_v43, %s4863_s8  ;;  %v2547_v56 = vsel %vm4987_vm5, %v2542_v44, %v2546_v27  ;;  %v2552_v57 = vrot.slane %v2551_v45, 4  ;;  %v4149_v58 = vcombine.low %v1032_v41, %v1035_v50  ;;  %v470_v59 = vrot.slane %v468_v47, 4  ;;  %v4410_v41 = vld [vmem:[%s4952_s30 + $0x34] sm:$0xf]  ;;  %v4726_v44 = vld [vmem:[%s4952_s30 + $0x24] sm:$0xff]  }
  0x41   : > { %v473_v62 = vrot.slane %v471_v51, 5  ;;  %v479_v63 = vrot.slane %v477_v53, 5  ;;  %v483_v1 = vrot.slane %v481_v54, 4  ;;  %v487_v2 = vshll.u32 %v376_v46, 16  ;;  %v4411_v47 = vld [vmem:[%s4952_s30 + $0x38] sm:$0x1] }
  0x42   : > { %v2557_v4 = vsel %vm4987_vm5, %v2552_v57, %v2556_v36  ;;  %v1515_v5 = vshrl.u32 %v4217_v48, 16  ;;  %v1518_v6 = vshll.u32 %v4217_v48, 16  ;;  %v1524_v7 = vshll.u32 %v4218_v55, 16  ;;  %v4409_v36 = vld [vmem:[%s4952_s30 + $0x30] sm:$0xf] }
  0x43   : > { %v4452_v8 = vcombine.low %v2547_v56, %v2557_v4  ;;  %v474_v9 = vor.u32 %v473_v62, %v470_v59  ;;  %v484_v10 = vor.u32 %v483_v1, %v479_v63  ;;  %v489_v11 = vrot.slane %v487_v2, 5  ;;  %v925_v53 = vld [vmem:[%s4952_s30 + $0x24] sm:$0xe]  ;;  %v4727_v1 = vld [vmem:[%s4952_s30 + $0x30] sm:$0xff]  }
  0x44   : > { %2399 = vrot.lane.b32.xlu0 %v4725_v49, %s4860_s5  ;;  %v1517_v13 = vrot.slane %v1515_v5, 4  ;;  %v1520_v14 = vrot.slane %v1518_v6, 5  ;;  %v1526_v15 = vrot.slane %v1524_v7, 5  ;;  %v1528_v16 = vshrl.u32 %v4218_v55, 16  ;;  %v4284_v6 = vld [vmem:[%s4952_s30 + $0x30] sm:$0xe] }
  0x45   : > { %2944 = vrot.lane.b32.xlu1 %v4452_v8, %s4865_s10  ;;  %v475_v18 = vrot.slane %v474_v9, 4  ;;  %v485_v19 = vrot.slane %v484_v10, 4  ;;  %v1534_v20 = vshll.u32 %v4219_v60, 16  ;;  %v4325_v21 = vrot.slane %v4281_v61, 9 }
  0x46   : > { %v1521_v22 = vor.u32 %v1520_v14, %v1517_v13  ;;  %v1530_v23 = vrot.slane %v1528_v16, 4  ;;  %v2075_v24 = vrot.slane %v4282_v3, 5  ;;  %v2078_v25 = vrot.slane %v4283_v12, 5  ;;  %v4286_v16 = vld [vmem:[%s4952_s30 + $0x38] sm:$0x1] }
  0x47   : > { %v480_v27 = vsel %vm4987_vm5, %v475_v18, %v479_v63  ;;  %v490_v28 = vsel %vm4987_vm5, %v485_v19, %v489_v11  ;;  %v1536_v29 = vrot.slane %v1534_v20, 5  ;;  %v492_v31 = vshrl.u32 %v377_v17, 16  ;;  %v927_v63 = vld [vmem:[%s4952_s30 + $0x2c] sm:$0x1]  ;;  %v4285_v11 = vld [vmem:[%s4952_s30 + $0x34] sm:$0xf] }
  0x48   : > { %v4117_v32 = vcombine.low %v480_v27, %v490_v28  ;;  %v1522_v33 = vrot.slane %v1521_v22, 4  ;;  %v1531_v34 = vor.u32 %v1530_v23, %v1526_v15  ;;  %v2076_v35 = vsel %vm4945_vm2, %v4325_v21, %v2075_v24  ;;  %v4220_v21 = vld [vmem:[%s4952_s30 + $0x30] sm:$0xf] }
  0x49   : > { %1179 = vrot.lane.b32.xlu1 %v4149_v58, %s4861_s6  ;;  %v2077_v37 = vrot.slane %v2075_v24, 4  ;;  %v494_v38 = vrot.slane %v492_v31, 4  ;;  %v495_v39 = vshll.u32 %v377_v17, 16  ;;  %v501_v40 = vshll.u32 %v378_v26, 16  ;;  %v926_v58 = vld [vmem:[%s4952_s30 + $0x28] sm:$0xf] }
  0x4a   : > { %855 = vrot.lane.b32.xlu0 %v4117_v32, %s4864_s9  ;;  %v1527_v42 = vsel %vm4987_vm5, %v1522_v33, %v1526_v15  ;;  %v1532_v43 = vrot.slane %v1531_v34, 4  ;;  %v505_v45 = vshrl.u32 %v378_v26, 16  ;;  %v511_v46 = vshll.u32 %v379_v30, 16  ;;  %v4221_v26 = vld [vmem:[%s4952_s30 + $0x34] sm:$0xf] }
  0x4b   : > { %v2079_v48 = vsel %vm4945_vm2, %v2077_v37, %v2078_v25  ;;  %v497_v49 = vrot.slane %v495_v39, 5  ;;  %v503_v50 = vrot.slane %v501_v40, 5  ;;  %v2559_v51 = vshrl.u32 %v4409_v36, 16  ;;  %v4222_v31 = vld [vmem:[%s4952_s30 + $0x38] sm:$0x1] }
  0x4c   : > { %v1537_v54 = vsel %vm4987_vm5, %v1532_v43, %v1536_v29  ;;  %v4341_v55 = vcombine.low %v2076_v35, %v2079_v48  ;;  %v507_v56 = vrot.slane %v505_v45, 4  ;;  %v513_v57 = vrot.slane %v511_v46, 5 }
  0x4d   : > { %v4261_v59 = vcombine.low %v1527_v42, %v1537_v54  ;;  %v498_v60 = vor.u32 %v497_v49, %v494_v38  ;;  %v2561_v61 = vrot.slane %v2559_v51, 4  ;;  %v2562_v62 = vshll.u32 %v4409_v36, 16  ;;  %v4412_v36 = vld [vmem:[%s4952_s30 + $0x3c] sm:$0xf]  ;;  %v4414_v42 = vld [vmem:[%s4952_s30 + $0x44] sm:$0x1] }
  0x4e   : > { %1357 = vrot.lane.b32.xlu0 %v4726_v44, %s4859_s4  ;;  %v508_v2 = vor.u32 %v507_v56, %v503_v50  ;;  %v2568_v3 = vshll.u32 %v4410_v41, 16  ;;  %v2572_v4 = vshrl.u32 %v4410_v41, 16  ;;  %v2578_v5 = vshll.u32 %v4411_v47, 16  ;;  %v4413_v41 = vld [vmem:[%s4952_s30 + $0x40] sm:$0xf]  ;;  %v4728_v44 = vld [vmem:[%s4952_s30 + $0x30] sm:$0xff]  }
  0x4f   : > { %1902 = vrot.lane.b32.xlu1 %v4261_v59, %s4863_s8  ;;  %v499_v7 = vrot.slane %v498_v60, 4  ;;  %v2564_v8 = vrot.slane %v2562_v62, 5  ;;  %v4134_v9 = vrot.slane %v925_v53, 9  ;;  %v1038_v10 = vrot.slane %v926_v58, 5 }
  0x50   : > { %v509_v12 = vrot.slane %v508_v2, 4  ;;  %v2570_v13 = vrot.slane %v2568_v3, 5  ;;  %v2574_v14 = vrot.slane %v2572_v4, 4  ;;  %v2580_v15 = vrot.slane %v2578_v5, 5  ;;  %v393_v3 = vld [vmem:[%s4952_s30 + $0x64] sm:$0xf] }
  0x51   : > { %v504_v17 = vsel %vm4987_vm5, %v499_v7, %v503_v50  ;;  %v2565_v18 = vor.u32 %v2564_v8, %v2561_v61  ;;  %v1039_v19 = vsel %vm4945_vm2, %v4134_v9, %v1038_v10  ;;  %v1040_v20 = vrot.slane %v1038_v10, 4  ;;  %v394_v7 = vld [vmem:[%s4952_s30 + $0x68] sm:$0x1] }
  0x52   : > { %2223 = vrot.lane.b32.xlu0 %v4341_v55, %s4862_s7  ;;  %v514_v22 = vsel %vm4987_vm5, %v509_v12, %v513_v57  ;;  %v2575_v23 = vor.u32 %v2574_v14, %v2570_v13  ;;  %v1041_v24 = vrot.slane %v927_v63, 5  ;;  %v4326_v25 = vrot.slane %v4284_v6, 9  ;;  %v392_v57 = vld [vmem:[%s4952_s30 + $0x60] sm:$0xf] }
  0x53   : > { %2401 = vrot.lane.b32.xlu1 %v4727_v1, %s4860_s5  ;;  %v4118_v27 = vcombine.low %v504_v17, %v514_v22  ;;  %v2566_v28 = vrot.slane %v2565_v18, 4  ;;  %v2082_v29 = vrot.slane %v4285_v11, 5  ;;  %v2085_v30 = vrot.slane %v4286_v16, 5  ;;  %v381_v22 = vld [vmem:[%s4952_s30 + $0x34] sm:$0xf] }
  0x54   : > { %v2576_v32 = vrot.slane %v2575_v23, 4  ;;  %v1042_v33 = vsel %vm4945_vm2, %v1040_v20, %v1041_v24  ;;  %v1539_v34 = vshrl.u32 %v4220_v21, 16  ;;  %v1542_v35 = vshll.u32 %v4220_v21, 16 }
  0x55   : > { %v2571_v37 = vsel %vm4987_vm5, %v2566_v28, %v2570_v13  ;;  %v4150_v38 = vcombine.low %v1039_v19, %v1042_v33  ;;  %v2083_v39 = vsel %vm4945_vm2, %v4326_v25, %v2082_v29  ;;  %v2084_v40 = vrot.slane %v2082_v29, 4  ;;  %v380_v13 = vld [vmem:[%s4952_s30 + $0x30] sm:$0xf]  ;;  %v941_v33 = vld [vmem:[%s4952_s30 + $0x64] sm:$0xf] }
  0x56   : > { %v2581_v43 = vsel %vm4987_vm5, %v2576_v32, %v2580_v15  ;;  %v1541_v45 = vrot.slane %v1539_v34, 4  ;;  %v1544_v46 = vrot.slane %v1542_v35, 5  ;;  %v1548_v47 = vshll.u32 %v4221_v26, 16  ;;  %v940_v32 = vld [vmem:[%s4952_s30 + $0x60] sm:$0xe] }
  0x57   : > { %857 = vrot.lane.b32.xlu1 %v4118_v27, %s4864_s9  ;;  %v4453_v48 = vcombine.low %v2571_v37, %v2581_v43  ;;  %v2086_v49 = vsel %vm4945_vm2, %v2084_v40, %v2085_v30  ;;  %v1552_v50 = vshrl.u32 %v4221_v26, 16  ;;  %v1558_v51 = vshll.u32 %v4222_v31, 16  ;;  %v382_v26 = vld [vmem:[%s4952_s30 + $0x38] sm:$0x1]  ;;  %v4729_v35 = vld [vmem:[%s4952_s30 + $0x3c] sm:$0xff]  }
  0x58   : > { %v4342_v53 = vcombine.low %v2083_v39, %v2086_v49  ;;  %v1545_v54 = vor.u32 %v1544_v46, %v1541_v45  ;;  %v1550_v55 = vrot.slane %v1548_v47, 5  ;;  %v2583_v56 = vshrl.u32 %v4412_v36, 16  ;;  %v942_v39 = vld [vmem:[%s4952_s30 + $0x68] sm:$0x1]  ;;  %v928_v40 = vld [vmem:[%s4952_s30 + $0x30] sm:$0xe] }
  0x59   : > { %2946 = vrot.lane.b32.xlu0 %v4453_v48, %s4865_s10  ;;  %v1554_v58 = vrot.slane %v1552_v50, 4  ;;  %v1560_v59 = vrot.slane %v1558_v51, 5  ;;  %v2586_v60 = vshll.u32 %v4412_v36, 16  ;;  %v2592_v61 = vshll.u32 %v4413_v41, 16  ;;  %v929_v45 = vld [vmem:[%s4952_s30 + $0x34] sm:$0xf] }
  0x5a   : > { %v1546_v62 = vrot.slane %v1545_v54, 4  ;;  %v2585_v63 = vrot.slane %v2583_v56, 4  ;;  %v2596_v1 = vshrl.u32 %v4413_v41, 16  ;;  %v2602_v2 = vshll.u32 %v4414_v42, 16  ;;  %v930_v50 = vld [vmem:[%s4952_s30 + $0x38] sm:$0x1] }
  0x5b   : > { %1359 = vrot.lane.b32.xlu1 %v4728_v44, %s4859_s4  ;;  %v1555_v4 = vor.u32 %v1554_v58, %v1550_v55  ;;  %v2588_v5 = vrot.slane %v2586_v60, 5  ;;  %v2594_v6 = vrot.slane %v2592_v61, 5  ;;  %v612_v8 = vshrl.u32 %v392_v57, 16 }
  0x5c   : > { %v1551_v9 = vsel %vm4987_vm5, %v1546_v62, %v1550_v55  ;;  %v2598_v10 = vrot.slane %v2596_v1, 4  ;;  %v2604_v11 = vrot.slane %v2602_v2, 5  ;;  %v615_v12 = vshll.u32 %v392_v57, 16  ;;  %v4235_v1 = vld [vmem:[%s4952_s30 + $0x6c] sm:$0xf] }
  0x5d   : > { %1181 = vrot.lane.b32.xlu0 %v4150_v38, %s4861_s6  ;;  %v1556_v14 = vrot.slane %v1555_v4, 4  ;;  %v2589_v15 = vor.u32 %v2588_v5, %v2585_v63  ;;  %v614_v16 = vrot.slane %v612_v8, 4  ;;  %v621_v17 = vshll.u32 %v393_v3, 16 }
  0x5e   : > { %v2599_v18 = vor.u32 %v2598_v10, %v2594_v6  ;;  %v617_v19 = vrot.slane %v615_v12, 5  ;;  %v625_v20 = vshrl.u32 %v393_v3, 16  ;;  %v631_v21 = vshll.u32 %v394_v7, 16 }
  0x5f   : > { %2225 = vrot.lane.b32.xlu1 %v4342_v53, %s4862_s7  ;;  %v1561_v23 = vsel %vm4987_vm5, %v1556_v14, %v1560_v59  ;;  %v2590_v24 = vrot.slane %v2589_v15, 4  ;;  %v623_v25 = vrot.slane %v621_v17, 5  ;;  %v516_v27 = vshrl.u32 %v380_v13, 16 }
  0x60   : > { %v4262_v28 = vcombine.low %v1551_v9, %v1561_v23  ;;  %v2600_v29 = vrot.slane %v2599_v18, 4  ;;  %v618_v30 = vor.u32 %v617_v19, %v614_v16  ;;  %v627_v31 = vrot.slane %v625_v20, 4  ;;  %v4223_v20 = vld [vmem:[%s4952_s30 + $0x3c] sm:$0xf] }
  0x61   : > { %v2595_v34 = vsel %vm4987_vm5, %v2590_v24, %v2594_v6  ;;  %v633_v36 = vrot.slane %v631_v21, 5  ;;  %v518_v37 = vrot.slane %v516_v27, 4  ;;  %v519_v38 = vshll.u32 %v380_v13, 16  ;;  %v4236_v6 = vld [vmem:[%s4952_s30 + $0x70] sm:$0xf] }
  0x62   : > { %1904 = vrot.lane.b32.xlu0 %v4262_v28, %s4863_s8  ;;  %v2605_v41 = vsel %vm4987_vm5, %v2600_v29, %v2604_v11  ;;  %v619_v42 = vrot.slane %v618_v30, 4  ;;  %v628_v43 = vor.u32 %v627_v31, %v623_v25  ;;  %v525_v44 = vshll.u32 %v381_v22, 16  ;;  %v4237_v13 = vld [vmem:[%s4952_s30 + $0x74] sm:$0x1]  ;;  %v4224_v21 = vld [vmem:[%s4952_s30 + $0x40] sm:$0xf] }
  0x63   : > { %v4454_v46 = vcombine.low %v2595_v34, %v2605_v41  ;;  %v521_v47 = vrot.slane %v519_v38, 5  ;;  %v529_v48 = vshrl.u32 %v381_v22, 16  ;;  %v535_v49 = vshll.u32 %v382_v26, 16  ;;  %v4225_v26 = vld [vmem:[%s4952_s30 + $0x44] sm:$0x1]  ;;  %v4730_v28 = vld [vmem:[%s4952_s30 + $0x6c] sm:$0xff]  }
  0x64   : > { %v624_v51 = vsel %vm4987_vm5, %v619_v42, %v623_v25  ;;  %v629_v53 = vrot.slane %v628_v43, 4  ;;  %v527_v54 = vrot.slane %v525_v44, 5  ;;  %v4139_v55 = vrot.slane %v940_v32, 9  ;;  %v4299_v32 = vld [vmem:[%s4952_s30 + $0x6c] sm:$0xe] }
  0x65   : > { %2948 = vrot.lane.b32.xlu1 %v4454_v46, %s4865_s10  ;;  %v522_v56 = vor.u32 %v521_v47, %v518_v37  ;;  %v531_v57 = vrot.slane %v529_v48, 4  ;;  %v537_v58 = vrot.slane %v535_v49, 5  ;;  %v1073_v59 = vrot.slane %v941_v33, 5  ;;  %v4300_v37 = vld [vmem:[%s4952_s30 + $0x70] sm:$0xf] }
  0x66   : > { %2403 = vrot.lane.b32.xlu0 %v4729_v35, %s4860_s5  ;;  %v634_v60 = vsel %vm4987_vm5, %v629_v53, %v633_v36  ;;  %v1076_v61 = vrot.slane %v942_v39, 5  ;;  %v4135_v62 = vrot.slane %v928_v40, 9  ;;  %v1045_v63 = vrot.slane %v929_v45, 5  ;;  %v4301_v42 = vld [vmem:[%s4952_s30 + $0x74] sm:$0x1] }
  0x67   : > { %v4123_v2 = vcombine.low %v624_v51, %v634_v60  ;;  %v523_v3 = vrot.slane %v522_v56, 4  ;;  %v532_v4 = vor.u32 %v531_v57, %v527_v54  ;;  %v1074_v5 = vsel %vm4945_vm2, %v4139_v55, %v1073_v59  ;;  %v4287_v43 = vld [vmem:[%s4952_s30 + $0x3c] sm:$0xe]  ;;  %v4288_v48 = vld [vmem:[%s4952_s30 + $0x40] sm:$0xf] }
  0x68   : > { %v1075_v7 = vrot.slane %v1073_v59, 4  ;;  %v1046_v8 = vsel %vm4945_vm2, %v4135_v62, %v1045_v63  ;;  %v1047_v9 = vrot.slane %v1045_v63, 4  ;;  %v1048_v10 = vrot.slane %v930_v50, 5  ;;  %v4427_v59 = vld [vmem:[%s4952_s30 + $0x78] sm:$0xf]  ;;  %v4731_v60 = vld [vmem:[%s4952_s30 + $0x3c] sm:$0xff]  }
  0x69   : > { %867 = vrot.lane.b32.xlu1 %v4123_v2, %s4864_s9  ;;  %v528_v11 = vsel %vm4987_vm5, %v523_v3, %v527_v54  ;;  %v533_v12 = vrot.slane %v532_v4, 4  ;;  %v1659_v14 = vshrl.u32 %v4235_v1, 16  ;;  %v1662_v15 = vshll.u32 %v4235_v1, 16  ;;  %v4289_v54 = vld [vmem:[%s4952_s30 + $0x44] sm:$0x1] }
  0x6a   : > { %v1077_v16 = vsel %vm4945_vm2, %v1075_v7, %v1076_v61  ;;  %v1049_v17 = vsel %vm4945_vm2, %v1047_v9, %v1048_v10  ;;  %v1668_v18 = vshll.u32 %v4236_v6, 16  ;;  %v1672_v19 = vshrl.u32 %v4236_v6, 16  ;;  %v4428_v2 = vld [vmem:[%s4952_s30 + $0x7c] sm:$0xf]  ;;  %v4429_v7 = vld [vmem:[%s4952_s30 + $0x80] sm:$0x1] }
  0x6b   : > { %v538_v22 = vsel %vm4987_vm5, %v533_v12, %v537_v58  ;;  %v4155_v23 = vcombine.low %v1074_v5, %v1077_v16  ;;  %v4151_v24 = vcombine.low %v1046_v8, %v1049_v17  ;;  %v1661_v25 = vrot.slane %v1659_v14, 4  ;;  %v4415_v16 = vld [vmem:[%s4952_s30 + $0x48] sm:$0xf] }
  0x6c   : > { %v4119_v27 = vcombine.low %v528_v11, %v538_v22  ;;  %v1664_v29 = vrot.slane %v1662_v15, 5  ;;  %v1670_v30 = vrot.slane %v1668_v18, 5  ;;  %v1674_v31 = vrot.slane %v1672_v19, 4 }
  0x6d   : > { %1191 = vrot.lane.b32.xlu1 %v4155_v23, %s4861_s6  ;;  %v1678_v33 = vshll.u32 %v4237_v13, 16  ;;  %v1563_v34 = vshrl.u32 %v4223_v20, 16  ;;  %v1566_v35 = vshll.u32 %v4223_v20, 16  ;;  %v1572_v36 = vshll.u32 %v4224_v21, 16 }
  0x6e   : > { %859 = vrot.lane.b32.xlu0 %v4119_v27, %s4864_s9  ;;  %v1665_v38 = vor.u32 %v1664_v29, %v1661_v25  ;;  %v1675_v39 = vor.u32 %v1674_v31, %v1670_v30  ;;  %v1576_v40 = vshrl.u32 %v4224_v21, 16  ;;  %v1582_v41 = vshll.u32 %v4225_v26, 16  ;;  %v4416_v21 = vld [vmem:[%s4952_s30 + $0x4c] sm:$0xf]  ;;  %v4417_v29 = vld [vmem:[%s4952_s30 + $0x50] sm:$0x1] }
  0x6f   : > { %v1680_v44 = vrot.slane %v1678_v33, 5  ;;  %v1565_v45 = vrot.slane %v1563_v34, 4  ;;  %v1568_v46 = vrot.slane %v1566_v35, 5  ;;  %v1574_v47 = vrot.slane %v1572_v36, 5  ;;  %v395_v36 = vld [vmem:[%s4952_s30 + $0x6c] sm:$0xf] }
  0x70   : > { %v1666_v49 = vrot.slane %v1665_v38, 4  ;;  %v1676_v50 = vrot.slane %v1675_v39, 4  ;;  %v1578_v51 = vrot.slane %v1576_v40, 4  ;;  %v1584_v53 = vrot.slane %v1582_v41, 5  ;;  %v396_v41 = vld [vmem:[%s4952_s30 + $0x70] sm:$0xf] }
  0x71   : > { %1369 = vrot.lane.b32.xlu1 %v4730_v28, %s4859_s4  ;;  %v1569_v55 = vor.u32 %v1568_v46, %v1565_v45  ;;  %v4331_v56 = vrot.slane %v4299_v32, 9  ;;  %v2117_v57 = vrot.slane %v4300_v37, 5  ;;  %v2120_v58 = vrot.slane %v4301_v42, 5  ;;  %v4732_v32 = vld [vmem:[%s4952_s30 + $0x78] sm:$0xff]  }
  0x72   : > { %1183 = vrot.lane.b32.xlu0 %v4151_v24, %s4861_s6  ;;  %v1671_v61 = vsel %vm4987_vm5, %v1666_v49, %v1670_v30  ;;  %v1681_v62 = vsel %vm4987_vm5, %v1676_v50, %v1680_v44  ;;  %v1579_v63 = vor.u32 %v1578_v51, %v1574_v47  ;;  %v4327_v1 = vrot.slane %v4287_v43, 9 }
  0x73   : > { %v4267_v3 = vcombine.low %v1671_v61, %v1681_v62  ;;  %v1570_v4 = vrot.slane %v1569_v55, 4  ;;  %v2118_v5 = vsel %vm4945_vm2, %v4331_v56, %v2117_v57  ;;  %v2119_v6 = vrot.slane %v2117_v57, 4  ;;  %v383_v56 = vld [vmem:[%s4952_s30 + $0x3c] sm:$0xf]  ;;  %v4733_v57 = vld [vmem:[%s4952_s30 + $0x48] sm:$0xff]  }
  0x74   : > { %v1580_v8 = vrot.slane %v1579_v63, 4  ;;  %v2089_v9 = vrot.slane %v4288_v48, 5  ;;  %v2092_v10 = vrot.slane %v4289_v54, 5  ;;  %v2703_v11 = vshrl.u32 %v4427_v59, 16  ;;  %v397_v48 = vld [vmem:[%s4952_s30 + $0x74] sm:$0x1] }
  0x75   : > { %1914 = vrot.lane.b32.xlu1 %v4267_v3, %s4863_s8  ;;  %v1575_v12 = vsel %vm4987_vm5, %v1570_v4, %v1574_v47  ;;  %v2121_v13 = vsel %vm4945_vm2, %v2119_v6, %v2120_v58  ;;  %v2706_v14 = vshll.u32 %v4427_v59, 16  ;;  %v2712_v15 = vshll.u32 %v4428_v2, 16  ;;  %v384_v62 = vld [vmem:[%s4952_s30 + $0x40] sm:$0xf] }
  0x76   : > { %1361 = vrot.lane.b32.xlu0 %v4731_v60, %s4859_s4  ;;  %v1585_v17 = vsel %vm4987_vm5, %v1580_v8, %v1584_v53  ;;  %v4347_v18 = vcombine.low %v2118_v5, %v2121_v13  ;;  %v2090_v19 = vsel %vm4945_vm2, %v4327_v1, %v2089_v9  ;;  %v2091_v20 = vrot.slane %v2089_v9, 4  ;;  %v943_v13 = vld [vmem:[%s4952_s30 + $0x6c] sm:$0xe] }
  0x77   : > { %v4263_v22 = vcombine.low %v1575_v12, %v1585_v17  ;;  %v2705_v23 = vrot.slane %v2703_v11, 4  ;;  %v2708_v24 = vrot.slane %v2706_v14, 5  ;;  %v2714_v25 = vrot.slane %v2712_v15, 5  ;;  %v385_v12 = vld [vmem:[%s4952_s30 + $0x44] sm:$0x1] }
  0x78   : > { %v2093_v26 = vsel %vm4945_vm2, %v2091_v20, %v2092_v10  ;;  %v2716_v27 = vshrl.u32 %v4428_v2, 16  ;;  %v2722_v28 = vshll.u32 %v4429_v7, 16  ;;  %v2607_v30 = vshrl.u32 %v4415_v16, 16 }
  0x79   : > { %2235 = vrot.lane.b32.xlu1 %v4347_v18, %s4862_s7  ;;  %v4343_v31 = vcombine.low %v2090_v19, %v2093_v26  ;;  %v2709_v33 = vor.u32 %v2708_v24, %v2705_v23  ;;  %v2610_v34 = vshll.u32 %v4415_v16, 16  ;;  %v2616_v35 = vshll.u32 %v4416_v21, 16  ;;  %v944_v18 = vld [vmem:[%s4952_s30 + $0x70] sm:$0xf]  ;;  %v945_v23 = vld [vmem:[%s4952_s30 + $0x74] sm:$0x1] }
  0x7a   : > { %1906 = vrot.lane.b32.xlu0 %v4263_v22, %s4863_s8  ;;  %v2718_v37 = vrot.slane %v2716_v27, 4  ;;  %v2724_v38 = vrot.slane %v2722_v28, 5  ;;  %v2609_v39 = vrot.slane %v2607_v30, 4  ;;  %v2620_v40 = vshrl.u32 %v4416_v21, 16  ;;  %v931_v24 = vld [vmem:[%s4952_s30 + $0x3c] sm:$0xe] }
  0x7b   : > { %v2710_v42 = vrot.slane %v2709_v33, 4  ;;  %v2612_v43 = vrot.slane %v2610_v34, 5  ;;  %v2618_v44 = vrot.slane %v2616_v35, 5  ;;  %v2626_v45 = vshll.u32 %v4417_v29, 16  ;;  %v932_v29 = vld [vmem:[%s4952_s30 + $0x40] sm:$0xf] }
  0x7c   : > { %v2719_v46 = vor.u32 %v2718_v37, %v2714_v25  ;;  %v2622_v47 = vrot.slane %v2620_v40, 4  ;;  %v636_v49 = vshrl.u32 %v395_v36, 16  ;;  %v639_v50 = vshll.u32 %v395_v36, 16  ;;  %v933_v34 = vld [vmem:[%s4952_s30 + $0x44] sm:$0x1] }
  0x7d   : > { %2413 = vrot.lane.b32.xlu1 %v4732_v32, %s4860_s5  ;;  %v2715_v51 = vsel %vm4987_vm5, %v2710_v42, %v2714_v25  ;;  %v2613_v53 = vor.u32 %v2612_v43, %v2609_v39  ;;  %v2628_v54 = vrot.slane %v2626_v45, 5  ;;  %v645_v55 = vshll.u32 %v396_v41, 16  ;;  %v4238_v39 = vld [vmem:[%s4952_s30 + $0x78] sm:$0xf] }
  0x7e   : > { %2227 = vrot.lane.b32.xlu0 %v4343_v31, %s4862_s7  ;;  %v2720_v58 = vrot.slane %v2719_v46, 4  ;;  %v2623_v59 = vor.u32 %v2622_v47, %v2618_v44  ;;  %v638_v60 = vrot.slane %v636_v49, 4  ;;  %v641_v61 = vrot.slane %v639_v50, 5 }
  0x7f   : > { %v2614_v63 = vrot.slane %v2613_v53, 4  ;;  %v647_v1 = vrot.slane %v645_v55, 5  ;;  %v649_v2 = vshrl.u32 %v396_v41, 16  ;;  %v655_v3 = vshll.u32 %v397_v48, 16  ;;  %v4239_v48 = vld [vmem:[%s4952_s30 + $0x7c] sm:$0xf] }
  0x80   : > { %v2725_v4 = vsel %vm4987_vm5, %v2720_v58, %v2724_v38  ;;  %v2624_v5 = vrot.slane %v2623_v59, 4  ;;  %v642_v6 = vor.u32 %v641_v61, %v638_v60  ;;  %v540_v7 = vshrl.u32 %v383_v56, 16  ;;  %v4226_v59 = vld [vmem:[%s4952_s30 + $0x48] sm:$0xf]  ;;  %v4227_v60 = vld [vmem:[%s4952_s30 + $0x4c] sm:$0xf] }
  0x81   : > { %v4459_v8 = vcombine.low %v2715_v51, %v2725_v4  ;;  %v2619_v9 = vsel %vm4987_vm5, %v2614_v63, %v2618_v44  ;;  %v651_v10 = vrot.slane %v649_v2, 4  ;;  %v657_v11 = vrot.slane %v655_v3, 5  ;;  %v4240_v51 = vld [vmem:[%s4952_s30 + $0x80] sm:$0x1]  ;;  %v4228_v2 = vld [vmem:[%s4952_s30 + $0x50] sm:$0x1] }
  0x82   : > { %2405 = vrot.lane.b32.xlu0 %v4733_v57, %s4860_s5  ;;  %v2629_v14 = vsel %vm4987_vm5, %v2624_v5, %v2628_v54  ;;  %v643_v15 = vrot.slane %v642_v6, 4  ;;  %v542_v16 = vrot.slane %v540_v7, 4  ;;  %v543_v17 = vshll.u32 %v383_v56, 16  ;;  %v4734_v5 = vld [vmem:[%s4952_s30 + $0x78] sm:$0xff]  }
  0x83   : > { %2958 = vrot.lane.b32.xlu1 %v4459_v8, %s4865_s10  ;;  %v4455_v19 = vcombine.low %v2619_v9, %v2629_v14  ;;  %v652_v20 = vor.u32 %v651_v10, %v647_v1  ;;  %v549_v21 = vshll.u32 %v384_v62, 16  ;;  %v553_v22 = vshrl.u32 %v384_v62, 16  ;;  %v4302_v8 = vld [vmem:[%s4952_s30 + $0x78] sm:$0xe]  ;;  %v4303_v9 = vld [vmem:[%s4952_s30 + $0x7c] sm:$0xf] }
  0x84   : > { %v648_v25 = vsel %vm4987_vm5, %v643_v15, %v647_v1  ;;  %v545_v26 = vrot.slane %v543_v17, 5  ;;  %v559_v27 = vshll.u32 %v385_v12, 16  ;;  %v4140_v28 = vrot.slane %v943_v13, 9  ;;  %v4304_v14 = vld [vmem:[%s4952_s30 + $0x80] sm:$0x1] }
  0x85   : > { %v653_v30 = vrot.slane %v652_v20, 4  ;;  %v551_v31 = vrot.slane %v549_v21, 5  ;;  %v555_v32 = vrot.slane %v553_v22, 4  ;;  %v1080_v33 = vrot.slane %v944_v18, 5  ;;  %v4290_v15 = vld [vmem:[%s4952_s30 + $0x48] sm:$0xe] }
  0x86   : > { %2950 = vrot.lane.b32.xlu0 %v4455_v19, %s4865_s10  ;;  %v546_v35 = vor.u32 %v545_v26, %v542_v16  ;;  %v561_v36 = vrot.slane %v559_v27, 5  ;;  %v1083_v37 = vrot.slane %v945_v23, 5  ;;  %v4136_v38 = vrot.slane %v931_v24, 9  ;;  %v4291_v20 = vld [vmem:[%s4952_s30 + $0x4c] sm:$0xf] }
  0x87   : > { %v658_v40 = vsel %vm4987_vm5, %v653_v30, %v657_v11  ;;  %v556_v41 = vor.u32 %v555_v32, %v551_v31  ;;  %v1081_v42 = vsel %vm4945_vm2, %v4140_v28, %v1080_v33  ;;  %v1082_v43 = vrot.slane %v1080_v33, 4  ;;  %v4292_v33 = vld [vmem:[%s4952_s30 + $0x50] sm:$0x1] }
  0x88   : > { %v4124_v44 = vcombine.low %v648_v25, %v658_v40  ;;  %v547_v45 = vrot.slane %v546_v35, 4  ;;  %v1052_v46 = vrot.slane %v932_v29, 5  ;;  %v1055_v47 = vrot.slane %v933_v34, 5  ;;  %v4735_v34 = vld [vmem:[%s4952_s30 + $0x48] sm:$0xff]  }
  0x89   : > { %v557_v49 = vrot.slane %v556_v41, 4  ;;  %v1084_v50 = vsel %vm4945_vm2, %v1082_v43, %v1083_v37  ;;  %v1683_v53 = vshrl.u32 %v4238_v39, 16  ;;  %v1686_v54 = vshll.u32 %v4238_v39, 16  ;;  %v4738_v39 = vld [vmem:[%s6298_s1] sm:$0xff]  }
  0x8a   : > { %869 = vrot.lane.b32.xlu1 %v4124_v44, %s4864_s9  ;;  %v552_v55 = vsel %vm4987_vm5, %v547_v45, %v551_v31  ;;  %v4156_v56 = vcombine.low %v1081_v42, %v1084_v50  ;;  %v1053_v57 = vsel %vm4945_vm2, %v4136_v38, %v1052_v46  ;;  %v1054_v58 = vrot.slane %v1052_v46, 4  ;;  %v4430_v44 = vld [vmem:[%s4952_s30 + $0x84] sm:$0xf]  ;;  %v4431_v45 = vld [vmem:[%s4952_s30 + $0x88] sm:$0xf] }
  0x8b   : > { %v562_v61 = vsel %vm4987_vm5, %v557_v49, %v561_v36  ;;  %v1685_v62 = vrot.slane %v1683_v53, 4  ;;  %v1688_v63 = vrot.slane %v1686_v54, 5  ;;  %v1692_v1 = vshll.u32 %v4239_v48, 16  ;;  %v4432_v49 = vld [vmem:[%s4952_s30 + $0x8c] sm:$0x1] }
  0x8c   : > { %v4120_v3 = vcombine.low %v552_v55, %v562_v61  ;;  %v1056_v4 = vsel %vm4945_vm2, %v1054_v58, %v1055_v47  ;;  %v1696_v6 = vshrl.u32 %v4239_v48, 16  ;;  %v1702_v7 = vshll.u32 %v4240_v51, 16  ;;  %v4739_v58 = vld [vmem:[%s6298_s1 + $0x8] sm:$0xff]  }
  0x8d   : > { %v4152_v10 = vcombine.low %v1053_v57, %v1056_v4  ;;  %v1689_v11 = vor.u32 %v1688_v63, %v1685_v62  ;;  %v1694_v12 = vrot.slane %v1692_v1, 5  ;;  %v1587_v13 = vshrl.u32 %v4226_v59, 16  ;;  %v4419_v63 = vld [vmem:[%s4952_s30 + $0x58] sm:$0xf] }
  0x8e   : > { %861 = vrot.lane.b32.xlu0 %v4120_v3, %s4864_s9  ;;  %1193 = vrot.lane.b32.xlu1 %v4156_v56, %s4861_s6  ;;  %v1698_v16 = vrot.slane %v1696_v6, 4  ;;  %v1704_v17 = vrot.slane %v1702_v7, 5  ;;  %v1590_v18 = vshll.u32 %v4226_v59, 16  ;;  %v1596_v19 = vshll.u32 %v4227_v60, 16  ;;  %v4418_v56 = vld [vmem:[%s4952_s30 + $0x54] sm:$0xf]  ;;  %v5291_v57 = vpop.permute.xlu1 %1353 }
  0x8f   : > { %v1690_v21 = vrot.slane %v1689_v11, 4  ;;  %v1589_v22 = vrot.slane %v1587_v13, 4  ;;  %v1600_v23 = vshrl.u32 %v4227_v60, 16  ;;  %v1606_v24 = vshll.u32 %v4228_v2, 16  ;;  %v4420_v6 = vld [vmem:[%s4952_s30 + $0x5c] sm:$0x1] }
  0x90   : > { %v1699_v25 = vor.u32 %v1698_v16, %v1694_v12  ;;  %v1592_v26 = vrot.slane %v1590_v18, 5  ;;  %v1598_v27 = vrot.slane %v1596_v19, 5  ;;  %v4332_v28 = vrot.slane %v4302_v8, 9  ;;  %v398_v11 = vld [vmem:[%s4952_s30 + $0x78] sm:$0xf] }
  0x91   : > { %v1695_v29 = vsel %vm4987_vm5, %v1690_v21, %v1694_v12  ;;  %v1602_v30 = vrot.slane %v1600_v23, 4  ;;  %v1608_v31 = vrot.slane %v1606_v24, 5  ;;  %v2124_v32 = vrot.slane %v4303_v9, 5  ;;  %v4736_v21 = vld [vmem:[%s4952_s30 + $0x84] sm:$0xff]  }
  0x92   : > { %1185 = vrot.lane.b32.xlu0 %v4152_v10, %s4861_s6  ;;  %1371 = vrot.lane.b32.xlu1 %v4734_v5, %s4859_s4  ;;  %v1700_v35 = vrot.slane %v1699_v25, 4  ;;  %v1593_v36 = vor.u32 %v1592_v26, %v1589_v22  ;;  %v2127_v37 = vrot.slane %v4304_v14, 5  ;;  %v4328_v38 = vrot.slane %v4290_v15, 9  ;;  %v399_v26 = vld [vmem:[%s4952_s30 + $0x7c] sm:$0xf] }
  0x93   : > { %v1603_v40 = vor.u32 %v1602_v30, %v1598_v27  ;;  %v2125_v41 = vsel %vm4945_vm2, %v4332_v28, %v2124_v32  ;;  %v2126_v42 = vrot.slane %v2124_v32, 4  ;;  %v2096_v43 = vrot.slane %v4291_v20, 5  ;;  %v4740_v20 = vld [vmem:[%s6298_s1 + $0x10] sm:$0xff]   ;;  %v400_v32 = vld [vmem:[%s4952_s30 + $0x80] sm:$0x1] }
  0x94   : > { %v1705_v46 = vsel %vm4987_vm5, %v1700_v35, %v1704_v17  ;;  %v1594_v47 = vrot.slane %v1593_v36, 4  ;;  %v2099_v48 = vrot.slane %v4292_v33, 5  ;;  %v4866_v55 = vmov 0   ;;  %v4737_v28 = vld [vmem:[%s4952_s30 + $0x54] sm:$0xff]  }
  0x95   : > { %v4268_v50 = vcombine.low %v1695_v29, %v1705_v46  ;;  %v1604_v51 = vrot.slane %v1603_v40, 4  ;;  %v2128_v53 = vsel %vm4945_vm2, %v2126_v42, %v2127_v37  ;;  %v5287_v54 = vsel %vm4945_vm2, %v4328_v38, %v2096_v43  ;;  %3447 = vmatprep.subr.bf16.mxu0 %v4866_v55  ;;  %4640 = vmatprep.subr.bf16.mxu1 %v4866_v55  ;;  %v5329_v40 = vld [vmem:[%s4952_s30 + $0x4c] sm:$0xf] }
  0x96   : > { %1363 = vrot.lane.b32.xlu0 %v4735_v34, %s4859_s4  ;;  %v1599_v59 = vsel %vm4987_vm5, %v1594_v47, %v1598_v27  ;;  %v4348_v60 = vcombine.low %v2125_v41, %v2128_v53  ;;  %v2098_v61 = vrot.slane %v2096_v43, 4  ;;  %3448 = vmatpush1.bf16.msra.mxu0 %v4738_v39  ;;  %v2727_v62 = vshrl.u32 %v4430_v44, 16  ;;  %v5301_v1 = vpop.permute.xlu0 %1175  ;;  %v5321_v27 = vpop.permute.xlu1 %2397  ;;  %v386_v34 = vld [vmem:[%s4952_s30 + $0x48] sm:$0xf] }
  0x97   : > { %1916 = vrot.lane.b32.xlu1 %v4268_v50, %s4863_s8  ;;  %v1609_v2 = vsel %vm4987_vm5, %v1604_v51, %v1608_v31  ;;  %v2730_v3 = vshll.u32 %v4430_v44, 16  ;;  %v2736_v4 = vshll.u32 %v4431_v45, 16  ;;  %v2740_v5 = vshrl.u32 %v4431_v45, 16  ;;  %3449 = vmatprep.subr.bf16.mxu0 %v4866_v55  ;;  %v4741_v45 = vld [vmem:[%s6298_s1 + $0x18] sm:$0xff]  }
  0x98   : > { %v4264_v7 = vcombine.low %v1599_v59, %v1609_v2  ;;  %v2100_v8 = vsel %vm4945_vm2, %v2098_v61, %v2099_v48  ;;  %v2729_v9 = vrot.slane %v2727_v62, 4  ;;  %v2746_v10 = vshll.u32 %v4432_v49, 16  ;;  %4649 = vmatpush1.bf16.msra.mxu1 %v4738_v39  ;;  %v4744_v59 = vld [vmem:[%s6298_s1 + $0x20] sm:$0xff]  }
  0x99   : > { %v4344_v12 = vcombine.low %v5287_v54, %v2100_v8  ;;  %v2732_v13 = vrot.slane %v2730_v3, 5  ;;  %v2738_v14 = vrot.slane %v2736_v4, 5  ;;  %v2742_v15 = vrot.slane %v2740_v5, 4  ;;  %4641 = vmatprep.subr.bf16.mxu1 %v4866_v55 }
  0x9a   : > { %1908 = vrot.lane.b32.xlu0 %v4264_v7, %s4863_s8  ;;  %v2748_v16 = vrot.slane %v2746_v10, 5  ;;  %v2631_v17 = vshrl.u32 %v4418_v56, 16  ;;  %v2634_v18 = vshll.u32 %v4418_v56, 16  ;;  %v2640_v19 = vshll.u32 %v4419_v63, 16  ;;  %3450 = vmatpush1.bf16.msra.mxu0 %v4739_v58  ;;  %v5326_v35 = vpop.permute.xlu0 %2219  ;;  %v388_v56 = vld [vmem:[%s4952_s30 + $0x50] sm:$0x1]  ;;  %v5347_v2 = vpop.permute.xlu1 %1355 }
  0x9b   : > { %2237 = vrot.lane.b32.xlu1 %v4348_v60, %s4862_s7  ;;  %v2733_v22 = vor.u32 %v2732_v13, %v2729_v9  ;;  %v2743_v23 = vor.u32 %v2742_v15, %v2738_v14  ;;  %v2644_v24 = vshrl.u32 %v4419_v63, 16  ;;  %v2650_v25 = vshll.u32 %v4420_v6, 16  ;;  %3451 = vmatprep.subr.bf16.mxu0 %v4866_v55  ;;  %v947_v7 = vld [vmem:[%s4952_s30 + $0x7c] sm:$0xf]  ;;  %v948_v13 = vld [vmem:[%s4952_s30 + $0x80] sm:$0x1] }
  0x9c   : > { %v2633_v29 = vrot.slane %v2631_v17, 4  ;;  %v2636_v30 = vrot.slane %v2634_v18, 5  ;;  %v2642_v31 = vrot.slane %v2640_v19, 5  ;;  %v660_v33 = vshrl.u32 %v398_v11, 16  ;;  %4650 = vmatpush1.bf16.msra.mxu1 %v4739_v58  ;;  %v946_v58 = vld [vmem:[%s4952_s30 + $0x78] sm:$0xe] }
  0x9d   : > { %v2734_v36 = vrot.slane %v2733_v22, 4  ;;  %v2744_v37 = vrot.slane %v2743_v23, 4  ;;  %v2646_v38 = vrot.slane %v2644_v24, 4  ;;  %v2652_v39 = vrot.slane %v2650_v25, 5  ;;  %4642 = vmatprep.subr.bf16.mxu1 %v4866_v55  ;;  %v935_v19 = vld [vmem:[%s4952_s30 + $0x4c] sm:$0xf] }
  0x9e   : > { %2229 = vrot.lane.b32.xlu0 %v4344_v12, %s4862_s7  ;;  %v2637_v41 = vor.u32 %v2636_v30, %v2633_v29  ;;  %v662_v42 = vrot.slane %v660_v33, 4  ;;  %v663_v43 = vshll.u32 %v398_v11, 16  ;;  %v669_v44 = vshll.u32 %v399_v26, 16  ;;  %3452 = vmatpush1.bf16.msra.mxu0 %v4740_v20  ;;  %v5355_v8 = vpop.permute.xlu0 %1177 }
  0x9f   : > { %2415 = vrot.lane.b32.xlu1 %v4736_v21, %s4860_s5  ;;  %v2739_v46 = vsel %vm4987_vm5, %v2734_v36, %v2738_v14  ;;  %v2749_v47 = vsel %vm4987_vm5, %v2744_v37, %v2748_v16  ;;  %v2647_v48 = vor.u32 %v2646_v38, %v2642_v31  ;;  %v673_v49 = vshrl.u32 %v399_v26, 16  ;;  %3453 = vmatprep.subr.bf16.mxu0 %v4866_v55  ;;  %v934_v14 = vld [vmem:[%s4952_s30 + $0x48] sm:$0xe]  ;;  %v4241_v26 = vld [vmem:[%s4952_s30 + $0x84] sm:$0xf]  ;;  %v5381_v38 = vpop.permute.xlu1 %1898 }
  0xa0   : > { %v4460_v50 = vcombine.low %v2739_v46, %v2749_v47  ;;  %v2638_v51 = vrot.slane %v2637_v41, 4  ;;  %v665_v53 = vrot.slane %v663_v43, 5  ;;  %v671_v54 = vrot.slane %v669_v44, 5  ;;  %4651 = vmatpush1.bf16.msra.mxu1 %v4740_v20  ;;  %v5367_v20 = vld [vmem:[%s4952_s30 + $0x50] sm:$0x1]  ;;  %v4746_v21 = vld [vmem:[%s6298_s1 + $0x28] sm:$0xff]  }
  0xa1   : > { %v2648_v60 = vrot.slane %v2647_v48, 4  ;;  %v675_v61 = vrot.slane %v673_v49, 4  ;;  %v679_v62 = vshll.u32 %v400_v32, 16  ;;  %v564_v63 = vshrl.u32 %v386_v34, 16  ;;  %4643 = vmatprep.subr.bf16.mxu1 %v4866_v55  ;;  %v4242_v32 = vld [vmem:[%s4952_s30 + $0x88] sm:$0xf] }
  0xa2   : > { %2407 = vrot.lane.b32.xlu0 %v4737_v28, %s4860_s5  ;;  %v2643_v3 = vsel %vm4987_vm5, %v2638_v51, %v2642_v31  ;;  %v666_v4 = vor.u32 %v665_v53, %v662_v42  ;;  %v567_v5 = vshll.u32 %v386_v34, 16  ;;  %v573_v6 = vshll.u32 %v5329_v40, 16  ;;  %3454 = vmatpush1.bf16.msra.mxu0 %v4741_v45  ;;  %v4748_v48 = vld [vmem:[%s6298_s1 + $0x30] sm:$0xff]   ;;  %v4243_v51 = vld [vmem:[%s4952_s30 + $0x8c] sm:$0x1] }
  0xa3   : > { %2960 = vrot.lane.b32.xlu1 %v4460_v50, %s4865_s10  ;;  %v2653_v9 = vsel %vm4987_vm5, %v2648_v60, %v2652_v39  ;;  %v676_v10 = vor.u32 %v675_v61, %v671_v54  ;;  %v681_v11 = vrot.slane %v679_v62, 5  ;;  %v566_v12 = vrot.slane %v564_v63, 4  ;;  %3455 = vmatprep.subr.bf16.mxu0 %v4866_v55  ;;  %v4742_v62 = vld [vmem:[%s4952_s30 + $0x84] sm:$0xff]  }
  0xa4   : > { %v4456_v15 = vcombine.low %v2643_v3, %v2653_v9  ;;  %v667_v16 = vrot.slane %v666_v4, 4  ;;  %v569_v17 = vrot.slane %v567_v5, 5  ;;  %v5363_v18 = vrot.slane %v573_v6, 5  ;;  %4652 = vmatpush1.bf16.msra.mxu1 %v4741_v45  ;;  %v4230_v6 = vld [vmem:[%s4952_s30 + $0x58] sm:$0xf]  ;;  %v4747_v9 = vld [vmem:[%s4952_s30] sm:$0xff]  }
  0xa5   : > { %v677_v22 = vrot.slane %v676_v10, 4  ;;  %v577_v23 = vshrl.u32 %v5329_v40, 16  ;;  %v583_v24 = vshll.u32 %v388_v56, 16  ;;  %v4141_v25 = vrot.slane %v946_v58, 9  ;;  %4644 = vmatprep.subr.bf16.mxu1 %v4866_v55  ;;  %v4229_v56 = vld [vmem:[%s4952_s30 + $0x54] sm:$0xf] }
  0xa6   : > { %2952 = vrot.lane.b32.xlu0 %v4456_v15, %s4865_s10  ;;  %v672_v28 = vsel %vm4987_vm5, %v667_v16, %v671_v54  ;;  %v570_v29 = vor.u32 %v569_v17, %v566_v12  ;;  %v1087_v30 = vrot.slane %v947_v7, 5  ;;  %v1090_v31 = vrot.slane %v948_v13, 5  ;;  %3456 = vmatpush1.bf16.msra.mxu0 %v4744_v59  ;;  %v4745_v7 = vld [vmem:[%s4952_s30 + $0xc] sm:$0xff]   ;;  %v5416_v10 = vld [vmem:[%s6298_s1 + $0x38] sm:$0xff]   ;;  %v4756_v12 = vld [vmem:[%s4952_s30 + $0x24] sm:$0xff]   ;;  %352 = vst.msk [vmem:[#allocation2] sm:$0xff] %vm351_vm6, %v4747_v9 }
  0xa7   : > { %v682_v33 = vsel %vm4987_vm5, %v677_v22, %v681_v11  ;;  %v579_v34 = vrot.slane %v577_v23, 4  ;;  %v585_v36 = vrot.slane %v583_v24, 5  ;;  %v4137_v37 = vrot.slane %v934_v14, 9  ;;  %3457 = vmatprep.subr.bf16.mxu0 %v4866_v55  ;;  %v4753_v11 = vld [vmem:[%s4952_s30 + $0x18] sm:$0xff]   ;;  %v4759_v13 = vld [vmem:[%s4952_s30 + $0x60] sm:$0xff]   ;;  %v4760_v22 = vld [vmem:[%s4952_s30 + $0x30] sm:$0xff]  }
  0xa8   : > { %v4125_v39 = vcombine.low %v672_v28, %v682_v33  ;;  %v571_v40 = vrot.slane %v570_v29, 4  ;;  %v1088_v41 = vsel %vm4945_vm2, %v4141_v25, %v1087_v30  ;;  %v1089_v42 = vrot.slane %v1087_v30, 4  ;;  %v5386_v43 = vpop.permute.xlu0 %851  ;;  %4653 = vmatpush1.bf16.msra.mxu1 %v4744_v59  ;;  %v4231_v17 = vld [vmem:[%s4952_s30 + $0x5c] sm:$0x1]  ;;  %v4305_v28 = vld [vmem:[%s4952_s30 + $0x84] sm:$0xe] }
  0xa9   : > { %v580_v44 = vor.u32 %v579_v34, %v5363_v18  ;;  %v1059_v45 = vrot.slane %v935_v19, 5  ;;  %v1062_v46 = vrot.slane %v5367_v20, 5  ;;  %v1707_v47 = vshrl.u32 %v4241_v26, 16  ;;  %4645 = vmatprep.subr.bf16.mxu1 %v4866_v55  ;;  %v854_v19 = vpop.permute.xlu1 %853  ;;  %v4306_v29 = vld [vmem:[%s4952_s30 + $0x88] sm:$0xf]  ;;  %v4766_v30 = vld [vmem:[%s4952_s30 + $0x3c] sm:$0xff]  }
  0xaa   : > { %871 = vrot.lane.b32.xlu1 %v4125_v39, %s4864_s9  ;;  %v576_v49 = vsel %vm4987_vm5, %v571_v40, %v5363_v18  ;;  %v1091_v50 = vsel %vm4945_vm2, %v1089_v42, %v1090_v31  ;;  %v1710_v53 = vshll.u32 %v4241_v26, 16  ;;  %v1716_v54 = vshll.u32 %v4242_v32, 16  ;;  %3458 = vmatpush1.bf16.msra.mxu0 %v4746_v21  ;;  %353 = vst.msk [vmem:[#allocation2 + $0x10] sm:$0xff] %vm351_vm6, %v4745_v7 }
  0xab   : > { %v581_v58 = vrot.slane %v580_v44, 4  ;;  %v4157_v59 = vcombine.low %v1088_v41, %v1091_v50  ;;  %v5404_v60 = vsel %vm4945_vm2, %v4137_v37, %v1059_v45  ;;  %v1061_v61 = vrot.slane %v1059_v45, 4  ;;  %3459 = vmatprep.subr.bf16.mxu0 %v4866_v55  ;;  %v5448_v45 = vld [vmem:[%s4952_s30 + $0x54] sm:$0xe]  ;;  %354 = vst.msk [vmem:[#allocation2 + $0x20] sm:$0xff] %vm351_vm6, %v4753_v11  ;;  %355 = vst.msk [vmem:[#allocation2 + $0x30] sm:$0xff] %vm351_vm6, %v4756_v12 }
  0xac   : > { %v1709_v63 = vrot.slane %v1707_v47, 4  ;;  %v1712_v3 = vrot.slane %v1710_v53, 5  ;;  %v5408_v4 = vrot.slane %v1716_v54, 5  ;;  %v1720_v5 = vshrl.u32 %v4242_v32, 16  ;;  %4654 = vmatpush1.bf16.msra.mxu1 %v4746_v21  ;;  %v4765_v21 = vld [vmem:[%s4952_s30 + $0x6c] sm:$0xff]   ;;  %v4752_v54 = vld [vmem:[%s6298_s1 + $0x40] sm:$0xff]  }
  0xad   : > { %v586_v14 = vsel %vm4987_vm5, %v581_v58, %v585_v36  ;;  %v5425_v15 = vsel %vm4945_vm2, %v1061_v61, %v1062_v46  ;;  %v1726_v16 = vshll.u32 %v4243_v51, 16  ;;  %v1611_v18 = vshrl.u32 %v4229_v56, 16  ;;  %v5428_v20 = vpop.permute.xlu0 %2942  ;;  %4646 = vmatprep.subr.bf16.mxu1 %v4866_v55  ;;  %v5440_v36 = vld [vmem:[%s4952_s30 + $0x8c] sm:$0x1]  ;;  %v5450_v46 = vpop.permute.xlu1 %2221  ;;  %v4294_v51 = vld [vmem:[%s4952_s30 + $0x58] sm:$0xf] }
  0xae   : > { %v4121_v23 = vcombine.low %v576_v49, %v586_v14  ;;  %1195 = vrot.lane.b32.xlu1 %v4157_v59, %s4861_s6  ;;  %v4153_v24 = vcombine.low %v5404_v60, %v5425_v15  ;;  %v1713_v25 = vor.u32 %v1712_v3, %v1709_v63  ;;  %v1722_v26 = vrot.slane %v1720_v5, 4  ;;  %3460 = vmatpush1.bf16.msra.mxu0 %v4748_v48  ;;  %v4295_v61 = vld [vmem:[%s4952_s30 + $0x5c] sm:$0x1]  ;;  %v4435_v12 = vld [vmem:[%s4952_s30 + $0x98] sm:$0x1] }
  0xaf   : > { %v1728_v31 = vrot.slane %v1726_v16, 5  ;;  %v1613_v32 = vrot.slane %v1611_v18, 4  ;;  %v1614_v33 = vshll.u32 %v4229_v56, 16  ;;  %v1620_v34 = vshll.u32 %v4230_v6, 16  ;;  %3461 = vmatprep.subr.bf16.mxu0 %v4866_v55  ;;  %360 = vst.msk [vmem:[#allocation2 + $0x80] sm:$0xff] %vm351_vm6, %v4759_v13  ;;  %356 = vst.msk [vmem:[#allocation2 + $0x40] sm:$0xff] %vm351_vm6, %v4760_v22 }
  0xb0   : > { %863 = vrot.lane.b32.xlu0 %v4121_v23, %s4864_s9  ;;  %v1714_v37 = vrot.slane %v1713_v25, 4  ;;  %v1723_v39 = vor.u32 %v1722_v26, %v5408_v4  ;;  %v1624_v40 = vshrl.u32 %v4230_v6, 16  ;;  %v1630_v41 = vshll.u32 %v4231_v17, 16  ;;  %4655 = vmatpush1.bf16.msra.mxu1 %v4748_v48  ;;  %361 = vst.msk [vmem:[#allocation2 + $0x90] sm:$0xff] %vm351_vm6, %v4765_v21  ;;  %357 = vst.msk [vmem:[#allocation2 + $0x50] sm:$0xff] %vm351_vm6, %v4766_v30  ;;  %v4743_v56 = vld [vmem:[%s4952_s30 + $0x54] sm:$0xff]  }
  0xb1   : > { %v1616_v42 = vrot.slane %v1614_v33, 5  ;;  %v5445_v44 = vrot.slane %v1620_v34, 5  ;;  %4647 = vmatprep.subr.bf16.mxu1 %v4866_v55  ;;  %901 = vst.msk [vmem:[#allocation2 + $0x10] sm:$0xff] %vm899_vm7, %v854_v19  ;;  %v4333_v59 = vrot.slane %v4305_v28, 9  ;;  %v2131_v60 = vrot.slane %v4306_v29, 5  ;;  %900 = vst.msk [vmem:[#allocation2] sm:$0xff] %vm899_vm7, %v5386_v43 }
  0xb2   : > { %1373 = vrot.lane.b32.xlu1 %v4742_v62, %s4859_s4  ;;  %v1719_v47 = vsel %vm4987_vm5, %v1714_v37, %v5408_v4  ;;  %v1724_v49 = vrot.slane %v1723_v39, 4  ;;  %v1626_v48 = vrot.slane %v1624_v40, 4  ;;  %v5457_v50 = vrot.slane %v1630_v41, 5  ;;  %3462 = vmatpush1.bf16.msra.mxu0 %v5416_v10  ;;  %v1901_v53 = vpop.permute.xlu0 %1900  ;;  %1225 = vst.msk [vmem:[#allocation2 + $0x10] sm:$0xff] %vm1223_vm8, %v5355_v8  ;;  %1224 = vst.msk [vmem:[#allocation2] sm:$0xff] %vm1223_vm8, %v5301_v1  ;;  %v4771_v22 = vld [vmem:[%s4952_s30 + $0x78] sm:$0xff]  }
  0xb3   : > { %v1617_v58 = vor.u32 %v1616_v42, %v1613_v32  ;;  %3463 = vmatprep.subr.bf16.mxu0 %v4866_v55  ;;  %v2134_v3 = vrot.slane %v5440_v36, 5  ;;  %v2132_v5 = vsel %vm4945_vm2, %v4333_v59, %v2131_v60  ;;  %v2133_v6 = vrot.slane %v2131_v60, 4  ;;  %1402 = vst.msk [vmem:[#allocation2] sm:$0xff] %vm1401_vm9, %v5291_v57  ;;  %1403 = vst.msk [vmem:[#allocation2 + $0x10] sm:$0xff] %vm1401_vm9, %v5347_v2  ;;  %v4421_v18 = vld [vmem:[%s4952_s30 + $0x60] sm:$0xf] }
  0xb4   : > { %1187 = vrot.lane.b32.xlu0 %v4153_v24, %s4861_s6  ;;  %v1729_v62 = vsel %vm4987_vm5, %v1724_v49, %v1728_v31  ;;  %v1627_v63 = vor.u32 %v1626_v48, %v5445_v44  ;;  %4656 = vmatpush1.bf16.msra.mxu1 %v5416_v10  ;;  %v4329_v1 = vrot.slane %v5448_v45, 9  ;;  %v2103_v7 = vrot.slane %v4294_v51, 5  ;;  %v4433_v10 = vld [vmem:[%s4952_s30 + $0x90] sm:$0xf]  ;;  %1947 = vst.msk [vmem:[#allocation2] sm:$0xff] %vm1946_vm10, %v5381_v38  ;;  %v4772_v25 = vld [vmem:[%s4952_s30 + $0x48] sm:$0xff]  }
  0xb5   : > { %v4269_v43 = vcombine.low %v1719_v47, %v1729_v62  ;;  %v1618_v4 = vrot.slane %v1617_v58, 4  ;;  %4648 = vmatprep.subr.bf16.mxu1 %v4866_v55  ;;  %v2106_v9 = vrot.slane %v4295_v61, 5  ;;  %v2135_v2 = vsel %vm4945_vm2, %v2133_v6, %v2134_v3  ;;  %v4434_v55 = vld [vmem:[%s4952_s30 + $0x94] sm:$0xf]  ;;  %1948 = vst.msk [vmem:[#allocation2 + $0x10] sm:$0xff] %vm1946_vm10, %v1901_v53 }
  0xb6   : > { %v1628_v8 = vrot.slane %v1627_v63, 4  ;;  %3464 = vmatpush1.bf16.msra.mxu0 %v4752_v54  ;;  %v2400_v11 = vpop.permute.xlu0 %2399  ;;  %v4349_v15 = vcombine.low %v2132_v5, %v2135_v2  ;;  %v2104_v16 = vsel %vm4945_vm2, %v4329_v1, %v2103_v7  ;;  %v2105_v17 = vrot.slane %v2103_v7, 4  ;;  %v4422_v19 = vld [vmem:[%s4952_s30 + $0x64] sm:$0xf]  ;;  %2268 = vst.msk [vmem:[#allocation2] sm:$0xff] %vm2267_vm11, %v5326_v35  ;;  %2269 = vst.msk [vmem:[#allocation2 + $0x10] sm:$0xff] %vm2267_vm11, %v5450_v46 }
  0xb7   : > { %1918 = vrot.lane.b32.xlu1 %v4269_v43, %s4863_s8  ;;  %v1623_v57 = vsel %vm4987_vm5, %v1618_v4, %v5445_v44  ;;  %v2945_v13 = vpop.permute.xlu1 %2944  ;;  %v2751_v23 = vshrl.u32 %v4433_v10, 16  ;;  %v4423_v24 = vld [vmem:[%s4952_s30 + $0x68] sm:$0x1]  ;;  %2446 = vst.msk [vmem:[#allocation2] sm:$0xff] %vm2445_vm12, %v5321_v27  ;;  %v2754_v26 = vshll.u32 %v4433_v10, 16  ;;  %v2760_v28 = vshll.u32 %v4434_v55, 16 }
  0xb8   : > { %1365 = vrot.lane.b32.xlu0 %v4743_v56, %s4859_s4  ;;  %v1633_v14 = vsel %vm4987_vm5, %v1628_v8, %v5457_v50  ;;  %4657 = vmatpush1.bf16.msra.mxu1 %v4752_v54  ;;  %v2107_v38 = vsel %vm4945_vm2, %v2105_v17, %v2106_v9  ;;  %v2764_v29 = vshrl.u32 %v4434_v55, 16  ;;  %2447 = vst.msk [vmem:[#allocation2 + $0x10] sm:$0xff] %vm2445_vm12, %v2400_v11  ;;  %v4749_v30 = vld [vmem:[%s4952_s30 + $0x90] sm:$0xff]   ;;  %v2770_v32 = vshll.u32 %v4435_v12, 16  ;;  %v401_v40 = vld [vmem:[%s4952_s30 + $0x84] sm:$0xf] }
  0xb9   : > { %v4265_v21 = vcombine.low %v1623_v57, %v1633_v14  ;;  %362 = vst.msk [vmem:[#allocation2 + $0xa0] sm:$0xff] %vm351_vm6, %v4771_v22  ;;  %v4345_v35 = vcombine.low %v2104_v16, %v2107_v38  ;;  %v2753_v31 = vrot.slane %v2751_v23, 4  ;;  %v2655_v33 = vshrl.u32 %v4421_v18, 16  ;;  %358 = vst.msk [vmem:[#allocation2 + $0x60] sm:$0xff] %vm351_vm6, %v4772_v25  ;;  %v4750_v46 = vld [vmem:[%s4952_s30 + $0x60] sm:$0xff]  }
  0xba   : > { %2991 = vst.msk [vmem:[#allocation2] sm:$0xff] %vm2990_vm13, %v5428_v20  ;;  %2992 = vst.msk [vmem:[#allocation2 + $0x10] sm:$0xff] %vm2990_vm13, %v2945_v13  ;;  %v2756_v34 = vrot.slane %v2754_v26, 5  ;;  %v2762_v36 = vrot.slane %v2760_v28, 5  ;;  %v2766_v37 = vrot.slane %v2764_v29, 4  ;;  %v2658_v39 = vshll.u32 %v4421_v18, 16 }
  0xbb   : > { %2239 = vrot.lane.b32.xlu1 %v4349_v15, %s4862_s7  ;;  %v1180_v27 = vpop.permute.xlu1 %1179  ;;  %v2772_v20 = vrot.slane %v2770_v32, 5  ;;  %v2657_v42 = vrot.slane %v2655_v33, 4  ;;  %v2664_v44 = vshll.u32 %v4422_v19, 16  ;;  %v2668_v45 = vshrl.u32 %v4422_v19, 16  ;;  %v402_v51 = vld [vmem:[%s4952_s30 + $0x88] sm:$0xf] }
  0xbc   : > { %1910 = vrot.lane.b32.xlu0 %v4265_v21, %s4863_s8  ;;  %v856_v41 = vpop.permute.xlu0 %855  ;;  %v2757_v47 = vor.u32 %v2756_v34, %v2753_v31  ;;  %v2767_v49 = vor.u32 %v2766_v37, %v2762_v36  ;;  %v2660_v48 = vrot.slane %v2658_v39, 5  ;;  %v2674_v50 = vshll.u32 %v4423_v24, 16  ;;  %v403_v56 = vld [vmem:[%s4952_s30 + $0x8c] sm:$0x1]  ;;  %v4467_v3 = vld [vmem:[%s4952_s30 + $0x18] sm:$0xe] }
  0xbd   : > { %902 = vst.msk [vmem:[#allocation2 + $0x20] sm:$0xff] %vm899_vm7, %v856_v41  ;;  %v2666_v53 = vrot.slane %v2664_v44, 5  ;;  %v2670_v54 = vrot.slane %v2668_v45, 4  ;;  %v684_v58 = vshrl.u32 %v401_v40, 16  ;;  %v687_v59 = vshll.u32 %v401_v40, 16  ;;  %v4773_v4 = vld [vmem:[%s4952_s30 + $0x84] sm:$0xff]  }
  0xbe   : > { %1226 = vst.msk [vmem:[#allocation2 + $0x20] sm:$0xff] %vm1223_vm8, %v1180_v27  ;;  %v2758_v60 = vrot.slane %v2757_v47, 4  ;;  %v2768_v61 = vrot.slane %v2767_v49, 4  ;;  %v2661_v62 = vor.u32 %v2660_v48, %v2657_v42  ;;  %v2676_v63 = vrot.slane %v2674_v50, 5  ;;  %v4468_v7 = vld [vmem:[%s4952_s30 + $0x1c] sm:$0xf] }
  0xbf   : > { %2417 = vrot.lane.b32.xlu1 %v4749_v30, %s4860_s5  ;;  %v2671_v5 = vor.u32 %v2670_v54, %v2666_v53  ;;  %v686_v6 = vrot.slane %v684_v58, 4  ;;  %v689_v8 = vrot.slane %v687_v59, 5  ;;  %v693_v1 = vshll.u32 %v402_v51, 16  ;;  %v4469_v55 = vld [vmem:[%s4952_s30 + $0x20] sm:$0x1]  ;;  %363 = vst.msk [vmem:[#allocation2 + $0xb0] sm:$0xff] %vm351_vm6, %v4773_v4 }
  0xc0   : > { %2231 = vrot.lane.b32.xlu0 %v4345_v35, %s4862_s7  ;;  %v1358_v43 = vpop.permute.xlu0 %1357  ;;  %v2763_v10 = vsel %vm4987_vm5, %v2758_v60, %v2762_v36  ;;  %v2773_v11 = vsel %vm4987_vm5, %v2768_v61, %v2772_v20  ;;  %v2662_v57 = vrot.slane %v2661_v62, 4  ;;  %v697_v2 = vshrl.u32 %v402_v51, 16  ;;  %v389_v12 = vld [vmem:[%s4952_s30 + $0x54] sm:$0xf]  ;;  %v390_v17 = vld [vmem:[%s4952_s30 + $0x58] sm:$0xf] }
  0xc1   : > { %v1903_v9 = vpop.permute.xlu1 %1902  ;;  %1404 = vst.msk [vmem:[#allocation2 + $0x20] sm:$0xff] %vm1401_vm9, %v1358_v43  ;;  %v4461_v13 = vcombine.low %v2763_v10, %v2773_v11  ;;  %v2672_v14 = vrot.slane %v2671_v5, 4  ;;  %v690_v15 = vor.u32 %v689_v8, %v686_v6  ;;  %v695_v16 = vrot.slane %v693_v1, 5  ;;  %v391_v23 = vld [vmem:[%s4952_s30 + $0x5c] sm:$0x1]  ;;  %v4774_v30 = vld [vmem:[%s4952_s30 + $0x54] sm:$0xff]  }
  0xc2   : > { %1949 = vst.msk [vmem:[#allocation2 + $0x20] sm:$0xff] %vm1946_vm10, %v1903_v9  ;;  %v2667_v18 = vsel %vm4987_vm5, %v2662_v57, %v2666_v53  ;;  %v699_v19 = vrot.slane %v697_v2, 4  ;;  %v703_v22 = vshll.u32 %v403_v56, 16  ;;  %v4515_v21 = vrot.slane %v4467_v3, 9  ;;  %v949_v24 = vld [vmem:[%s4952_s30 + $0x84] sm:$0xe] }
  0xc3   : > { %2962 = vrot.lane.b32.xlu1 %v4461_v13, %s4865_s10  ;;  %v2677_v38 = vsel %vm4987_vm5, %v2672_v14, %v2676_v63  ;;  %v691_v26 = vrot.slane %v690_v15, 4  ;;  %v3105_v28 = vrot.slane %v4468_v7, 5  ;;  %v3108_v29 = vrot.slane %v4469_v55, 5  ;;  %v950_v34 = vld [vmem:[%s4952_s30 + $0x88] sm:$0xf]  ;;  %359 = vst.msk [vmem:[#allocation2 + $0x70] sm:$0xff] %vm351_vm6, %v4774_v30 }
  0xc4   : > { %2409 = vrot.lane.b32.xlu0 %v4750_v46, %s4860_s5  ;;  %v2224_v25 = vpop.permute.xlu0 %2223  ;;  %v4457_v31 = vcombine.low %v2667_v18, %v2677_v38  ;;  %v700_v32 = vor.u32 %v699_v19, %v695_v16  ;;  %v705_v33 = vrot.slane %v703_v22, 5  ;;  %v588_v27 = vshrl.u32 %v389_v12, 16  ;;  %v951_v41 = vld [vmem:[%s4952_s30 + $0x8c] sm:$0x1]  ;;  %v937_v20 = vld [vmem:[%s4952_s30 + $0x54] sm:$0xe] }
  0xc5   : > { %v2402_v35 = vpop.permute.xlu1 %2401  ;;  %2270 = vst.msk [vmem:[#allocation2 + $0x20] sm:$0xff] %vm2267_vm11, %v2224_v25  ;;  %v696_v36 = vsel %vm4987_vm5, %v691_v26, %v695_v16  ;;  %v3106_v37 = vsel %vm4945_vm2, %v4515_v21, %v3105_v28  ;;  %v3107_v39 = vrot.slane %v3105_v28, 4  ;;  %v591_v40 = vshll.u32 %v389_v12, 16  ;;  %v938_v47 = vld [vmem:[%s4952_s30 + $0x58] sm:$0xf]  ;;  %v4754_v28 = vld [vmem:[%s4952_s30 + $0x90] sm:$0xff]  }
  0xc6   : > { %2448 = vst.msk [vmem:[#allocation2 + $0x20] sm:$0xff] %vm2445_vm12, %v2402_v35  ;;  %v701_v42 = vrot.slane %v700_v32, 4  ;;  %v590_v44 = vrot.slane %v588_v27, 4  ;;  %v597_v45 = vshll.u32 %v390_v17, 16  ;;  %v601_v46 = vshrl.u32 %v390_v17, 16  ;;  %v3295_v32 = vld [vmem:[#allocation2] sm:$0xff] }
  0xc7   : > { %v3109_v49 = vsel %vm4945_vm2, %v3107_v39, %v3108_v29  ;;  %v593_v48 = vrot.slane %v591_v40, 5  ;;  %v607_v50 = vshll.u32 %v391_v23, 16  ;;  %v4142_v51 = vrot.slane %v949_v24, 9  ;;  %v939_v53 = vld [vmem:[%s4952_s30 + $0x5c] sm:$0x1] }
  0xc8   : > { %2954 = vrot.lane.b32.xlu0 %v4457_v31, %s4865_s10  ;;  %v706_v56 = vsel %vm4987_vm5, %v701_v42, %v705_v33  ;;  %v4531_v58 = vcombine.low %v3106_v37, %v3109_v49  ;;  %v599_v59 = vrot.slane %v597_v45, 5  ;;  %v603_v60 = vrot.slane %v601_v46, 4  ;;  %v4470_v61 = vld [vmem:[%s4952_s30 + $0x24] sm:$0xe]  ;;  %v4471_v62 = vld [vmem:[%s4952_s30 + $0x28] sm:$0xf] }
  0xc9   : > { %v858_v54 = vpop.permute.xlu1 %857  ;;  %v4126_v63 = vcombine.low %v696_v36, %v706_v56  ;;  %v594_v3 = vor.u32 %v593_v48, %v590_v44  ;;  %v609_v43 = vrot.slane %v607_v50, 5  ;;  %v1094_v4 = vrot.slane %v950_v34, 5  ;;  %v4472_v5 = vld [vmem:[%s4952_s30 + $0x2c] sm:$0x1]  ;;  %v4244_v6 = vld [vmem:[%s4952_s30 + $0x90] sm:$0xf] }
  0xca   : > { %903 = vst.msk [vmem:[#allocation2 + $0x30] sm:$0xff] %vm899_vm7, %v858_v54  ;;  %v604_v1 = vor.u32 %v603_v60, %v599_v59  ;;  %v1097_v7 = vrot.slane %v951_v41, 5  ;;  %v4138_v9 = vrot.slane %v937_v20, 9  ;;  %v1066_v10 = vrot.slane %v938_v47, 5  ;;  %v4245_v21 = vld [vmem:[%s4952_s30 + $0x94] sm:$0xf] }
  0xcb   : > { %v2947_v8 = vpop.permute.xlu0 %2946  ;;  %3279 = vst.msk [vmem:[#allocation2 + $0x8] sm:$0xff] %vm351_vm6, %v4531_v58  ;;  %873 = vrot.lane.b32.xlu1 %v4126_v63, %s4864_s9  ;;  %v595_v11 = vrot.slane %v594_v3, 4  ;;  %v1095_v57 = vsel %vm4945_vm2, %v4142_v51, %v1094_v4  ;;  %v1096_v2 = vrot.slane %v1094_v4, 4  ;;  %v1069_v55 = vrot.slane %v939_v53, 5  ;;  %v4246_v23 = vld [vmem:[%s4952_s30 + $0x98] sm:$0x1] }
  0xcc   : > { %2993 = vst.msk [vmem:[#allocation2 + $0x20] sm:$0xff] %vm2990_vm13, %v2947_v8  ;;  %v605_v13 = vrot.slane %v604_v1, 4  ;;  %v1067_v14 = vsel %vm4945_vm2, %v4138_v9, %v1066_v10  ;;  %v1068_v15 = vrot.slane %v1066_v10, 4  ;;  %v4516_v16 = vrot.slane %v4470_v61, 9  ;;  %v4232_v35 = vld [vmem:[%s4952_s30 + $0x60] sm:$0xf] }
  0xcd   : > { %v1360_v12 = vpop.permute.xlu1 %1359  ;;  %v600_v17 = vsel %vm4987_vm5, %v595_v11, %v599_v59  ;;  %v1098_v18 = vsel %vm4945_vm2, %v1096_v2, %v1097_v7  ;;  %v3112_v19 = vrot.slane %v4471_v62, 5  ;;  %v3115_v22 = vrot.slane %v4472_v5, 5  ;;  %v4233_v30 = vld [vmem:[%s4952_s30 + $0x64] sm:$0xf]  ;;  %v4234_v36 = vld [vmem:[%s4952_s30 + $0x68] sm:$0x1] }
  0xce   : > { %v610_v25 = vsel %vm4987_vm5, %v605_v13, %v609_v43  ;;  %v4158_v38 = vcombine.low %v1095_v57, %v1098_v18  ;;  %v1070_v26 = vsel %vm4945_vm2, %v1068_v15, %v1069_v55  ;;  %v1731_v29 = vshrl.u32 %v4244_v6, 16  ;;  %v4308_v42 = vld [vmem:[%s4952_s30 + $0x90] sm:$0xe]  ;;  %v4309_v48 = vld [vmem:[%s4952_s30 + $0x94] sm:$0xf] }
  0xcf   : > { %v1182_v24 = vpop.permute.xlu0 %1181  ;;  %v4122_v31 = vcombine.low %v600_v17, %v610_v25  ;;  %v4154_v33 = vcombine.low %v1067_v14, %v1070_v26  ;;  %v3113_v27 = vsel %vm4945_vm2, %v4516_v16, %v3112_v19  ;;  %v3114_v34 = vrot.slane %v3112_v19, 4  ;;  %v4310_v4 = vld [vmem:[%s4952_s30 + $0x98] sm:$0x1]  ;;  %v4296_v5 = vld [vmem:[%s4952_s30 + $0x60] sm:$0xe] }
  0xd0   : > { %1227 = vst.msk [vmem:[#allocation2 + $0x30] sm:$0xff] %vm1223_vm8, %v1182_v24  ;;  %1197 = vrot.lane.b32.xlu1 %v4158_v38, %s4861_s6  ;;  %v1733_v39 = vrot.slane %v1731_v29, 4  ;;  %v1734_v40 = vshll.u32 %v4244_v6, 16  ;;  %v1740_v41 = vshll.u32 %v4245_v21, 16  ;;  %v1744_v20 = vshrl.u32 %v4245_v21, 16  ;;  %v4755_v6 = vld [vmem:[%s4952_s30 + $0x60] sm:$0xff]  }
  0xd1   : > { %1405 = vst.msk [vmem:[#allocation2 + $0x30] sm:$0xff] %vm1401_vm9, %v1360_v12  ;;  %v2226_v37 = vpop.permute.xlu1 %2225  ;;  %865 = vrot.lane.b32.xlu0 %v4122_v31, %s4864_s9  ;;  %v3116_v45 = vsel %vm4945_vm2, %v3114_v34, %v3115_v22  ;;  %v1750_v46 = vshll.u32 %v4246_v23, 16  ;;  %v1635_v47 = vshrl.u32 %v4232_v35, 16  ;;  %v1638_v49 = vshll.u32 %v4232_v35, 16  ;;  %v4297_v10 = vld [vmem:[%s4952_s30 + $0x64] sm:$0xf] }
  0xd2   : > { %v3296_v44 = vld [vmem:[#allocation2 + $0x8] sm:$0xff]  ;;  %v4532_v50 = vcombine.low %v3113_v27, %v3116_v45  ;;  %v1736_v51 = vrot.slane %v1734_v40, 5  ;;  %v1742_v53 = vrot.slane %v1740_v41, 5  ;;  %v1746_v54 = vrot.slane %v1744_v20, 4  ;;  %v4436_v19 = vld [vmem:[%s4952_s30 + $0x9c] sm:$0xf] }
  0xd3   : > { %4556 = vmatprep.mubr.msk.bf16.mxu0 %vm351_vm6, %v3296_v44  ;;  %v1752_v58 = vrot.slane %v1750_v46, 5  ;;  %v1637_v59 = vrot.slane %v1635_v47, 4  ;;  %v1640_v60 = vrot.slane %v1638_v49, 5  ;;  %v1644_v61 = vshll.u32 %v4233_v30, 16  ;;  %v4298_v13 = vld [vmem:[%s4952_s30 + $0x68] sm:$0x1] }
  0xd4   : > { %v1905_v56 = vpop.permute.xlu0 %1904  ;;  %3480 = vmatmul.mubr.bf16.vlgmr.msra.gmra.mrb[0].mxu0 %v3295_v32  ;;  %1375 = vrot.lane.b32.xlu1 %v4754_v28, %s4859_s4  ;;  %3280 = vst.msk [vmem:[#allocation2 + $0x18] sm:$0xff] %vm351_vm6, %v4532_v50  ;;  %v1737_v62 = vor.u32 %v1736_v51, %v1733_v39  ;;  %v1747_v63 = vor.u32 %v1746_v54, %v1742_v53  ;;  %v1648_v3 = vshrl.u32 %v4233_v30, 16  ;;  %v1654_v43 = vshll.u32 %v4234_v36, 16  ;;  %v4437_v25 = vld [vmem:[%s4952_s30 + $0xa0] sm:$0xf]  ;;  %v3297_v32 = vld [vmem:[#allocation2 + $0x10] sm:$0xff] }
  0xd5   : > { %1950 = vst.msk [vmem:[#allocation2 + $0x30] sm:$0xff] %vm1946_vm10, %v1905_v56  ;;  %1189 = vrot.lane.b32.xlu0 %v4154_v33, %s4861_s6  ;;  %v1641_v8 = vor.u32 %v1640_v60, %v1637_v59  ;;  %v1646_v1 = vrot.slane %v1644_v61, 5  ;;  %v4334_v7 = vrot.slane %v4308_v42, 9  ;;  %v2138_v9 = vrot.slane %v4309_v48, 5  ;;  %v4438_v35 = vld [vmem:[%s4952_s30 + $0xa4] sm:$0x1] }
  0xd6   : > { %2271 = vst.msk [vmem:[#allocation2 + $0x30] sm:$0xff] %vm2267_vm11, %v2226_v37  ;;  %v1738_v57 = vrot.slane %v1737_v62, 4  ;;  %v1748_v2 = vrot.slane %v1747_v63, 4  ;;  %v1650_v55 = vrot.slane %v1648_v3, 4  ;;  %v1656_v12 = vrot.slane %v1654_v43, 5  ;;  %v4757_v3 = vld [vmem:[%s4952_s30 + $0x9c] sm:$0xff]  }
  0xd7   : > { %v2949_v11 = vpop.permute.xlu1 %2948  ;;  %v1642_v15 = vrot.slane %v1641_v8, 4  ;;  %v2139_v16 = vsel %vm4945_vm2, %v4334_v7, %v2138_v9  ;;  %v2140_v17 = vrot.slane %v2138_v9, 4  ;;  %v2141_v18 = vrot.slane %v4310_v4, 5  ;;  %v4473_v30 = vld [vmem:[%s4952_s30 + $0x30] sm:$0xe] }
  0xd8   : > { %v2404_v14 = vpop.permute.xlu0 %2403  ;;  %v1743_v22 = vsel %vm4987_vm5, %v1738_v57, %v1742_v53  ;;  %v1753_v21 = vsel %vm4987_vm5, %v1748_v2, %v1752_v58  ;;  %v1651_v23 = vor.u32 %v1650_v55, %v1646_v1  ;;  %v4330_v24 = vrot.slane %v4296_v5, 9  ;;  %v4474_v37 = vld [vmem:[%s4952_s30 + $0x34] sm:$0xf]  ;;  %v4475_v39 = vld [vmem:[%s4952_s30 + $0x38] sm:$0x1]  ;;  %v4758_v57 = vld [vmem:[%s4952_s30 + $0x6c] sm:$0xff]  }
  0xd9   : > { %2449 = vst.msk [vmem:[#allocation2 + $0x30] sm:$0xff] %vm2445_vm12, %v2404_v14  ;;  %1367 = vrot.lane.b32.xlu0 %v4755_v6, %s4859_s4  ;;  %v4270_v38 = vcombine.low %v1743_v22, %v1753_v21  ;;  %v1647_v26 = vsel %vm4987_vm5, %v1642_v15, %v1646_v1  ;;  %v2142_v28 = vsel %vm4945_vm2, %v2140_v17, %v2141_v18  ;;  %v2110_v29 = vrot.slane %v4297_v10, 5  ;;  %v4424_v48 = vld [vmem:[%s4952_s30 + $0x6c] sm:$0xf]  ;;  %v4425_v56 = vld [vmem:[%s4952_s30 + $0x70] sm:$0xf] }
  0xda   : > { %2994 = vst.msk [vmem:[#allocation2 + $0x30] sm:$0xff] %vm2990_vm13, %v2949_v11  ;;  %v1652_v33 = vrot.slane %v1651_v23, 4  ;;  %v4350_v27 = vcombine.low %v2139_v16, %v2142_v28  ;;  %v2113_v34 = vrot.slane %v4298_v13, 5  ;;  %v2775_v36 = vshrl.u32 %v4436_v19, 16  ;;  %v4426_v6 = vld [vmem:[%s4952_s30 + $0x74] sm:$0x1] }
  0xdb   : > { %v868_v31 = vpop.permute.xlu1 %867  ;;  %v3298_v40 = vld [vmem:[#allocation2 + $0x18] sm:$0xff]  ;;  %1920 = vrot.lane.b32.xlu1 %v4270_v38, %s4863_s8  ;;  %v2111_v41 = vsel %vm4945_vm2, %v4330_v24, %v2110_v29  ;;  %v2112_v20 = vrot.slane %v2110_v29, 4  ;;  %v2778_v42 = vshll.u32 %v4436_v19, 16  ;;  %v2784_v44 = vshll.u32 %v4437_v25, 16  ;;  %v404_v11 = vld [vmem:[%s4952_s30 + $0x90] sm:$0xf] }
  0xdc   : > { %908 = vst.msk [vmem:[#allocation2 + $0x80] sm:$0xff] %vm899_vm7, %v868_v31  ;;  %4557 = vmatprep.mubr.msk.bf16.mxu0 %vm351_vm6, %v3298_v40  ;;  %v1657_v45 = vsel %vm4987_vm5, %v1652_v33, %v1656_v12  ;;  %v2777_v46 = vrot.slane %v2775_v36, 4  ;;  %v2788_v47 = vshrl.u32 %v4437_v25, 16  ;;  %v2794_v49 = vshll.u32 %v4438_v35, 16  ;;  %v405_v19 = vld [vmem:[%s4952_s30 + $0x94] sm:$0xf] }
  0xdd   : > { %3488 = vmatmul.mubr.bf16.gmra.mrb[4].mxu0 %v3297_v32  ;;  %v4266_v50 = vcombine.low %v1647_v26, %v1657_v45  ;;  %v2114_v51 = vsel %vm4945_vm2, %v2112_v20, %v2113_v34  ;;  %v2780_v53 = vrot.slane %v2778_v42, 5  ;;  %v2786_v54 = vrot.slane %v2784_v44, 5  ;;  %v406_v25 = vld [vmem:[%s4952_s30 + $0x98] sm:$0x1]  ;;  %v953_v31 = vld [vmem:[%s4952_s30 + $0x94] sm:$0xf] }
  0xde   : > { %v4346_v59 = vcombine.low %v2111_v41, %v2114_v51  ;;  %v2790_v60 = vrot.slane %v2788_v47, 4  ;;  %v2796_v61 = vrot.slane %v2794_v49, 5  ;;  %v4517_v62 = vrot.slane %v4473_v30, 9  ;;  %v952_v30 = vld [vmem:[%s4952_s30 + $0x90] sm:$0xe] }
  0xdf   : > { %v1192_v58 = vpop.permute.xlu1 %1191  ;;  %1912 = vrot.lane.b32.xlu0 %v4266_v50, %s4863_s8  ;;  %2241 = vrot.lane.b32.xlu1 %v4350_v27, %s4862_s7  ;;  %v2781_v43 = vor.u32 %v2780_v53, %v2777_v46  ;;  %v3119_v4 = vrot.slane %v4474_v37, 5  ;;  %v3122_v5 = vrot.slane %v4475_v39, 5  ;;  %v2679_v8 = vshrl.u32 %v4424_v48, 16  ;;  %v954_v36 = vld [vmem:[%s4952_s30 + $0x98] sm:$0x1]  ;;  %v4775_v39 = vld [vmem:[%s4952_s30 + $0x90] sm:$0xff]  }
  0xe0   : > { %v860_v63 = vpop.permute.xlu0 %859  ;;  %1232 = vst.msk [vmem:[#allocation2 + $0x80] sm:$0xff] %vm1223_vm8, %v1192_v58  ;;  %v2791_v1 = vor.u32 %v2790_v60, %v2786_v54  ;;  %v2682_v7 = vshll.u32 %v4424_v48, 16  ;;  %v2688_v9 = vshll.u32 %v4425_v56, 16  ;;  %v2692_v10 = vshrl.u32 %v4425_v56, 16  ;;  %v4247_v44 = vld [vmem:[%s4952_s30 + $0x9c] sm:$0xf] }
  0xe1   : > { %904 = vst.msk [vmem:[#allocation2 + $0x40] sm:$0xff] %vm899_vm7, %v860_v63  ;;  %v2782_v2 = vrot.slane %v2781_v43, 4  ;;  %v3120_v55 = vsel %vm4945_vm2, %v4517_v62, %v3119_v4  ;;  %v3121_v12 = vrot.slane %v3119_v4, 4  ;;  %v2681_v13 = vrot.slane %v2679_v8, 4  ;;  %v4248_v50 = vld [vmem:[%s4952_s30 + $0xa0] sm:$0xf] }
  0xe2   : > { %v2792_v15 = vrot.slane %v2791_v1, 4  ;;  %v2684_v16 = vrot.slane %v2682_v7, 5  ;;  %v2690_v17 = vrot.slane %v2688_v9, 5  ;;  %v2694_v18 = vrot.slane %v2692_v10, 4  ;;  %364 = vst.msk [vmem:[#allocation2 + $0xc0] sm:$0xff] %vm351_vm6, %v4775_v39 }
  0xe3   : > { %v1370_v14 = vpop.permute.xlu1 %1369  ;;  %2233 = vrot.lane.b32.xlu0 %v4346_v59, %s4862_s7  ;;  %2419 = vrot.lane.b32.xlu1 %v4757_v3, %s4860_s5  ;;  %v2787_v21 = vsel %vm4987_vm5, %v2782_v2, %v2786_v54  ;;  %v3123_v23 = vsel %vm4945_vm2, %v3121_v12, %v3122_v5  ;;  %v2698_v24 = vshll.u32 %v4426_v6, 16  ;;  %v708_v38 = vshrl.u32 %v404_v11, 16  ;;  %v4249_v58 = vld [vmem:[%s4952_s30 + $0xa4] sm:$0x1]  ;;  %v4476_v63 = vld [vmem:[%s4952_s30 + $0x3c] sm:$0xe] }
  0xe4   : > { %v1184_v22 = vpop.permute.xlu0 %1183  ;;  %1410 = vst.msk [vmem:[#allocation2 + $0x80] sm:$0xff] %vm1401_vm9, %v1370_v14  ;;  %v2797_v26 = vsel %vm4987_vm5, %v2792_v15, %v2796_v61  ;;  %v4533_v28 = vcombine.low %v3120_v55, %v3123_v23  ;;  %v2685_v29 = vor.u32 %v2684_v16, %v2681_v13  ;;  %v2695_v35 = vor.u32 %v2694_v18, %v2690_v17  ;;  %v4477_v8 = vld [vmem:[%s4952_s30 + $0x40] sm:$0xf]  ;;  %v4478_v1 = vld [vmem:[%s4952_s30 + $0x44] sm:$0x1] }
  0xe5   : > { %1228 = vst.msk [vmem:[#allocation2 + $0x40] sm:$0xff] %vm1223_vm8, %v1184_v22  ;;  %v4462_v32 = vcombine.low %v2787_v21, %v2797_v26  ;;  %v2700_v33 = vrot.slane %v2698_v24, 5  ;;  %v710_v27 = vrot.slane %v708_v38, 4  ;;  %v711_v34 = vshll.u32 %v404_v11, 16  ;;  %v4311_v2 = vld [vmem:[%s4952_s30 + $0x9c] sm:$0xe] }
  0xe6   : > { %3281 = vst.msk [vmem:[#allocation2 + $0x28] sm:$0xff] %vm351_vm6, %v4533_v28  ;;  %v2686_v40 = vrot.slane %v2685_v29, 4  ;;  %v2696_v41 = vrot.slane %v2695_v35, 4  ;;  %v717_v20 = vshll.u32 %v405_v19, 16  ;;  %v721_v42 = vshrl.u32 %v405_v19, 16  ;;  %v3299_v13 = vld [vmem:[#allocation2 + $0x20] sm:$0xff] }
  0xe7   : > { %v1915_v37 = vpop.permute.xlu1 %1914  ;;  %2411 = vrot.lane.b32.xlu0 %v4758_v57, %s4860_s5  ;;  %2964 = vrot.lane.b32.xlu1 %v4462_v32, %s4865_s10  ;;  %v713_v46 = vrot.slane %v711_v34, 5  ;;  %v727_v47 = vshll.u32 %v406_v25, 16  ;;  %v4143_v49 = vrot.slane %v952_v30, 9  ;;  %v1101_v48 = vrot.slane %v953_v31, 5  ;;  %v4312_v55 = vld [vmem:[%s4952_s30 + $0xa0] sm:$0xf] }
  0xe8   : > { %v1362_v45 = vpop.permute.xlu0 %1361  ;;  %1955 = vst.msk [vmem:[#allocation2 + $0x80] sm:$0xff] %vm1946_vm10, %v1915_v37  ;;  %v2691_v51 = vsel %vm4987_vm5, %v2686_v40, %v2690_v17  ;;  %v2701_v53 = vsel %vm4987_vm5, %v2696_v41, %v2700_v33  ;;  %v719_v54 = vrot.slane %v717_v20, 5  ;;  %v723_v56 = vrot.slane %v721_v42, 4  ;;  %v4313_v12 = vld [vmem:[%s4952_s30 + $0xa4] sm:$0x1]  ;;  %v4761_v40 = vld [vmem:[%s4952_s30 + $0x9c] sm:$0xff]  }
  0xe9   : > { %1406 = vst.msk [vmem:[#allocation2 + $0x40] sm:$0xff] %vm1401_vm9, %v1362_v45  ;;  %v4458_v59 = vcombine.low %v2691_v51, %v2701_v53  ;;  %v714_v60 = vor.u32 %v713_v46, %v710_v27  ;;  %v729_v61 = vrot.slane %v727_v47, 5  ;;  %v1102_v62 = vsel %vm4945_vm2, %v4143_v49, %v1101_v48  ;;  %v4439_v29 = vld [vmem:[%s4952_s30 + $0xa8] sm:$0xf]  ;;  %v4440_v39 = vld [vmem:[%s4952_s30 + $0xac] sm:$0xf] }
  0xea   : > { %v724_v43 = vor.u32 %v723_v56, %v719_v54  ;;  %v1103_v4 = vrot.slane %v1101_v48, 4  ;;  %v1104_v5 = vrot.slane %v954_v36, 5  ;;  %v1755_v6 = vshrl.u32 %v4247_v44, 16 }
  0xeb   : > { %v2236_v3 = vpop.permute.xlu1 %2235  ;;  %2956 = vrot.lane.b32.xlu0 %v4458_v59, %s4865_s10  ;;  %v715_v9 = vrot.slane %v714_v60, 4  ;;  %v1758_v10 = vshll.u32 %v4247_v44, 16  ;;  %v1764_v11 = vshll.u32 %v4248_v50, 16  ;;  %v1768_v57 = vshrl.u32 %v4248_v50, 16  ;;  %v4441_v44 = vld [vmem:[%s4952_s30 + $0xb0] sm:$0x1] }
  0xec   : > { %v1907_v7 = vpop.permute.xlu0 %1906  ;;  %2276 = vst.msk [vmem:[#allocation2 + $0x80] sm:$0xff] %vm2267_vm11, %v2236_v3  ;;  %v725_v14 = vrot.slane %v724_v43, 4  ;;  %v1105_v15 = vsel %vm4945_vm2, %v1103_v4, %v1104_v5  ;;  %v1757_v16 = vrot.slane %v1755_v6, 4  ;;  %v1774_v17 = vshll.u32 %v4249_v58, 16  ;;  %v407_v50 = vld [vmem:[%s4952_s30 + $0x9c] sm:$0xf] }
  0xed   : > { %1951 = vst.msk [vmem:[#allocation2 + $0x40] sm:$0xff] %vm1946_vm10, %v1907_v7  ;;  %v3300_v18 = vld [vmem:[#allocation2 + $0x28] sm:$0xff]  ;;  %v720_v19 = vsel %vm4987_vm5, %v715_v9, %v719_v54  ;;  %v4159_v22 = vcombine.low %v1102_v62, %v1105_v15  ;;  %v1760_v21 = vrot.slane %v1758_v10, 5  ;;  %v1766_v23 = vrot.slane %v1764_v11, 5  ;;  %v408_v3 = vld [vmem:[%s4952_s30 + $0xa0] sm:$0xf] }
  0xee   : > { %4558 = vmatprep.mubr.msk.bf16.mxu0 %vm351_vm6, %v3300_v18  ;;  %v730_v25 = vsel %vm4987_vm5, %v725_v14, %v729_v61  ;;  %v1770_v38 = vrot.slane %v1768_v57, 4  ;;  %v1776_v26 = vrot.slane %v1774_v17, 5  ;;  %v4518_v28 = vrot.slane %v4476_v63, 9  ;;  %v409_v43 = vld [vmem:[%s4952_s30 + $0xa4] sm:$0x1]  ;;  %v4776_v4 = vld [vmem:[%s4952_s30 + $0x9c] sm:$0xff]  }
  0xef   : > { %v2414_v24 = vpop.permute.xlu1 %2413  ;;  %3496 = vmatmul.mubr.bf16.gmra.mrb[8].mxu0 %v3299_v13  ;;  %v4127_v30 = vcombine.low %v720_v19, %v730_v25  ;;  %1199 = vrot.lane.b32.xlu1 %v4159_v22, %s4861_s6  ;;  %v1761_v31 = vor.u32 %v1760_v21, %v1757_v16  ;;  %v3126_v32 = vrot.slane %v4477_v8, 5  ;;  %v3129_v33 = vrot.slane %v4478_v1, 5  ;;  %v955_v7 = vld [vmem:[%s4952_s30 + $0x9c] sm:$0xe]  ;;  %v956_v9 = vld [vmem:[%s4952_s30 + $0xa0] sm:$0xf] }
  0xf0   : > { %v2228_v35 = vpop.permute.xlu0 %2227  ;;  %2454 = vst.msk [vmem:[#allocation2 + $0x80] sm:$0xff] %vm2445_vm12, %v2414_v24  ;;  %v1771_v27 = vor.u32 %v1770_v38, %v1766_v23  ;;  %v4335_v34 = vrot.slane %v4311_v2, 9  ;;  %v2145_v36 = vrot.slane %v4312_v55, 5  ;;  %v2148_v37 = vrot.slane %v4313_v12, 5  ;;  %v4762_v10 = vld [vmem:[%s4952_s30 + $0xa8] sm:$0xff]  }
  0xf1   : > { %2272 = vst.msk [vmem:[#allocation2 + $0x40] sm:$0xff] %vm2267_vm11, %v2228_v35  ;;  %875 = vrot.lane.b32.xlu0 %v4127_v30, %s4864_s9  ;;  %v1762_v41 = vrot.slane %v1761_v31, 4  ;;  %v3127_v20 = vsel %vm4945_vm2, %v4518_v28, %v3126_v32  ;;  %v3128_v42 = vrot.slane %v3126_v32, 4  ;;  %v2799_v45 = vshrl.u32 %v4439_v29, 16  ;;  %v957_v17 = vld [vmem:[%s4952_s30 + $0xa4] sm:$0x1] }
  0xf2   : > { %v1772_v46 = vrot.slane %v1771_v27, 4  ;;  %v2146_v47 = vsel %vm4945_vm2, %v4335_v34, %v2145_v36  ;;  %v2147_v49 = vrot.slane %v2145_v36, 4  ;;  %v2802_v48 = vshll.u32 %v4439_v29, 16  ;;  %365 = vst.msk [vmem:[#allocation2 + $0xd0] sm:$0xff] %vm351_vm6, %v4776_v4  ;;  %v4251_v31 = vld [vmem:[%s4952_s30 + $0xac] sm:$0xf] }
  0xf3   : > { %v1767_v53 = vsel %vm4987_vm5, %v1762_v41, %v1766_v23  ;;  %v3130_v54 = vsel %vm4945_vm2, %v3128_v42, %v3129_v33  ;;  %v2801_v56 = vrot.slane %v2799_v45, 4  ;;  %v2808_v58 = vshll.u32 %v4440_v39, 16  ;;  %v4250_v23 = vld [vmem:[%s4952_s30 + $0xa8] sm:$0xf]  ;;  %v4252_v36 = vld [vmem:[%s4952_s30 + $0xb0] sm:$0x1] }
  0xf4   : > { %v2406_v51 = vpop.permute.xlu0 %2405  ;;  %v1777_v60 = vsel %vm4987_vm5, %v1772_v46, %v1776_v26  ;;  %v4534_v61 = vcombine.low %v3127_v20, %v3130_v54  ;;  %v2149_v62 = vsel %vm4945_vm2, %v2147_v49, %v2148_v37  ;;  %v2804_v63 = vrot.slane %v2802_v48, 5  ;;  %v4315_v45 = vld [vmem:[%s4952_s30 + $0xac] sm:$0xf]  ;;  %v4443_v4 = vld [vmem:[%s4952_s30 + $0xb8] sm:$0xf] }
  0xf5   : > { %2450 = vst.msk [vmem:[#allocation2 + $0x40] sm:$0xff] %vm2445_vm12, %v2406_v51  ;;  %v2959_v59 = vpop.permute.xlu1 %2958  ;;  %1377 = vrot.lane.b32.xlu0 %v4761_v40, %s4859_s4  ;;  %v4271_v5 = vcombine.low %v1767_v53, %v1777_v60  ;;  %v4351_v6 = vcombine.low %v2146_v47, %v2149_v62  ;;  %v2810_v8 = vrot.slane %v2808_v58, 5  ;;  %v2812_v1 = vshrl.u32 %v4440_v39, 16  ;;  %v4314_v39 = vld [vmem:[%s4952_s30 + $0xa8] sm:$0xe]  ;;  %v3301_v40 = vld [vmem:[#allocation2 + $0x30] sm:$0xff] }
  0xf6   : > { %2999 = vst.msk [vmem:[#allocation2 + $0x80] sm:$0xff] %vm2990_vm13, %v2959_v59  ;;  %v2805_v11 = vor.u32 %v2804_v63, %v2801_v56  ;;  %v2818_v57 = vshll.u32 %v4441_v44, 16  ;;  %v732_v2 = vshrl.u32 %v407_v50, 16  ;;  %v735_v55 = vshll.u32 %v407_v50, 16  ;;  %v4316_v51 = vld [vmem:[%s4952_s30 + $0xb0] sm:$0x1] }
  0xf7   : > { %3282 = vst.msk [vmem:[#allocation2 + $0x38] sm:$0xff] %vm351_vm6, %v4534_v61  ;;  %1922 = vrot.lane.b32.xlu1 %v4271_v5, %s4863_s8  ;;  %v2814_v13 = vrot.slane %v2812_v1, 4  ;;  %v741_v14 = vshll.u32 %v408_v3, 16  ;;  %v745_v15 = vshrl.u32 %v408_v3, 16  ;;  %v751_v16 = vshll.u32 %v409_v43, 16 }
  0xf8   : > { %v2951_v12 = vpop.permute.xlu0 %2950  ;;  %v2806_v18 = vrot.slane %v2805_v11, 4  ;;  %v2820_v19 = vrot.slane %v2818_v57, 5  ;;  %v734_v22 = vrot.slane %v732_v2, 4  ;;  %v737_v21 = vrot.slane %v735_v55, 5  ;;  %v4442_v59 = vld [vmem:[%s4952_s30 + $0xb4] sm:$0xf] }
  0xf9   : > { %2995 = vst.msk [vmem:[#allocation2 + $0x40] sm:$0xff] %vm2990_vm13, %v2951_v12  ;;  %2243 = vrot.lane.b32.xlu0 %v4351_v6, %s4862_s7  ;;  %v2815_v24 = vor.u32 %v2814_v13, %v2810_v8  ;;  %v743_v25 = vrot.slane %v741_v14, 5  ;;  %v747_v38 = vrot.slane %v745_v15, 4  ;;  %v753_v26 = vrot.slane %v751_v16, 5  ;;  %v4763_v6 = vld [vmem:[%s4952_s30 + $0xa8] sm:$0xff]  }
  0xfa   : > { %v2811_v28 = vsel %vm4987_vm5, %v2806_v18, %v2810_v8  ;;  %v738_v29 = vor.u32 %v737_v21, %v734_v22  ;;  %v4144_v35 = vrot.slane %v955_v7, 9  ;;  %v1108_v30 = vrot.slane %v956_v9, 5  ;;  %v4444_v57 = vld [vmem:[%s4952_s30 + $0xbc] sm:$0x1]  ;;  %v410_v15 = vld [vmem:[%s4952_s30 + $0xa8] sm:$0xf] }
  0xfb   : > { %2421 = vrot.lane.b32.xlu1 %v4762_v10, %s4860_s5  ;;  %v2816_v33 = vrot.slane %v2815_v24, 4  ;;  %v748_v27 = vor.u32 %v747_v38, %v743_v25  ;;  %v1111_v34 = vrot.slane %v957_v17, 5  ;;  %v1779_v37 = vshrl.u32 %v4250_v23, 16 }
  0xfc   : > { %v870_v32 = vpop.permute.xlu1 %869  ;;  %v739_v41 = vrot.slane %v738_v29, 4  ;;  %v1109_v20 = vsel %vm4945_vm2, %v4144_v35, %v1108_v30  ;;  %v1110_v42 = vrot.slane %v1108_v30, 4  ;;  %v1782_v44 = vshll.u32 %v4250_v23, 16  ;;  %v411_v23 = vld [vmem:[%s4952_s30 + $0xac] sm:$0xf] }
  0xfd   : > { %909 = vst.msk [vmem:[#allocation2 + $0x90] sm:$0xff] %vm899_vm7, %v870_v32  ;;  %v2821_v47 = vsel %vm4987_vm5, %v2816_v33, %v2820_v19  ;;  %v749_v49 = vrot.slane %v748_v27, 4  ;;  %v1781_v48 = vrot.slane %v1779_v37, 4  ;;  %v1788_v50 = vshll.u32 %v4251_v31, 16  ;;  %v958_v32 = vld [vmem:[%s4952_s30 + $0xa8] sm:$0xe] }
  0xfe   : > { %v3302_v46 = vld [vmem:[#allocation2 + $0x38] sm:$0xff]  ;;  %v4463_v53 = vcombine.low %v2811_v28, %v2821_v47  ;;  %v744_v54 = vsel %vm4987_vm5, %v739_v41, %v743_v25  ;;  %v1112_v56 = vsel %vm4945_vm2, %v1110_v42, %v1111_v34  ;;  %v1784_v58 = vrot.slane %v1782_v44, 5  ;;  %v412_v28 = vld [vmem:[%s4952_s30 + $0xb0] sm:$0x1]  ;;  %v959_v42 = vld [vmem:[%s4952_s30 + $0xac] sm:$0xf] }
  0xff   : > { %4559 = vmatprep.mubr.msk.bf16.mxu0 %vm351_vm6, %v3302_v46  ;;  %v754_v62 = vsel %vm4987_vm5, %v749_v49, %v753_v26  ;;  %v4160_v63 = vcombine.low %v1109_v20, %v1112_v56  ;;  %v1790_v3 = vrot.slane %v1788_v50, 5  ;;  %v1792_v43 = vshrl.u32 %v4251_v31, 16  ;;  %v4764_v47 = vld [vmem:[%s4952_s30 + $0xb4] sm:$0xff]  }
 0x100   : > { %v862_v60 = vpop.permute.xlu0 %861  ;;  %v1194_v61 = vpop.permute.xlu1 %1193  ;;  %3504 = vmatmul.mubr.bf16.gmra.mrb[12].mxu0 %v3301_v40  ;;  %2966 = vrot.lane.b32.xlu0 %v4463_v53, %s4865_s10  ;;  %v4128_v5 = vcombine.low %v744_v54, %v754_v62  ;;  %v1785_v8 = vor.u32 %v1784_v58, %v1781_v48  ;;  %v1798_v1 = vshll.u32 %v4252_v36, 16  ;;  %v4336_v7 = vrot.slane %v4314_v39, 9  ;;  %v4491_v53 = vld [vmem:[%s4952_s30 + $0x78] sm:$0xe] }
 0x101   : > { %905 = vst.msk [vmem:[#allocation2 + $0x50] sm:$0xff] %vm899_vm7, %v862_v60  ;;  %v1794_v9 = vrot.slane %v1792_v43, 4  ;;  %v2152_v10 = vrot.slane %v4315_v45, 5  ;;  %v2155_v11 = vrot.slane %v4316_v51, 5  ;;  %v2823_v2 = vshrl.u32 %v4442_v59, 16  ;;  %v4777_v45 = vld [vmem:[%s4952_s30 + $0xa8] sm:$0xff]  }
 0x102   : > { %1233 = vst.msk [vmem:[#allocation2 + $0x90] sm:$0xff] %vm1223_vm8, %v1194_v61  ;;  %877 = vrot.lane.b32.xlu1 %v4128_v5, %s4864_s9  ;;  %v1786_v55 = vrot.slane %v1785_v8, 4  ;;  %v1800_v12 = vrot.slane %v1798_v1, 5  ;;  %v2826_v13 = vshll.u32 %v4442_v59, 16  ;;  %v2832_v14 = vshll.u32 %v4443_v4, 16 }
 0x103   : > { %v1795_v18 = vor.u32 %v1794_v9, %v1790_v3  ;;  %v2153_v19 = vsel %vm4945_vm2, %v4336_v7, %v2152_v10  ;;  %v2154_v22 = vrot.slane %v2152_v10, 4  ;;  %v2825_v21 = vrot.slane %v2823_v2, 4  ;;  %v960_v51 = vld [vmem:[%s4952_s30 + $0xb0] sm:$0x1]  ;;  %v4492_v60 = vld [vmem:[%s4952_s30 + $0x7c] sm:$0xf] }
 0x104   : > { %v1186_v16 = vpop.permute.xlu0 %1185  ;;  %v1372_v17 = vpop.permute.xlu1 %1371  ;;  %1201 = vrot.lane.b32.xlu0 %v4160_v63, %s4861_s6  ;;  %v1791_v24 = vsel %vm4987_vm5, %v1786_v55, %v1790_v3  ;;  %v2828_v25 = vrot.slane %v2826_v13, 5  ;;  %v2834_v38 = vrot.slane %v2832_v14, 5  ;;  %v2836_v26 = vshrl.u32 %v4443_v4, 16  ;;  %366 = vst.msk [vmem:[#allocation2 + $0xe0] sm:$0xff] %vm351_vm6, %v4777_v45  ;;  %v4493_v43 = vld [vmem:[%s4952_s30 + $0x80] sm:$0x1] }
 0x105   : > { %1229 = vst.msk [vmem:[#allocation2 + $0x50] sm:$0xff] %vm1223_vm8, %v1186_v16  ;;  %v1796_v29 = vrot.slane %v1795_v18, 4  ;;  %v2156_v35 = vsel %vm4945_vm2, %v2154_v22, %v2155_v11  ;;  %v2842_v30 = vshll.u32 %v4444_v57, 16  ;;  %v756_v31 = vshrl.u32 %v410_v15, 16  ;;  %v4253_v4 = vld [vmem:[%s4952_s30 + $0xb4] sm:$0xf] }
 0x106   : > { %1411 = vst.msk [vmem:[#allocation2 + $0x90] sm:$0xff] %vm1401_vm9, %v1372_v17  ;;  %1379 = vrot.lane.b32.xlu1 %v4763_v6, %s4859_s4  ;;  %v4352_v33 = vcombine.low %v2153_v19, %v2156_v35  ;;  %v2829_v27 = vor.u32 %v2828_v25, %v2825_v21  ;;  %v2838_v34 = vrot.slane %v2836_v26, 4  ;;  %v759_v36 = vshll.u32 %v410_v15, 16  ;;  %v4254_v55 = vld [vmem:[%s4952_s30 + $0xb8] sm:$0xf] }
 0x107   : > { %v1801_v39 = vsel %vm4987_vm5, %v1796_v29, %v1800_v12  ;;  %v2844_v40 = vrot.slane %v2842_v30, 5  ;;  %v758_v41 = vrot.slane %v756_v31, 4  ;;  %v765_v20 = vshll.u32 %v411_v23, 16  ;;  %v4255_v16 = vld [vmem:[%s4952_s30 + $0xbc] sm:$0x1] }
 0x108   : > { %v1364_v37 = vpop.permute.xlu0 %1363  ;;  %v4272_v46 = vcombine.low %v1791_v24, %v1801_v39  ;;  %v2830_v49 = vrot.slane %v2829_v27, 4  ;;  %v2839_v48 = vor.u32 %v2838_v34, %v2834_v38  ;;  %v761_v50 = vrot.slane %v759_v36, 5  ;;  %v4479_v17 = vld [vmem:[%s4952_s30 + $0x48] sm:$0xe]  ;;  %v4481_v24 = vld [vmem:[%s4952_s30 + $0x50] sm:$0x1] }
 0x109   : > { %1407 = vst.msk [vmem:[#allocation2 + $0x50] sm:$0xff] %vm1401_vm9, %v1364_v37  ;;  %v1917_v44 = vpop.permute.xlu1 %1916  ;;  %v767_v54 = vrot.slane %v765_v20, 5  ;;  %v769_v56 = vshrl.u32 %v411_v23, 16  ;;  %v775_v58 = vshll.u32 %v412_v28, 16  ;;  %v4145_v59 = vrot.slane %v958_v32, 9 }
 0x10a   : > { %1956 = vst.msk [vmem:[#allocation2 + $0x90] sm:$0xff] %vm1946_vm10, %v1917_v44  ;;  %1924 = vrot.lane.b32.xlu0 %v4272_v46, %s4863_s8  ;;  %2245 = vrot.lane.b32.xlu1 %v4352_v33, %s4862_s7  ;;  %v2835_v61 = vsel %vm4987_vm5, %v2830_v49, %v2834_v38  ;;  %v2840_v62 = vrot.slane %v2839_v48, 4  ;;  %v762_v63 = vor.u32 %v761_v50, %v758_v41  ;;  %v1115_v3 = vrot.slane %v959_v42, 5  ;;  %v4480_v23 = vld [vmem:[%s4952_s30 + $0x4c] sm:$0xf]  ;;  %v4767_v44 = vld [vmem:[%s4952_s30 + $0xb4] sm:$0xff]  }
 0x10b   : > { %v771_v6 = vrot.slane %v769_v56, 4  ;;  %v777_v8 = vrot.slane %v775_v58, 5  ;;  %v1118_v1 = vrot.slane %v960_v51, 5  ;;  %v4523_v7 = vrot.slane %v4491_v53, 9  ;;  %v4317_v27 = vld [vmem:[%s4952_s30 + $0xb4] sm:$0xe] }
 0x10c   : > { %v1909_v5 = vpop.permute.xlu0 %1908  ;;  %v2845_v10 = vsel %vm4987_vm5, %v2840_v62, %v2844_v40  ;;  %v763_v11 = vrot.slane %v762_v63, 4  ;;  %v1116_v57 = vsel %vm4945_vm2, %v4145_v59, %v1115_v3  ;;  %v1117_v2 = vrot.slane %v1115_v3, 4  ;;  %v4318_v40 = vld [vmem:[%s4952_s30 + $0xb8] sm:$0xf]  ;;  %v4319_v41 = vld [vmem:[%s4952_s30 + $0xbc] sm:$0x1] }
 0x10d   : > { %1952 = vst.msk [vmem:[#allocation2 + $0x50] sm:$0xff] %vm1946_vm10, %v1909_v5  ;;  %v2238_v9 = vpop.permute.xlu1 %2237  ;;  %v4464_v12 = vcombine.low %v2835_v61, %v2845_v10  ;;  %v772_v13 = vor.u32 %v771_v6, %v767_v54  ;;  %v3161_v14 = vrot.slane %v4492_v60, 5  ;;  %v3164_v15 = vrot.slane %v4493_v43, 5 }
 0x10e   : > { %2277 = vst.msk [vmem:[#allocation2 + $0x90] sm:$0xff] %vm2267_vm11, %v2238_v9  ;;  %2423 = vrot.lane.b32.xlu0 %v4764_v47, %s4860_s5  ;;  %v768_v18 = vsel %vm4987_vm5, %v763_v11, %v767_v54  ;;  %v1119_v19 = vsel %vm4945_vm2, %v1117_v2, %v1118_v1  ;;  %v1803_v22 = vshrl.u32 %v4253_v4, 16  ;;  %v1806_v21 = vshll.u32 %v4253_v4, 16  ;;  %v4445_v47 = vld [vmem:[%s4952_s30 + $0xc0] sm:$0xf] }
 0x10f   : > { %2968 = vrot.lane.b32.xlu1 %v4464_v12, %s4865_s10  ;;  %v773_v38 = vrot.slane %v772_v13, 4  ;;  %v4161_v26 = vcombine.low %v1116_v57, %v1119_v19  ;;  %v3162_v28 = vsel %vm4945_vm2, %v4523_v7, %v3161_v14  ;;  %v3163_v29 = vrot.slane %v3161_v14, 4  ;;  %v4446_v54 = vld [vmem:[%s4952_s30 + $0xc4] sm:$0xf]  ;;  %v413_v2 = vld [vmem:[%s4952_s30 + $0xb4] sm:$0xf] }
 0x110   : > { %v2230_v25 = vpop.permute.xlu0 %2229  ;;  %v1805_v30 = vrot.slane %v1803_v22, 4  ;;  %v1808_v31 = vrot.slane %v1806_v21, 5  ;;  %v1812_v32 = vshll.u32 %v4254_v55, 16  ;;  %v1816_v33 = vshrl.u32 %v4254_v55, 16  ;;  %v3311_v55 = vld [vmem:[#allocation2 + $0x80] sm:$0xff] }
 0x111   : > { %2273 = vst.msk [vmem:[#allocation2 + $0x50] sm:$0xff] %vm2267_vm11, %v2230_v25  ;;  %v2416_v35 = vpop.permute.xlu1 %2415  ;;  %v778_v34 = vsel %vm4987_vm5, %v773_v38, %v777_v8  ;;  %v3165_v36 = vsel %vm4945_vm2, %v3163_v29, %v3164_v15  ;;  %v1822_v37 = vshll.u32 %v4255_v16, 16  ;;  %v4519_v39 = vrot.slane %v4479_v17, 9  ;;  %v4447_v8 = vld [vmem:[%s4952_s30 + $0xc8] sm:$0x1] }
 0x112   : > { %2455 = vst.msk [vmem:[#allocation2 + $0x90] sm:$0xff] %vm2445_vm12, %v2416_v35  ;;  %v4129_v20 = vcombine.low %v768_v18, %v778_v34  ;;  %v4539_v42 = vcombine.low %v3162_v28, %v3165_v36  ;;  %v1809_v45 = vor.u32 %v1808_v31, %v1805_v30  ;;  %v1814_v46 = vrot.slane %v1812_v32, 5  ;;  %v414_v16 = vld [vmem:[%s4952_s30 + $0xb8] sm:$0xf]  ;;  %v415_v17 = vld [vmem:[%s4952_s30 + $0xbc] sm:$0x1] }
 0x113   : > { %1203 = vrot.lane.b32.xlu1 %v4161_v26, %s4861_s6  ;;  %v1818_v48 = vrot.slane %v1816_v33, 4  ;;  %v1824_v50 = vrot.slane %v1822_v37, 5  ;;  %v3133_v51 = vrot.slane %v4480_v23, 5  ;;  %v3136_v53 = vrot.slane %v4481_v24, 5  ;;  %v961_v23 = vld [vmem:[%s4952_s30 + $0xb4] sm:$0xe] }
 0x114   : > { %v2408_v49 = vpop.permute.xlu0 %2407  ;;  %879 = vrot.lane.b32.xlu0 %v4129_v20, %s4864_s9  ;;  %3287 = vst.msk [vmem:[#allocation2 + $0x88] sm:$0xff] %vm351_vm6, %v4539_v42  ;;  %v1810_v58 = vrot.slane %v1809_v45, 4  ;;  %v4337_v59 = vrot.slane %v4317_v27, 9  ;;  %v2159_v60 = vrot.slane %v4318_v40, 5  ;;  %v2162_v61 = vrot.slane %v4319_v41, 5  ;;  %v4768_v31 = vld [vmem:[%s4952_s30 + $0xc0] sm:$0xff]  }
 0x115   : > { %2451 = vst.msk [vmem:[#allocation2 + $0x50] sm:$0xff] %vm2445_vm12, %v2408_v49  ;;  %v2961_v56 = vpop.permute.xlu1 %2960  ;;  %v1819_v62 = vor.u32 %v1818_v48, %v1814_v46  ;;  %v3134_v63 = vsel %vm4945_vm2, %v4519_v39, %v3133_v51  ;;  %v3135_v3 = vrot.slane %v3133_v51, 4  ;;  %v2847_v43 = vshrl.u32 %v4445_v47, 16  ;;  %v962_v24 = vld [vmem:[%s4952_s30 + $0xb8] sm:$0xf] }
 0x116   : > { %3000 = vst.msk [vmem:[#allocation2 + $0x90] sm:$0xff] %vm2990_vm13, %v2961_v56  ;;  %v1815_v4 = vsel %vm4987_vm5, %v1810_v58, %v1814_v46  ;;  %v2160_v5 = vsel %vm4945_vm2, %v4337_v59, %v2159_v60  ;;  %v2161_v6 = vrot.slane %v2159_v60, 4  ;;  %v2850_v1 = vshll.u32 %v4445_v47, 16  ;;  %v963_v29 = vld [vmem:[%s4952_s30 + $0xbc] sm:$0x1]  ;;  %v4778_v20 = vld [vmem:[%s4952_s30 + $0xb4] sm:$0xff]  }
 0x117   : > { %v1820_v9 = vrot.slane %v1819_v62, 4  ;;  %v3137_v10 = vsel %vm4945_vm2, %v3135_v3, %v3136_v53  ;;  %v2849_v11 = vrot.slane %v2847_v43, 4  ;;  %v2856_v57 = vshll.u32 %v4446_v54, 16  ;;  %v4256_v41 = vld [vmem:[%s4952_s30 + $0xc0] sm:$0xf]  ;;  %367 = vst.msk [vmem:[#allocation2 + $0xf0] sm:$0xff] %vm351_vm6, %v4778_v20 }
 0x118   : > { %v2953_v7 = vpop.permute.xlu0 %2952  ;;  %1381 = vrot.lane.b32.xlu0 %v4767_v44, %s4859_s4  ;;  %v4535_v12 = vcombine.low %v3134_v63, %v3137_v10  ;;  %v2163_v13 = vsel %vm4945_vm2, %v2161_v6, %v2162_v61  ;;  %v2852_v14 = vrot.slane %v2850_v1, 5  ;;  %v2860_v15 = vshrl.u32 %v4446_v54, 16  ;;  %v3303_v47 = vld [vmem:[#allocation2 + $0x40] sm:$0xff]  ;;  %v4258_v60 = vld [vmem:[%s4952_s30 + $0xc8] sm:$0x1] }
 0x119   : > { %2996 = vst.msk [vmem:[#allocation2 + $0x50] sm:$0xff] %vm2990_vm13, %v2953_v7  ;;  %v1825_v18 = vsel %vm4987_vm5, %v1820_v9, %v1824_v50  ;;  %v4353_v19 = vcombine.low %v2160_v5, %v2163_v13  ;;  %v2858_v22 = vrot.slane %v2856_v57, 5  ;;  %v2866_v21 = vshll.u32 %v4447_v8, 16  ;;  %v4257_v59 = vld [vmem:[%s4952_s30 + $0xc4] sm:$0xf] }
 0x11a   : > { %v4273_v25 = vcombine.low %v1815_v4, %v1825_v18  ;;  %3283 = vst.msk [vmem:[#allocation2 + $0x48] sm:$0xff] %vm351_vm6, %v4535_v12  ;;  %v2853_v38 = vor.u32 %v2852_v14, %v2849_v11  ;;  %v2862_v26 = vrot.slane %v2860_v15, 4  ;;  %v780_v28 = vshrl.u32 %v413_v2, 16  ;;  %v4320_v4 = vld [vmem:[%s4952_s30 + $0xc0] sm:$0xe] }
 0x11b   : > { %v3312_v30 = vld [vmem:[#allocation2 + $0x88] sm:$0xff]  ;;  %v2868_v32 = vrot.slane %v2866_v21, 5  ;;  %v783_v33 = vshll.u32 %v413_v2, 16  ;;  %v789_v27 = vshll.u32 %v414_v16, 16  ;;  %v793_v34 = vshrl.u32 %v414_v16, 16 }
 0x11c   : > { %v872_v35 = vpop.permute.xlu1 %871  ;;  %4564 = vmatprep.mubr.msk.bf16.mxu1 %vm351_vm6, %v3312_v30  ;;  %1926 = vrot.lane.b32.xlu1 %v4273_v25, %s4863_s8  ;;  %v2854_v36 = vrot.slane %v2853_v38, 4  ;;  %v2863_v37 = vor.u32 %v2862_v26, %v2858_v22  ;;  %v782_v39 = vrot.slane %v780_v28, 4  ;;  %v799_v40 = vshll.u32 %v415_v17, 16  ;;  %v4321_v5 = vld [vmem:[%s4952_s30 + $0xc4] sm:$0xf] }
 0x11d   : > { %910 = vst.msk [vmem:[#allocation2 + $0xa0] sm:$0xff] %vm899_vm7, %v872_v35  ;;  %3544 = vmatmul.mubr.bf16.vlgmr.msra.gmra.mrb[0].mxu1 %v3311_v55  ;;  %2247 = vrot.lane.b32.xlu0 %v4353_v19, %s4862_s7  ;;  %v785_v42 = vrot.slane %v783_v33, 5  ;;  %v791_v44 = vrot.slane %v789_v27, 5  ;;  %v795_v45 = vrot.slane %v793_v34, 4  ;;  %v4146_v46 = vrot.slane %v961_v23, 9 }
 0x11e   : > { %v2859_v49 = vsel %vm4987_vm5, %v2854_v36, %v2858_v22  ;;  %v2864_v48 = vrot.slane %v2863_v37, 4  ;;  %v801_v50 = vrot.slane %v799_v40, 5  ;;  %v1122_v51 = vrot.slane %v962_v24, 5  ;;  %v4322_v12 = vld [vmem:[%s4952_s30 + $0xc8] sm:$0x1] }
 0x11f   : > { %v786_v54 = vor.u32 %v785_v42, %v782_v39  ;;  %v796_v56 = vor.u32 %v795_v45, %v791_v44  ;;  %v1125_v58 = vrot.slane %v963_v29, 5  ;;  %v1827_v61 = vshrl.u32 %v4256_v41, 16  ;;  %v4448_v18 = vld [vmem:[%s4952_s30 + $0xcc] sm:$0xf]  ;;  %v4449_v19 = vld [vmem:[%s4952_s30 + $0xd0] sm:$0xf] }
 0x120   : > { %v1196_v53 = vpop.permute.xlu1 %1195  ;;  %2425 = vrot.lane.b32.xlu1 %v4768_v31, %s4860_s5  ;;  %v2869_v62 = vsel %vm4987_vm5, %v2864_v48, %v2868_v32  ;;  %v1123_v63 = vsel %vm4945_vm2, %v4146_v46, %v1122_v51  ;;  %v1124_v3 = vrot.slane %v1122_v51, 4  ;;  %v1830_v43 = vshll.u32 %v4256_v41, 16  ;;  %v4450_v25 = vld [vmem:[%s4952_s30 + $0xd4] sm:$0x1]  ;;  %v4494_v30 = vld [vmem:[%s4952_s30 + $0x84] sm:$0xe] }
 0x121   : > { %1234 = vst.msk [vmem:[#allocation2 + $0xa0] sm:$0xff] %vm1223_vm8, %v1196_v53  ;;  %v3304_v8 = vld [vmem:[#allocation2 + $0x48] sm:$0xff]  ;;  %v4465_v1 = vcombine.low %v2859_v49, %v2869_v62  ;;  %v787_v7 = vrot.slane %v786_v54, 4  ;;  %v797_v9 = vrot.slane %v796_v56, 4  ;;  %v1829_v10 = vrot.slane %v1827_v61, 4  ;;  %v4769_v31 = vld [vmem:[%s4952_s30 + $0xc0] sm:$0xff]  }
 0x122   : > { %v864_v6 = vpop.permute.xlu0 %863  ;;  %4560 = vmatprep.mubr.msk.bf16.mxu0 %vm351_vm6, %v3304_v8  ;;  %v1126_v11 = vsel %vm4945_vm2, %v1124_v3, %v1125_v58  ;;  %v1832_v57 = vrot.slane %v1830_v43, 5  ;;  %v1836_v2 = vshll.u32 %v4257_v59, 16  ;;  %v1840_v55 = vshrl.u32 %v4257_v59, 16  ;;  %v4495_v36 = vld [vmem:[%s4952_s30 + $0x88] sm:$0xf] }
 0x123   : > { %906 = vst.msk [vmem:[#allocation2 + $0x60] sm:$0xff] %vm899_vm7, %v864_v6  ;;  %3512 = vmatmul.mubr.bf16.gmra.mrb[16].mxu0 %v3303_v47  ;;  %2970 = vrot.lane.b32.xlu0 %v4465_v1, %s4865_s10  ;;  %v792_v14 = vsel %vm4987_vm5, %v787_v7, %v791_v44  ;;  %v802_v15 = vsel %vm4987_vm5, %v797_v9, %v801_v50  ;;  %v1846_v17 = vshll.u32 %v4258_v60, 16  ;;  %v4338_v28 = vrot.slane %v4320_v4, 9  ;;  %v4496_v20 = vld [vmem:[%s4952_s30 + $0x8c] sm:$0x1] }
 0x124   : > { %v1374_v13 = vpop.permute.xlu1 %1373  ;;  %v4162_v16 = vcombine.low %v1123_v63, %v1126_v11  ;;  %v4130_v22 = vcombine.low %v792_v14, %v802_v15  ;;  %v1833_v21 = vor.u32 %v1832_v57, %v1829_v10  ;;  %v1838_v23 = vrot.slane %v1836_v2, 5  ;;  %v4482_v42 = vld [vmem:[%s4952_s30 + $0x54] sm:$0xe]  ;;  %v4483_v44 = vld [vmem:[%s4952_s30 + $0x58] sm:$0xf] }
 0x125   : > { %1412 = vst.msk [vmem:[#allocation2 + $0xa0] sm:$0xff] %vm1401_vm9, %v1374_v13  ;;  %v1842_v24 = vrot.slane %v1840_v55, 4  ;;  %v1848_v26 = vrot.slane %v1846_v17, 5  ;;  %v2166_v29 = vrot.slane %v4321_v5, 5  ;;  %v2169_v35 = vrot.slane %v4322_v12, 5  ;;  %v4770_v55 = vld [vmem:[%s4952_s30 + $0xcc] sm:$0xff]  }
 0x126   : > { %v1188_v38 = vpop.permute.xlu0 %1187  ;;  %881 = vrot.lane.b32.xlu1 %v4130_v22, %s4864_s9  ;;  %v1834_v32 = vrot.slane %v1833_v21, 4  ;;  %v2871_v27 = vshrl.u32 %v4448_v18, 16  ;;  %v2874_v34 = vshll.u32 %v4448_v18, 16  ;;  %v2880_v40 = vshll.u32 %v4449_v19, 16  ;;  %v4484_v62 = vld [vmem:[%s4952_s30 + $0x5c] sm:$0x1] }
 0x127   : > { %1230 = vst.msk [vmem:[#allocation2 + $0x60] sm:$0xff] %vm1223_vm8, %v1188_v38  ;;  %v1843_v33 = vor.u32 %v1842_v24, %v1838_v23  ;;  %1205 = vrot.lane.b32.xlu0 %v4162_v16, %s4861_s6  ;;  %v2167_v37 = vsel %vm4945_vm2, %v4338_v28, %v2166_v29  ;;  %v2168_v39 = vrot.slane %v2166_v29, 4  ;;  %v2884_v41 = vshrl.u32 %v4449_v19, 16  ;;  %v4497_v63 = vld [vmem:[%s4952_s30 + $0x90] sm:$0xe] }
 0x128   : > { %v1839_v46 = vsel %vm4987_vm5, %v1834_v32, %v1838_v23  ;;  %v2873_v49 = vrot.slane %v2871_v27, 4  ;;  %v2876_v48 = vrot.slane %v2874_v34, 5  ;;  %v2882_v53 = vrot.slane %v2880_v40, 5  ;;  %v4498_v8 = vld [vmem:[%s4952_s30 + $0x94] sm:$0xf] }
 0x129   : > { %v1919_v45 = vpop.permute.xlu1 %1918  ;;  %v1844_v47 = vrot.slane %v1843_v33, 4  ;;  %v2170_v51 = vsel %vm4945_vm2, %v2168_v39, %v2169_v35  ;;  %v2886_v54 = vrot.slane %v2884_v41, 4  ;;  %v2890_v56 = vshll.u32 %v4450_v25, 16  ;;  %v4499_v1 = vld [vmem:[%s4952_s30 + $0x98] sm:$0x1] }
 0x12a   : > { %v1366_v50 = vpop.permute.xlu0 %1365  ;;  %1957 = vst.msk [vmem:[#allocation2 + $0xa0] sm:$0xff] %vm1946_vm10, %v1919_v45  ;;  %1383 = vrot.lane.b32.xlu1 %v4769_v31, %s4859_s4  ;;  %v4354_v59 = vcombine.low %v2167_v37, %v2170_v51  ;;  %v2877_v60 = vor.u32 %v2876_v48, %v2873_v49  ;;  %v4524_v61 = vrot.slane %v4494_v30, 9  ;;  %v3168_v5 = vrot.slane %v4495_v36, 5  ;;  %v4485_v2 = vld [vmem:[%s4952_s30 + $0x60] sm:$0xe] }
 0x12b   : > { %1408 = vst.msk [vmem:[#allocation2 + $0x60] sm:$0xff] %vm1401_vm9, %v1366_v50  ;;  %v1849_v58 = vsel %vm4987_vm5, %v1844_v47, %v1848_v26  ;;  %v2887_v43 = vor.u32 %v2886_v54, %v2882_v53  ;;  %v2892_v4 = vrot.slane %v2890_v56, 5  ;;  %v3171_v9 = vrot.slane %v4496_v20, 5  ;;  %v4486_v16 = vld [vmem:[%s4952_s30 + $0x64] sm:$0xf] }
 0x12c   : > { %v4274_v3 = vcombine.low %v1839_v46, %v1849_v58  ;;  %v2878_v7 = vrot.slane %v2877_v60, 4  ;;  %v4520_v10 = vrot.slane %v4482_v42, 9  ;;  %v3140_v11 = vrot.slane %v4483_v44, 5  ;;  %v4487_v21 = vld [vmem:[%s4952_s30 + $0x68] sm:$0x1] }
 0x12d   : > { %v2240_v6 = vpop.permute.xlu1 %2239  ;;  %v2888_v12 = vrot.slane %v2887_v43, 4  ;;  %v3169_v13 = vsel %vm4945_vm2, %v4524_v61, %v3168_v5  ;;  %v3170_v14 = vrot.slane %v3168_v5, 4  ;;  %v3143_v15 = vrot.slane %v4484_v62, 5  ;;  %v4500_v23 = vld [vmem:[%s4952_s30 + $0x9c] sm:$0xe] }
 0x12e   : > { %v1911_v57 = vpop.permute.xlu0 %1910  ;;  %2278 = vst.msk [vmem:[#allocation2 + $0xa0] sm:$0xff] %vm2267_vm11, %v2240_v6  ;;  %1928 = vrot.lane.b32.xlu0 %v4274_v3, %s4863_s8  ;;  %2249 = vrot.lane.b32.xlu1 %v4354_v59, %s4862_s7  ;;  %v2883_v17 = vsel %vm4987_vm5, %v2878_v7, %v2882_v53  ;;  %v3141_v18 = vsel %vm4945_vm2, %v4520_v10, %v3140_v11  ;;  %v3142_v19 = vrot.slane %v3140_v11, 4  ;;  %v4525_v22 = vrot.slane %v4497_v63, 9  ;;  %v4501_v29 = vld [vmem:[%s4952_s30 + $0xa0] sm:$0xf]  ;;  %s201_s8 = sand.u32 1, %s4841_s13  }
 0x12f   : > { %1953 = vst.msk [vmem:[#allocation2 + $0x60] sm:$0xff] %vm1946_vm10, %v1911_v57  ;;  %v2893_v24 = vsel %vm4987_vm5, %v2888_v12, %v2892_v4  ;;  %v3172_v25 = vsel %vm4945_vm2, %v3170_v14, %v3171_v9  ;;  %v3175_v26 = vrot.slane %v4498_v8, 5  ;;  %v3178_v28 = vrot.slane %v4499_v1, 5  ;;  %v4502_v35 = vld [vmem:[%s4952_s30 + $0xa4] sm:$0x1]  ;;  %s4095_s9 = sshll.u32 %s201_s8, 3 }
 0x130   : > { %v4466_v30 = vcombine.low %v2883_v17, %v2893_v24  ;;  %v4540_v31 = vcombine.low %v3169_v13, %v3172_v25  ;;  %v3144_v32 = vsel %vm4945_vm2, %v3142_v19, %v3143_v15  ;;  %v4521_v52 = vrot.slane %v4485_v2, 9  ;;  %v4488_v27 = vld [vmem:[%s4952_s30 + $0x6c] sm:$0xe]  ;;  %v4489_v34 = vld [vmem:[%s4952_s30 + $0x70] sm:$0xf]  ;;  %s203_s11 = scalar_lea.vmem [#allocation3], %s4095_s9 }
 0x131   : > { %v2418_v38 = vpop.permute.xlu1 %2417  ;;  %v4536_v36 = vcombine.low %v3141_v18, %v3144_v32  ;;  %v3176_v37 = vsel %vm4945_vm2, %v4525_v22, %v3175_v26  ;;  %v3177_v39 = vrot.slane %v3175_v26, 4  ;;  %v3147_v40 = vrot.slane %v4486_v16, 5  ;;  %v4490_v41 = vld [vmem:[%s4952_s30 + $0x74] sm:$0x1]  ;;  %v4503_v20 = vld [vmem:[%s4952_s30 + $0xa8] sm:$0xe] }
 0x132   : > { %v2232_v33 = vpop.permute.xlu0 %2231  ;;  %2456 = vst.msk [vmem:[#allocation2 + $0xa0] sm:$0xff] %vm2445_vm12, %v2418_v38  ;;  %2427 = vrot.lane.b32.xlu0 %v4770_v55, %s4860_s5  ;;  %2972 = vrot.lane.b32.xlu1 %v4466_v30, %s4865_s10  ;;  %v3150_v42 = vrot.slane %v4487_v21, 5  ;;  %v4526_v44 = vrot.slane %v4500_v23, 9  ;;  %v3182_v45 = vrot.slane %v4501_v29, 5  ;;  %v3185_v46 = vrot.slane %v4502_v35, 5  ;;  %v3313_v15 = vld [vmem:[#allocation2 + $0x90] sm:$0xff] }
 0x133   : > { %2274 = vst.msk [vmem:[#allocation2 + $0x60] sm:$0xff] %vm2267_vm11, %v2232_v33  ;;  %v4504_v47 = vld [vmem:[%s4952_s30 + $0xac] sm:$0xf]  ;;  %v3179_v49 = vsel %vm4945_vm2, %v3177_v39, %v3178_v28  ;;  %v3148_v48 = vsel %vm4945_vm2, %v4521_v52, %v3147_v40  ;;  %v3149_v50 = vrot.slane %v3147_v40, 4  ;;  %v4522_v51 = vrot.slane %v4488_v27, 9  ;;  %v3305_v24 = vld [vmem:[#allocation2 + $0x50] sm:$0xff] }
 0x134   : > { %3288 = vst.msk [vmem:[#allocation2 + $0x98] sm:$0xff] %vm351_vm6, %v4540_v31  ;;  %3284 = vst.msk [vmem:[#allocation2 + $0x58] sm:$0xff] %vm351_vm6, %v4536_v36  ;;  %v4505_v53 = vld [vmem:[%s4952_s30 + $0xb0] sm:$0x1]  ;;  %v4541_v56 = vcombine.low %v3176_v37, %v3179_v49  ;;  %v3183_v58 = vsel %vm4945_vm2, %v4526_v44, %v3182_v45  ;;  %v3184_v59 = vrot.slane %v3182_v45, 4  ;;  %v3154_v60 = vrot.slane %v4489_v34, 5 }
 0x135   : > { %v4506_v61 = vld [vmem:[%s4952_s30 + $0xb4] sm:$0xe]  ;;  %v4507_v62 = vld [vmem:[%s4952_s30 + $0xb8] sm:$0xf]  ;;  %v2963_v63 = vpop.permute.xlu1 %2962  ;;  %v3151_v3 = vsel %vm4945_vm2, %v3149_v50, %v3150_v42  ;;  %v3157_v43 = vrot.slane %v4490_v41, 5  ;;  %v4527_v4 = vrot.slane %v4503_v20, 9 }
 0x136   : > { %v2410_v54 = vpop.permute.xlu0 %2409  ;;  %v3189_v5 = vrot.slane %v4504_v47, 5  ;;  %v4508_v6 = vld [vmem:[%s4952_s30 + $0xbc] sm:$0x1]  ;;  %3001 = vst.msk [vmem:[#allocation2 + $0xa0] sm:$0xff] %vm2990_vm13, %v2963_v63  ;;  %v4537_v8 = vcombine.low %v3148_v48, %v3151_v3  ;;  %v3186_v1 = vsel %vm4945_vm2, %v3184_v59, %v3185_v46  ;;  %v3155_v7 = vsel %vm4945_vm2, %v4522_v51, %v3154_v60  ;;  %v4509_v10 = vld [vmem:[%s4952_s30 + $0xc0] sm:$0xe] }
 0x137   : > { %2452 = vst.msk [vmem:[#allocation2 + $0x60] sm:$0xff] %vm2445_vm12, %v2410_v54  ;;  %v3156_v9 = vrot.slane %v3154_v60, 4  ;;  %v4510_v11 = vld [vmem:[%s4952_s30 + $0xc4] sm:$0xf]  ;;  %v4542_v57 = vcombine.low %v3183_v58, %v3186_v1  ;;  %v3192_v12 = vrot.slane %v4505_v53, 5  ;;  %v4528_v18 = vrot.slane %v4506_v61, 9 }
 0x138   : > { %3289 = vst.msk [vmem:[#allocation2 + $0xa8] sm:$0xff] %vm351_vm6, %v4541_v56  ;;  %v3190_v2 = vsel %vm4945_vm2, %v4527_v4, %v3189_v5  ;;  %v3191_v55 = vrot.slane %v3189_v5, 4  ;;  %v4511_v13 = vld [vmem:[%s4952_s30 + $0xc8] sm:$0x1]  ;;  %v4512_v14 = vld [vmem:[%s4952_s30 + $0xcc] sm:$0xe] }
 0x139   : > { %3285 = vst.msk [vmem:[#allocation2 + $0x68] sm:$0xff] %vm351_vm6, %v4537_v8  ;;  %v3158_v17 = vsel %vm4945_vm2, %v3156_v9, %v3157_v43  ;;  %v3196_v19 = vrot.slane %v4507_v62, 5  ;;  %v3199_v22 = vrot.slane %v4508_v6, 5  ;;  %v4513_v21 = vld [vmem:[%s4952_s30 + $0xd0] sm:$0xf]  ;;  %3290 = vst.msk [vmem:[#allocation2 + $0xb8] sm:$0xff] %vm351_vm6, %v4542_v57 }
 0x13a   : > { %v2955_v16 = vpop.permute.xlu0 %2954  ;;  %v4538_v25 = vcombine.low %v3155_v7, %v3158_v17  ;;  %v3193_v38 = vsel %vm4945_vm2, %v3191_v55, %v3192_v12  ;;  %v4529_v26 = vrot.slane %v4509_v10, 9  ;;  %v3203_v28 = vrot.slane %v4510_v11, 5  ;;  %v4514_v29 = vld [vmem:[%s4952_s30 + $0xd4] sm:$0x1]  ;;  %s4097_s30 = sshll.u32 %s4849_s15, 5  ;;  %s4605_s10 = sshll.u32 %s4849_s15, 7 }
 0x13b   : > { %v3314_v23 = vld [vmem:[#allocation2 + $0x98] sm:$0xff]  ;;  %2997 = vst.msk [vmem:[#allocation2 + $0x60] sm:$0xff] %vm2990_vm13, %v2955_v16  ;;  %v4543_v30 = vcombine.low %v3190_v2, %v3193_v38  ;;  %v3197_v31 = vsel %vm4945_vm2, %v4528_v18, %v3196_v19  ;;  %v3198_v32 = vrot.slane %v3196_v19, 4  ;;  %v3206_v33 = vrot.slane %v4511_v13, 5  ;;  %p214_p12 = scmp.lt.s32.totalorder %s4097_s30, 63  ;;  %s3974_s18 = sshll.u32 %s203_s11, 4  ;;  %s6251_s18 = int_to_ptr.vmem [resolvable:$true] %s3974_s18 }
 0x13c   : > { %4565 = vmatprep.mubr.msk.bf16.mxu1 %vm351_vm6, %v3314_v23  ;;  %v3306_v35 = vld [vmem:[#allocation2 + $0x58] sm:$0xff]  ;;  %3286 = vst.msk [vmem:[#allocation2 + $0x78] sm:$0xff] %vm351_vm6, %v4538_v25  ;;  %v3204_v52 = vsel %vm4945_vm2, %v4529_v26, %v3203_v28  ;;  %v3205_v27 = vrot.slane %v3203_v28, 4  ;;  %v4530_v34 = vrot.slane %v4512_v14, 9  ;;  %v3210_v36 = vrot.slane %v4513_v21, 5  ;;  %s6249_s23 = scalar_lea.hbm %s6300_s3, %s4605_s10  ;;  %s3956_s15 = scalar_lea.sflag [#allocation4], %s201_s8 }
 0x13d   : > { %3552 = vmatmul.mubr.bf16.gmra.mrb[4].mxu1 %v3313_v15  ;;  %4561 = vmatprep.mubr.msk.bf16.mxu0 %vm351_vm6, %v3306_v35  ;;  %3291 = vst.msk [vmem:[#allocation2 + $0xc8] sm:$0xff] %vm351_vm6, %v4543_v30  ;;  %v3200_v37 = vsel %vm4945_vm2, %v3198_v32, %v3199_v22  ;;  %v3213_v39 = vrot.slane %v4514_v29, 5  ;;  %v874_v40 = vpop.permute.xlu1 %873  ;;  %v3315_v48 = vld [vmem:[#allocation2 + $0xa0] sm:$0xff]  ;;  %s6315_s30 = smov (!%p214_p12, %s4097_s30), 63  ;;  %s4779_s26 = scalar_lea.vmem %s6251_s18, 128 }
 0x13e   : > { %3520 = vmatmul.mubr.bf16.gmra.mrb[20].mxu0 %v3305_v24  ;;  %v4544_v20 = vcombine.low %v3197_v31, %v3200_v37  ;;  %v3207_v42 = vsel %vm4945_vm2, %v3205_v27, %v3206_v33  ;;  %v3211_v44 = vsel %vm4945_vm2, %v4530_v34, %v3210_v36  ;;  %v3212_v45 = vrot.slane %v3210_v36, 4  ;;  %911 = vst.msk [vmem:[#allocation2 + $0xb0] sm:$0xff] %vm899_vm7, %v874_v40  ;;  %s4098_s4 = sshll.u32 %s6315_s30, 2  ;;  %p4780_p13 = scmp.ne.s32.totalorder %s6251_s18, %s4779_s26 }
 0x13f   : > { %v3316_v41 = vld [vmem:[#allocation2 + $0xa8] sm:$0xff]  ;;  %v4545_v46 = vcombine.low %v3204_v52, %v3207_v42  ;;  %s6072_s7 = scalar_lea.vmem %s6299_s2, %s4098_s4  ;;  %p4786_p2 = scmp.lt.s32.totalorder %s6251_s18, %s4784_s28 }
 0x140   : > { %4566 = vmatprep.mubr.msk.bf16.mxu1 %vm351_vm6, %v3316_v41  ;;  %v3308_v47 = vld [vmem:[#allocation2 + $0x68] sm:$0xff]  ;;  %3292 = vst.msk [vmem:[#allocation2 + $0xd8] sm:$0xff] %vm351_vm6, %v4544_v20  ;;  %v3214_v49 = vsel %vm4945_vm2, %v3212_v45, %v3213_v39  ;;  %v3318_v53 = vld [vmem:[#allocation2 + $0xb8] sm:$0xff]  ;;  %p4781_p0 = pnand %p4780_p13, %p4928_p4  ;;  %p4787_p3 = scmp.lt.s32.totalorder %s4785_s29, %s4779_s26 }
 0x141   : > { %4562 = vmatprep.mubr.msk.bf16.mxu0 %vm351_vm6, %v3308_v47  ;;  %3293 = vst.msk [vmem:[#allocation2 + $0xe8] sm:$0xff] %vm351_vm6, %v4545_v46  ;;  %v4546_v50 = vcombine.low %v3211_v44, %v3214_v49 }
 0x142   : > { %v3307_v51 = vld [vmem:[#allocation2 + $0x60] sm:$0xff]  ;;  %v1198_v54 = vpop.permute.xlu1 %1197  ;;  %p4782_p1 = pneg %p4781_p0  ;;  %p4788_p5 = por %p4787_p3, %p4786_p2 }
 0x143   : > { %v3310_v56 = vld [vmem:[#allocation2 + $0x78] sm:$0xff]  ;;  %3294 = vst.msk [vmem:[#allocation2 + $0xf8] sm:$0xff] %vm351_vm6, %v4546_v50  ;;  %v866_v58 = vpop.permute.xlu0 %865 }
 0x144   : > { %1235 = vst.msk [vmem:[#allocation2 + $0xb0] sm:$0xff] %vm1223_vm8, %v1198_v54  ;;  %v3320_v8 = vld [vmem:[#allocation2 + $0xc8] sm:$0xff]  ;;  %p4789_p6 = pnand %p4788_p5, %p4782_p1 }
 0x145   : > { %3560 = vmatmul.mubr.bf16.gmra.mrb[8].mxu1 %v3315_v48  ;;  %907 = vst.msk [vmem:[#allocation2 + $0x70] sm:$0xff] %vm899_vm7, %v866_v58 }
 0x146   : > { %3528 = vmatmul.mubr.bf16.gmra.mrb[24].mxu0 %v3307_v51  ;;  %4567 = vmatprep.mubr.msk.bf16.mxu1 %vm351_vm6, %v3318_v53  ;;  %v1376_v0 = vpop.permute.xlu1 %1375 }
 0x147   : > { %4563 = vmatprep.mubr.msk.bf16.mxu0 %vm351_vm6, %v3310_v56  ;;  %v1190_v59 = vpop.permute.xlu0 %1189  ;;  %1413 = vst.msk [vmem:[#allocation2 + $0xb0] sm:$0xff] %vm1401_vm9, %v1376_v0  ;;  %v3322_v16 = vld [vmem:[#allocation2 + $0xd8] sm:$0xff] }
 0x148   : > { %1231 = vst.msk [vmem:[#allocation2 + $0x70] sm:$0xff] %vm1223_vm8, %v1190_v59  ;;  %v3324_v25 = vld [vmem:[#allocation2 + $0xe8] sm:$0xff] }
 0x14a   : > { %v3326_v52 = vld [vmem:[#allocation2 + $0xf8] sm:$0xff] }
 0x14b   : > { %v1368_v60 = vpop.permute.xlu0 %1367 }
 0x14c   : > { %1409 = vst.msk [vmem:[#allocation2 + $0x70] sm:$0xff] %vm1401_vm9, %v1368_v60 }
 0x14d   : > { %v1921_v61 = vpop.permute.xlu1 %1920 }
 0x14e   : > { %1958 = vst.msk [vmem:[#allocation2 + $0xb0] sm:$0xff] %vm1946_vm10, %v1921_v61 }
 0x151   : > { %v1913_v62 = vpop.permute.xlu0 %1912  ;;  %v2242_v63 = vpop.permute.xlu1 %2241 }
 0x152   : > { %1954 = vst.msk [vmem:[#allocation2 + $0x70] sm:$0xff] %vm1946_vm10, %v1913_v62 }
 0x153   : > { %2279 = vst.msk [vmem:[#allocation2 + $0xb0] sm:$0xff] %vm2267_vm11, %v2242_v63 }
 0x155   : > { %v2234_v3 = vpop.permute.xlu0 %2233  ;;  %v2420_v43 = vpop.permute.xlu1 %2419 }
 0x156   : > { %2275 = vst.msk [vmem:[#allocation2 + $0x70] sm:$0xff] %vm2267_vm11, %v2234_v3 }
 0x157   : > { %2457 = vst.msk [vmem:[#allocation2 + $0xb0] sm:$0xff] %vm2445_vm12, %v2420_v43 }
 0x159   : > { %v2412_v4 = vpop.permute.xlu0 %2411  ;;  %v2965_v5 = vpop.permute.xlu1 %2964 }
 0x15a   : > { %2453 = vst.msk [vmem:[#allocation2 + $0x70] sm:$0xff] %vm2445_vm12, %v2412_v4 }
 0x15b   : > { %3002 = vst.msk [vmem:[#allocation2 + $0xb0] sm:$0xff] %vm2990_vm13, %v2965_v5 }
 0x15d   : > { %v2957_v6 = vpop.permute.xlu0 %2956 }
 0x15e   : > { %2998 = vst.msk [vmem:[#allocation2 + $0x70] sm:$0xff] %vm2990_vm13, %v2957_v6 }
 0x161   : > { %v1200_v7 = vpop.permute.xlu1 %1199 }
 0x162   : > { %v3317_v1 = vld [vmem:[#allocation2 + $0xb0] sm:$0xff] }
 0x163   : > { %3568 = vmatmul.mubr.bf16.gmra.mrb[12].mxu1 %v3317_v1  ;;  %v876_v9 = vpop.permute.xlu0 %875 }
 0x164   : > { %4568 = vmatprep.mubr.msk.bf16.mxu1 %vm351_vm6, %v3320_v8  ;;  %912 = vst.msk [vmem:[#allocation2 + $0xc0] sm:$0xff] %vm899_vm7, %v876_v9 }
 0x165   : > { %1236 = vst.msk [vmem:[#allocation2 + $0xc0] sm:$0xff] %vm1223_vm8, %v1200_v7  ;;  %v3309_v10 = vld [vmem:[#allocation2 + $0x70] sm:$0xff] }
 0x166   : > { %3536 = vmatmul.mubr.bf16.gmra.mrb[28].mxu0 %v3309_v10 }
 0x167   : > { %v1378_v11 = vpop.permute.xlu0 %1377 }
 0x168   : > { %1414 = vst.msk [vmem:[#allocation2 + $0xc0] sm:$0xff] %vm1401_vm9, %v1378_v11 }
 0x169   : > { %v1923_v57 = vpop.permute.xlu1 %1922 }
 0x16a   : > { %1959 = vst.msk [vmem:[#allocation2 + $0xc0] sm:$0xff] %vm1946_vm10, %v1923_v57 }
 0x16b   : > { %v2244_v2 = vpop.permute.xlu0 %2243 }
 0x16c   : > { %2280 = vst.msk [vmem:[#allocation2 + $0xc0] sm:$0xff] %vm2267_vm11, %v2244_v2 }
 0x16d   : > { %v2422_v55 = vpop.permute.xlu1 %2421 }
 0x16e   : > { %2458 = vst.msk [vmem:[#allocation2 + $0xc0] sm:$0xff] %vm2445_vm12, %v2422_v55 }
 0x172   : > { %v2967_v12 = vpop.permute.xlu0 %2966 }
 0x173   : > { %3003 = vst.msk [vmem:[#allocation2 + $0xc0] sm:$0xff] %vm2990_vm13, %v2967_v12 }
 0x174   : > { %v878_v13 = vpop.permute.xlu1 %877 }
 0x175   : > { %913 = vst.msk [vmem:[#allocation2 + $0xd0] sm:$0xff] %vm899_vm7, %v878_v13 }
 0x176   : > { %v1202_v14 = vpop.permute.xlu0 %1201 }
 0x177   : > { %1237 = vst.msk [vmem:[#allocation2 + $0xd0] sm:$0xff] %vm1223_vm8, %v1202_v14 }
 0x178   : > { %v1380_v15 = vpop.permute.xlu1 %1379 }
 0x179   : > { %1415 = vst.msk [vmem:[#allocation2 + $0xd0] sm:$0xff] %vm1401_vm9, %v1380_v15 }
 0x17a   : > { %v3319_v17 = vld [vmem:[#allocation2 + $0xc0] sm:$0xff] }
 0x17b   : > { %3576 = vmatmul.mubr.bf16.gmra.mrb[16].mxu1 %v3319_v17 }
 0x17c   : > { %v1925_v18 = vpop.permute.xlu0 %1924  ;;  %v2246_v19 = vpop.permute.xlu1 %2245  ;;  %4569 = vmatprep.mubr.msk.bf16.mxu1 %vm351_vm6, %v3322_v16 }
 0x17d   : > { %1960 = vst.msk [vmem:[#allocation2 + $0xd0] sm:$0xff] %vm1946_vm10, %v1925_v18 }
 0x17e   : > { %2281 = vst.msk [vmem:[#allocation2 + $0xd0] sm:$0xff] %vm2267_vm11, %v2246_v19 }
 0x180   : > { %v2424_v22 = vpop.permute.xlu0 %2423 }
 0x181   : > { %2459 = vst.msk [vmem:[#allocation2 + $0xd0] sm:$0xff] %vm2445_vm12, %v2424_v22  ;;  %v2969_v21 = vpop.permute.xlu1 %2968 }
 0x182   : > { %3004 = vst.msk [vmem:[#allocation2 + $0xd0] sm:$0xff] %vm2990_vm13, %v2969_v21 }
 0x185   : > { %v1204_v23 = vpop.permute.xlu1 %1203 }
 0x186   : > { %v880_v24 = vpop.permute.xlu0 %879 }
 0x187   : > { %914 = vst.msk [vmem:[#allocation2 + $0xe0] sm:$0xff] %vm899_vm7, %v880_v24 }
 0x188   : > { %1238 = vst.msk [vmem:[#allocation2 + $0xe0] sm:$0xff] %vm1223_vm8, %v1204_v23 }
 0x189   : > { %v3321_v38 = vld [vmem:[#allocation2 + $0xd0] sm:$0xff] }
 0x18a   : > { %v1382_v26 = vpop.permute.xlu0 %1381  ;;  %3584 = vmatmul.mubr.bf16.gmra.mrb[20].mxu1 %v3321_v38 }
 0x18b   : > { %1416 = vst.msk [vmem:[#allocation2 + $0xe0] sm:$0xff] %vm1401_vm9, %v1382_v26  ;;  %4570 = vmatprep.mubr.msk.bf16.mxu1 %vm351_vm6, %v3324_v25 }
 0x18e   : > { %v1927_v28 = vpop.permute.xlu1 %1926 }
 0x18f   : > { %1961 = vst.msk [vmem:[#allocation2 + $0xe0] sm:$0xff] %vm1946_vm10, %v1927_v28  ;;  %v2248_v29 = vpop.permute.xlu0 %2247 }
 0x190   : > { %2282 = vst.msk [vmem:[#allocation2 + $0xe0] sm:$0xff] %vm2267_vm11, %v2248_v29 }
 0x192   : > { %v2426_v35 = vpop.permute.xlu1 %2425 }
 0x193   : > { %2460 = vst.msk [vmem:[#allocation2 + $0xe0] sm:$0xff] %vm2445_vm12, %v2426_v35 }
 0x195   : > { %v2971_v30 = vpop.permute.xlu0 %2970 }
 0x196   : > { %3005 = vst.msk [vmem:[#allocation2 + $0xe0] sm:$0xff] %vm2990_vm13, %v2971_v30 }
 0x198   : > { %v882_v31 = vpop.permute.xlu1 %881 }
 0x199   : > { %915 = vst.msk [vmem:[#allocation2 + $0xf0] sm:$0xff] %vm899_vm7, %v882_v31  ;;  %v1206_v32 = vpop.permute.xlu0 %1205 }
 0x19a   : > { %1239 = vst.msk [vmem:[#allocation2 + $0xf0] sm:$0xff] %vm1223_vm8, %v1206_v32 }
 0x19c   : > { %v1384_v33 = vpop.permute.xlu1 %1383 }
 0x19d   : > { %1417 = vst.msk [vmem:[#allocation2 + $0xf0] sm:$0xff] %vm1401_vm9, %v1384_v33  ;;  %v3323_v27 = vld [vmem:[#allocation2 + $0xe0] sm:$0xff] }
 0x19e   : > { %3592 = vmatmul.mubr.bf16.gmra.mrb[24].mxu1 %v3323_v27 }
 0x19f   : > { %4571 = vmatprep.mubr.msk.bf16.mxu1 %vm351_vm6, %v3326_v52 }
 0x1a0   : > { %v1929_v34 = vpop.permute.xlu0 %1928  ;;  %v2250_v36 = vpop.permute.xlu1 %2249 }
 0x1a1   : > { %1962 = vst.msk [vmem:[#allocation2 + $0xf0] sm:$0xff] %vm1946_vm10, %v1929_v34 }
 0x1a2   : > { %2283 = vst.msk [vmem:[#allocation2 + $0xf0] sm:$0xff] %vm2267_vm11, %v2250_v36 }
 0x1a4   : > { %v2428_v37 = vpop.permute.xlu0 %2427  ;;  %v2973_v39 = vpop.permute.xlu1 %2972 }
 0x1a5   : > { %2461 = vst.msk [vmem:[#allocation2 + $0xf0] sm:$0xff] %vm2445_vm12, %v2428_v37 }
 0x1a6   : > { %3006 = vst.msk [vmem:[#allocation2 + $0xf0] sm:$0xff] %vm2990_vm13, %v2973_v39 }
 0x1a7   : > { %v3481_v40 = vpop.f32.mrb[0].mxu0 }
 0x1a8   : > { %v4608_v41 = vpack.c.bf16 %v3481_v40, %v3481_v40  ;;  %v3839_v20 = vmul.f32 %v3481_v40, %v3481_v40  ;;  %v3483_v42 = vpop.f32.mrb[1].mxu0  ;;  %v3770_v45 = vsel %vm3769_vm15, %v3481_v40, 0.0 }
 0x1a9   : > { %v3484_v44 = vpop.f32.mrb[2].mxu0 }
 0x1aa   : > { %3737 = vst.msk [vmem:[%s6072_s7] sm:$0xf] %vm3736_vm14, %v4608_v41  ;;  %v4609_v46 = vpack.c.bf16 %v3484_v44, %v3484_v44  ;;  %v3771_v47 = vsel %vm3769_vm15, %v3484_v44, 0.0  ;;  %v3840_v49 = vmul.f32 %v3484_v44, %v3484_v44  ;;  %v3486_v48 = vpop.f32.mrb[3].mxu0  ;;  %v3871_v51 = vsel %vm3769_vm15, %v3839_v20, 0.0 }
 0x1ab   : > { %v3772_v50 = vadd.f32 %v3771_v47, %v3770_v45 }
 0x1ac   : > { %3738 = vst.msk [vmem:[%s6072_s7 + $0x4] sm:$0xf] %vm3736_vm14, %v4609_v46  ;;  %v3872_v53 = vsel %vm3769_vm15, %v3840_v49, 0.0 }
 0x1ad   : > { %v3325_v54 = vld [vmem:[#allocation2 + $0xf0] sm:$0xff]  ;;  %v3873_v56 = vadd.f32 %v3872_v53, %v3871_v51 }
 0x1ae   : > { %3600 = vmatmul.mubr.bf16.gmra.mrb[28].mxu1 %v3325_v54 }
 0x1b0   : > { %v3489_v58 = vpop.f32.mrb[4].mxu0 }
 0x1b1   : > { %v4610_v0 = vpack.c.bf16 %v3489_v58, %v3489_v58  ;;  %v3773_v59 = vsel %vm3769_vm15, %v3489_v58, 0.0  ;;  %v3841_v60 = vmul.f32 %v3489_v58, %v3489_v58  ;;  %v3491_v61 = vpop.f32.mrb[5].mxu0 }
 0x1b2   : > { %v3774_v62 = vadd.f32 %v3773_v59, %v3772_v50  ;;  %v3492_v63 = vpop.f32.mrb[6].mxu0 }
 0x1b3   : > { %3739 = vst.msk [vmem:[%s6072_s7 + $0x8] sm:$0xf] %vm3736_vm14, %v4610_v0  ;;  %v3874_v3 = vsel %vm3769_vm15, %v3841_v60, 0.0  ;;  %v4611_v43 = vpack.c.bf16 %v3492_v63, %v3492_v63  ;;  %v3775_v4 = vsel %vm3769_vm15, %v3492_v63, 0.0  ;;  %v3842_v5 = vmul.f32 %v3492_v63, %v3492_v63  ;;  %v3494_v6 = vpop.f32.mrb[7].mxu0 }
 0x1b4   : > { %v3875_v8 = vadd.f32 %v3874_v3, %v3873_v56  ;;  %v3776_v1 = vadd.f32 %v3775_v4, %v3774_v62 }
 0x1b5   : > { %3740 = vst.msk [vmem:[%s6072_s7 + $0xc] sm:$0xf] %vm3736_vm14, %v4611_v43  ;;  %v3876_v7 = vsel %vm3769_vm15, %v3842_v5, 0.0 }
 0x1b6   : > { %v3877_v9 = vadd.f32 %v3876_v7, %v3875_v8 }
 0x1c2   : > { %v3497_v10 = vpop.f32.mrb[8].mxu0 }
 0x1c3   : > { %v4612_v11 = vpack.c.bf16 %v3497_v10, %v3497_v10  ;;  %v3777_v57 = vsel %vm3769_vm15, %v3497_v10, 0.0  ;;  %v3843_v2 = vmul.f32 %v3497_v10, %v3497_v10  ;;  %v3499_v55 = vpop.f32.mrb[9].mxu0 }
 0x1c4   : > { %v3778_v12 = vadd.f32 %v3777_v57, %v3776_v1  ;;  %v3500_v13 = vpop.f32.mrb[10].mxu0 }
 0x1c5   : > { %3741 = vst.msk [vmem:[%s6072_s7 + $0x10] sm:$0xf] %vm3736_vm14, %v4612_v11  ;;  %v3878_v14 = vsel %vm3769_vm15, %v3843_v2, 0.0  ;;  %v4613_v15 = vpack.c.bf16 %v3500_v13, %v3500_v13  ;;  %v3779_v16 = vsel %vm3769_vm15, %v3500_v13, 0.0  ;;  %v3844_v17 = vmul.f32 %v3500_v13, %v3500_v13  ;;  %v3502_v18 = vpop.f32.mrb[11].mxu0 }
 0x1c6   : > { %v3879_v19 = vadd.f32 %v3878_v14, %v3877_v9  ;;  %v3780_v22 = vadd.f32 %v3779_v16, %v3778_v12 }
 0x1c7   : > { %3742 = vst.msk [vmem:[%s6072_s7 + $0x14] sm:$0xf] %vm3736_vm14, %v4613_v15  ;;  %v3880_v21 = vsel %vm3769_vm15, %v3844_v17, 0.0 }
 0x1c8   : > { %v3881_v23 = vadd.f32 %v3880_v21, %v3879_v19 }
 0x1d3   : > { %v3505_v24 = vpop.f32.mrb[12].mxu0 }
 0x1d4   : > { %v4614_v25 = vpack.c.bf16 %v3505_v24, %v3505_v24  ;;  %v3781_v38 = vsel %vm3769_vm15, %v3505_v24, 0.0  ;;  %v3845_v26 = vmul.f32 %v3505_v24, %v3505_v24  ;;  %v3507_v28 = vpop.f32.mrb[13].mxu0 }
 0x1d5   : > { %v3782_v29 = vadd.f32 %v3781_v38, %v3780_v22  ;;  %v3508_v35 = vpop.f32.mrb[14].mxu0 }
 0x1d6   : > { %3743 = vst.msk [vmem:[%s6072_s7 + $0x18] sm:$0xf] %vm3736_vm14, %v4614_v25  ;;  %v3882_v30 = vsel %vm3769_vm15, %v3845_v26, 0.0  ;;  %v4615_v31 = vpack.c.bf16 %v3508_v35, %v3508_v35  ;;  %v3783_v32 = vsel %vm3769_vm15, %v3508_v35, 0.0  ;;  %v3846_v33 = vmul.f32 %v3508_v35, %v3508_v35  ;;  %v3510_v52 = vpop.f32.mrb[15].mxu0 }
 0x1d7   : > { %v3883_v27 = vadd.f32 %v3882_v30, %v3881_v23  ;;  %v3784_v34 = vadd.f32 %v3783_v32, %v3782_v29 }
 0x1d8   : > { %3744 = vst.msk [vmem:[%s6072_s7 + $0x1c] sm:$0xf] %vm3736_vm14, %v4615_v31  ;;  %v3884_v36 = vsel %vm3769_vm15, %v3846_v33, 0.0 }
 0x1d9   : > { %v3885_v37 = vadd.f32 %v3884_v36, %v3883_v27 }
 0x1f0   : > { %v6106_v39 = vpop.f32.mrb[0].mxu1 }
 0x1f1   : > { %v4624_v40 = vpack.c.bf16 %v6106_v39, %v6106_v39  ;;  %v3547_v41 = vpop.f32.mrb[1].mxu1 }
 0x1f2   : > { %v6110_v20 = vpop.f32.mrb[2].mxu1 }
 0x1f3   : > { %3753 = vst.msk [vmem:[%s6072_s7 + $0x40] sm:$0xf] %vm3736_vm14, %v4624_v40  ;;  %v4625_v42 = vpack.c.bf16 %v6110_v20, %v6110_v20  ;;  %v3550_v44 = vpop.f32.mrb[3].mxu1 }
 0x1f5   : > { %3754 = vst.msk [vmem:[%s6072_s7 + $0x44] sm:$0xf] %vm3736_vm14, %v4625_v42 }
 0x1f6   : > { %v3513_v45 = vpop.f32.mrb[16].mxu0 }
 0x1f7   : > { %v4616_v46 = vpack.c.bf16 %v3513_v45, %v3513_v45  ;;  %v3785_v47 = vsel %vm3769_vm15, %v3513_v45, 0.0  ;;  %v3847_v49 = vmul.f32 %v3513_v45, %v3513_v45  ;;  %v3515_v48 = vpop.f32.mrb[17].mxu0 }
 0x1f8   : > { %v3786_v50 = vadd.f32 %v3785_v47, %v3784_v34  ;;  %v3516_v51 = vpop.f32.mrb[18].mxu0 }
 0x1f9   : > { %3745 = vst.msk [vmem:[%s6072_s7 + $0x20] sm:$0xf] %vm3736_vm14, %v4616_v46  ;;  %v3886_v53 = vsel %vm3769_vm15, %v3847_v49, 0.0  ;;  %v4617_v54 = vpack.c.bf16 %v3516_v51, %v3516_v51  ;;  %v3787_v56 = vsel %vm3769_vm15, %v3516_v51, 0.0  ;;  %v3848_v58 = vmul.f32 %v3516_v51, %v3516_v51  ;;  %v3518_v0 = vpop.f32.mrb[19].mxu0 }
 0x1fa   : > { %v3887_v59 = vadd.f32 %v3886_v53, %v3885_v37  ;;  %v3788_v60 = vadd.f32 %v3787_v56, %v3786_v50  ;;  %v3855_v56 = vmul.f32 %v6106_v39, %v6106_v39 }
 0x1fb   : > { %3746 = vst.msk [vmem:[%s6072_s7 + $0x24] sm:$0xf] %vm3736_vm14, %v4617_v54  ;;  %v3888_v61 = vsel %vm3769_vm15, %v3848_v58, 0.0 }
 0x1fc   : > { %v3889_v62 = vadd.f32 %v3888_v61, %v3887_v59 }
 0x210   : > { %v6126_v63 = vpop.f32.mrb[4].mxu1 }
 0x211   : > { %v4626_v3 = vpack.c.bf16 %v6126_v63, %v6126_v63  ;;  %v3555_v43 = vpop.f32.mrb[5].mxu1  ;;  %v3521_v4 = vpop.f32.mrb[20].mxu0 }
 0x212   : > { %v4618_v5 = vpack.c.bf16 %v3521_v4, %v3521_v4  ;;  %v3789_v6 = vsel %vm3769_vm15, %v3521_v4, 0.0  ;;  %v3849_v8 = vmul.f32 %v3521_v4, %v3521_v4  ;;  %v6131_v1 = vpop.f32.mrb[6].mxu1  ;;  %v3523_v7 = vpop.f32.mrb[21].mxu0 }
 0x213   : > { %3755 = vst.msk [vmem:[%s6072_s7 + $0x48] sm:$0xf] %vm3736_vm14, %v4626_v3  ;;  %v3790_v9 = vadd.f32 %v3789_v6, %v3788_v60  ;;  %v4627_v10 = vpack.c.bf16 %v6131_v1, %v6131_v1  ;;  %v3558_v11 = vpop.f32.mrb[7].mxu1  ;;  %v3524_v57 = vpop.f32.mrb[22].mxu0  ;;  %v3856_v6 = vmul.f32 %v6110_v20, %v6110_v20 }
 0x214   : > { %3747 = vst.msk [vmem:[%s6072_s7 + $0x28] sm:$0xf] %vm3736_vm14, %v4618_v5  ;;  %v3890_v2 = vsel %vm3769_vm15, %v3849_v8, 0.0  ;;  %v4619_v55 = vpack.c.bf16 %v3524_v57, %v3524_v57  ;;  %v3791_v12 = vsel %vm3769_vm15, %v3524_v57, 0.0  ;;  %v3526_v13 = vpop.f32.mrb[23].mxu0  ;;  %v3850_v16 = vmul.f32 %v3524_v57, %v3524_v57 }
 0x215   : > { %v3891_v14 = vadd.f32 %v3890_v2, %v3889_v62  ;;  %3756 = vst.msk [vmem:[%s6072_s7 + $0x4c] sm:$0xf] %vm3736_vm14, %v4627_v10  ;;  %v3792_v15 = vadd.f32 %v3791_v12, %v3790_v9  ;;  %v3801_v5 = vsel %vm3769_vm15, %v6106_v39, 0.0  ;;  %v3902_v10 = vsel %vm3769_vm15, %v3855_v56, 0.0 }
 0x216   : > { %3748 = vst.msk [vmem:[%s6072_s7 + $0x2c] sm:$0xf] %vm3736_vm14, %v4619_v55  ;;  %v3892_v17 = vsel %vm3769_vm15, %v3850_v16, 0.0  ;;  %v3803_v11 = vsel %vm3769_vm15, %v6110_v20, 0.0  ;;  %v3857_v57 = vmul.f32 %v6126_v63, %v6126_v63  ;;  %v3904_v39 = vsel %vm3769_vm15, %v3856_v6, 0.0 }
 0x217   : > { %v3893_v18 = vadd.f32 %v3892_v17, %v3891_v14  ;;  %v3805_v12 = vsel %vm3769_vm15, %v6126_v63, 0.0  ;;  %v3858_v13 = vmul.f32 %v6131_v1, %v6131_v1  ;;  %v3807_v20 = vsel %vm3769_vm15, %v6131_v1, 0.0 }
 0x218   : > { %v6146_v19 = vpop.f32.mrb[8].mxu1  ;;  %v3906_v16 = vsel %vm3769_vm15, %v3857_v57, 0.0 }
 0x219   : > { %v4628_v22 = vpack.c.bf16 %v6146_v19, %v6146_v19  ;;  %v3563_v21 = vpop.f32.mrb[9].mxu1  ;;  %v3529_v23 = vpop.f32.mrb[24].mxu0  ;;  %v3859_v17 = vmul.f32 %v6146_v19, %v6146_v19  ;;  %v3809_v63 = vsel %vm3769_vm15, %v6146_v19, 0.0 }
 0x21a   : > { %v4620_v24 = vpack.c.bf16 %v3529_v23, %v3529_v23  ;;  %v3793_v25 = vsel %vm3769_vm15, %v3529_v23, 0.0  ;;  %v3851_v38 = vmul.f32 %v3529_v23, %v3529_v23  ;;  %v6151_v26 = vpop.f32.mrb[10].mxu1  ;;  %v3531_v28 = vpop.f32.mrb[25].mxu0  ;;  %v3908_v21 = vsel %vm3769_vm15, %v3858_v13, 0.0 }
 0x21b   : > { %3757 = vst.msk [vmem:[%s6072_s7 + $0x50] sm:$0xf] %vm3736_vm14, %v4628_v22  ;;  %v3794_v29 = vadd.f32 %v3793_v25, %v3792_v15  ;;  %v4629_v35 = vpack.c.bf16 %v6151_v26, %v6151_v26  ;;  %v3566_v30 = vpop.f32.mrb[11].mxu1  ;;  %v3532_v31 = vpop.f32.mrb[26].mxu0  ;;  %v3860_v23 = vmul.f32 %v6151_v26, %v6151_v26  ;;  %v3811_v1 = vsel %vm3769_vm15, %v6151_v26, 0.0 }
 0x21c   : > { %3749 = vst.msk [vmem:[%s6072_s7 + $0x30] sm:$0xf] %vm3736_vm14, %v4620_v24  ;;  %v3894_v32 = vsel %vm3769_vm15, %v3851_v38, 0.0  ;;  %v4621_v33 = vpack.c.bf16 %v3532_v31, %v3532_v31  ;;  %v3795_v52 = vsel %vm3769_vm15, %v3532_v31, 0.0  ;;  %v3534_v27 = vpop.f32.mrb[27].mxu0  ;;  %v3852_v37 = vmul.f32 %v3532_v31, %v3532_v31 }
 0x21d   : > { %v3895_v34 = vadd.f32 %v3894_v32, %v3893_v18  ;;  %3758 = vst.msk [vmem:[%s6072_s7 + $0x54] sm:$0xf] %vm3736_vm14, %v4629_v35  ;;  %v3796_v36 = vadd.f32 %v3795_v52, %v3794_v29  ;;  %v3910_v38 = vsel %vm3769_vm15, %v3859_v17, 0.0  ;;  %v3912_v30 = vsel %vm3769_vm15, %v3860_v23, 0.0 }
 0x21e   : > { %3750 = vst.msk [vmem:[%s6072_s7 + $0x34] sm:$0xf] %vm3736_vm14, %v4621_v33  ;;  %v3896_v40 = vsel %vm3769_vm15, %v3852_v37, 0.0 }
 0x21f   : > { %v3897_v41 = vadd.f32 %v3896_v40, %v3895_v34 }
 0x236   : > { %v3569_v42 = vpop.f32.mrb[12].mxu1 }
 0x237   : > { %v4630_v44 = vpack.c.bf16 %v3569_v42, %v3569_v42  ;;  %v3571_v45 = vpop.f32.mrb[13].mxu1  ;;  %v3861_v28 = vmul.f32 %v3569_v42, %v3569_v42  ;;  %v3813_v31 = vsel %vm3769_vm15, %v3569_v42, 0.0 }
 0x238   : > { %v3572_v46 = vpop.f32.mrb[14].mxu1 }
 0x239   : > { %3759 = vst.msk [vmem:[%s6072_s7 + $0x58] sm:$0xf] %vm3736_vm14, %v4630_v44  ;;  %v4631_v47 = vpack.c.bf16 %v3572_v46, %v3572_v46  ;;  %v3574_v49 = vpop.f32.mrb[15].mxu1  ;;  %v3537_v48 = vpop.f32.mrb[28].mxu0  ;;  %v3862_v32 = vmul.f32 %v3572_v46, %v3572_v46  ;;  %v3914_v52 = vsel %vm3769_vm15, %v3861_v28, 0.0  ;;  %v3815_v27 = vsel %vm3769_vm15, %v3572_v46, 0.0 }
 0x23a   : > { %v4622_v50 = vpack.c.bf16 %v3537_v48, %v3537_v48  ;;  %v3797_v51 = vsel %vm3769_vm15, %v3537_v48, 0.0  ;;  %v3853_v53 = vmul.f32 %v3537_v48, %v3537_v48  ;;  %v3539_v54 = vpop.f32.mrb[29].mxu0 }
 0x23b   : > { %3760 = vst.msk [vmem:[%s6072_s7 + $0x5c] sm:$0xf] %vm3736_vm14, %v4631_v47  ;;  %v3798_v58 = vadd.f32 %v3797_v51, %v3796_v36  ;;  %v3540_v0 = vpop.f32.mrb[30].mxu0  ;;  %v3916_v37 = vsel %vm3769_vm15, %v3862_v32, 0.0 }
 0x23c   : > { %3751 = vst.msk [vmem:[%s6072_s7 + $0x38] sm:$0xf] %vm3736_vm14, %v4622_v50  ;;  %v3898_v59 = vsel %vm3769_vm15, %v3853_v53, 0.0  ;;  %v4623_v60 = vpack.c.bf16 %v3540_v0, %v3540_v0  ;;  %v3799_v61 = vsel %vm3769_vm15, %v3540_v0, 0.0  ;;  %v3854_v62 = vmul.f32 %v3540_v0, %v3540_v0  ;;  %v3542_v3 = vpop.f32.mrb[31].mxu0 }
 0x23d   : > { %v3899_v43 = vadd.f32 %v3898_v59, %v3897_v41  ;;  %v3800_v4 = vadd.f32 %v3799_v61, %v3798_v58 }
 0x23e   : > { %3752 = vst.msk [vmem:[%s6072_s7 + $0x3c] sm:$0xf] %vm3736_vm14, %v4623_v60  ;;  %v3900_v8 = vsel %vm3769_vm15, %v3854_v62, 0.0 }
 0x23f   : > { %v3802_v7 = vadd.f32 %v3801_v5, %v3800_v4  ;;  %v3901_v9 = vadd.f32 %v3900_v8, %v3899_v43 }
 0x241   : > { %v3804_v2 = vadd.f32 %v3803_v11, %v3802_v7  ;;  %v3903_v55 = vadd.f32 %v3902_v10, %v3901_v9 }
 0x243   : > { %v3806_v14 = vadd.f32 %v3805_v12, %v3804_v2  ;;  %v3905_v15 = vadd.f32 %v3904_v39, %v3903_v55 }
 0x245   : > { %v3808_v18 = vadd.f32 %v3807_v20, %v3806_v14  ;;  %v3907_v22 = vadd.f32 %v3906_v16, %v3905_v15 }
 0x247   : > { %v3909_v24 = vadd.f32 %v3908_v21, %v3907_v22  ;;  %v3810_v25 = vadd.f32 %v3809_v63, %v3808_v18 }
 0x249   : > { %v3812_v29 = vadd.f32 %v3811_v1, %v3810_v25  ;;  %v3911_v35 = vadd.f32 %v3910_v38, %v3909_v24 }
 0x24b   : > { %v3814_v19 = vadd.f32 %v3813_v31, %v3812_v29  ;;  %v3913_v33 = vadd.f32 %v3912_v30, %v3911_v35 }
 0x24d   : > { %v3816_v34 = vadd.f32 %v3815_v27, %v3814_v19  ;;  %v3915_v36 = vadd.f32 %v3914_v52, %v3913_v33 }
 0x24e   : > { %v3577_v26 = vpop.f32.mrb[16].mxu1 }
 0x24f   : > { %v4632_v40 = vpack.c.bf16 %v3577_v26, %v3577_v26  ;;  %v3817_v41 = vsel %vm3769_vm15, %v3577_v26, 0.0  ;;  %v3863_v44 = vmul.f32 %v3577_v26, %v3577_v26  ;;  %v3917_v45 = vadd.f32 %v3916_v37, %v3915_v36  ;;  %v3579_v42 = vpop.f32.mrb[17].mxu1 }
 0x250   : > { %v3818_v47 = vadd.f32 %v3817_v41, %v3816_v34  ;;  %v3580_v49 = vpop.f32.mrb[18].mxu1 }
 0x251   : > { %3761 = vst.msk [vmem:[%s6072_s7 + $0x60] sm:$0xf] %vm3736_vm14, %v4632_v40  ;;  %v3918_v48 = vsel %vm3769_vm15, %v3863_v44, 0.0  ;;  %v4633_v50 = vpack.c.bf16 %v3580_v49, %v3580_v49  ;;  %v3819_v46 = vsel %vm3769_vm15, %v3580_v49, 0.0  ;;  %v3864_v51 = vmul.f32 %v3580_v49, %v3580_v49  ;;  %v3582_v53 = vpop.f32.mrb[19].mxu1 }
 0x252   : > { %v3919_v54 = vadd.f32 %v3918_v48, %v3917_v45  ;;  %v3820_v56 = vadd.f32 %v3819_v46, %v3818_v47  ;;  %v3940_v45 = vlaneseq }
 0x253   : > { %3762 = vst.msk [vmem:[%s6072_s7 + $0x64] sm:$0xf] %vm3736_vm14, %v4633_v50  ;;  %v3920_v58 = vsel %vm3769_vm15, %v3864_v51, 0.0 }
 0x254   : > { %v3921_v0 = vadd.f32 %v3920_v58, %v3919_v54  ;;  %v3941_v50 = vshrl.u32 %v3940_v45, 7 }
 0x256   : > { %vm3943_vm0 = vcmp.eq.s32.totalorder %v3941_v50, 1  ;;  %vm3942_vm1 = vcmp.eq.s32.totalorder %v3941_v50, 0 }
 0x25d   : > { %v3585_v59 = vpop.f32.mrb[20].mxu1 }
 0x25e   : > { %v4634_v60 = vpack.c.bf16 %v3585_v59, %v3585_v59  ;;  %v3821_v61 = vsel %vm3769_vm15, %v3585_v59, 0.0  ;;  %v3865_v62 = vmul.f32 %v3585_v59, %v3585_v59  ;;  %v3587_v3 = vpop.f32.mrb[21].mxu1 }
 0x25f   : > { %v3822_v43 = vadd.f32 %v3821_v61, %v3820_v56  ;;  %v3588_v4 = vpop.f32.mrb[22].mxu1 }
 0x260   : > { %3763 = vst.msk [vmem:[%s6072_s7 + $0x68] sm:$0xf] %vm3736_vm14, %v4634_v60  ;;  %v3922_v5 = vsel %vm3769_vm15, %v3865_v62, 0.0  ;;  %v4635_v6 = vpack.c.bf16 %v3588_v4, %v3588_v4  ;;  %v3823_v8 = vsel %vm3769_vm15, %v3588_v4, 0.0  ;;  %v3866_v7 = vmul.f32 %v3588_v4, %v3588_v4  ;;  %v3590_v9 = vpop.f32.mrb[23].mxu1 }
 0x261   : > { %v3923_v10 = vadd.f32 %v3922_v5, %v3921_v0  ;;  %v3824_v11 = vadd.f32 %v3823_v8, %v3822_v43 }
 0x262   : > { %3764 = vst.msk [vmem:[%s6072_s7 + $0x6c] sm:$0xf] %vm3736_vm14, %v4635_v6  ;;  %v3924_v57 = vsel %vm3769_vm15, %v3866_v7, 0.0 }
 0x263   : > { %v3925_v2 = vadd.f32 %v3924_v57, %v3923_v10 }
 0x271   : > { %v3593_v55 = vpop.f32.mrb[24].mxu1 }
 0x272   : > { %v4636_v39 = vpack.c.bf16 %v3593_v55, %v3593_v55  ;;  %v3825_v12 = vsel %vm3769_vm15, %v3593_v55, 0.0  ;;  %v3867_v13 = vmul.f32 %v3593_v55, %v3593_v55  ;;  %v3595_v14 = vpop.f32.mrb[25].mxu1 }
 0x273   : > { %v3826_v15 = vadd.f32 %v3825_v12, %v3824_v11  ;;  %v3596_v16 = vpop.f32.mrb[26].mxu1 }
 0x274   : > { %3765 = vst.msk [vmem:[%s6072_s7 + $0x70] sm:$0xf] %vm3736_vm14, %v4636_v39  ;;  %v3926_v20 = vsel %vm3769_vm15, %v3867_v13, 0.0  ;;  %v4637_v17 = vpack.c.bf16 %v3596_v16, %v3596_v16  ;;  %v3827_v18 = vsel %vm3769_vm15, %v3596_v16, 0.0  ;;  %v3868_v22 = vmul.f32 %v3596_v16, %v3596_v16  ;;  %v3598_v21 = vpop.f32.mrb[27].mxu1 }
 0x275   : > { %v3927_v63 = vadd.f32 %v3926_v20, %v3925_v2  ;;  %v3828_v23 = vadd.f32 %v3827_v18, %v3826_v15 }
 0x276   : > { %3766 = vst.msk [vmem:[%s6072_s7 + $0x74] sm:$0xf] %vm3736_vm14, %v4637_v17  ;;  %v3928_v24 = vsel %vm3769_vm15, %v3868_v22, 0.0 }
 0x277   : > { %v3929_v25 = vadd.f32 %v3928_v24, %v3927_v63 }
 0x281   : > { %v3601_v38 = vpop.f32.mrb[28].mxu1 }
 0x282   : > { %v4638_v1 = vpack.c.bf16 %v3601_v38, %v3601_v38  ;;  %v3829_v28 = vsel %vm3769_vm15, %v3601_v38, 0.0  ;;  %v3869_v29 = vmul.f32 %v3601_v38, %v3601_v38  ;;  %v3603_v35 = vpop.f32.mrb[29].mxu1 }
 0x283   : > { %v3830_v30 = vadd.f32 %v3829_v28, %v3828_v23  ;;  %v3604_v31 = vpop.f32.mrb[30].mxu1 }
 0x284   : > { %3767 = vst.msk [vmem:[%s6072_s7 + $0x78] sm:$0xf] %vm3736_vm14, %v4638_v1  ;;  %v3930_v32 = vsel %vm3769_vm15, %v3869_v29, 0.0  ;;  %v4639_v19 = vpack.c.bf16 %v3604_v31, %v3604_v31  ;;  %v3831_v33 = vsel %vm3769_vm15, %v3604_v31, 0.0  ;;  %v3870_v52 = vmul.f32 %v3604_v31, %v3604_v31  ;;  %v3606_v27 = vpop.f32.mrb[31].mxu1 }
 0x285   : > { %v3931_v34 = vadd.f32 %v3930_v32, %v3929_v25  ;;  %v3832_v36 = vadd.f32 %v3831_v33, %v3830_v30 }
 0x286   : > { %3768 = vst.msk [vmem:[%s6072_s7 + $0x7c] sm:$0xf] %vm3736_vm14, %v4639_v19  ;;  %v3932_v37 = vsel %vm3769_vm15, %v3870_v52, 0.0 }
 0x287   : > { %v3833_v26 = vrot.slane %v3832_v36, 4  ;;  %v3933_v40 = vadd.f32 %v3932_v37, %v3931_v34 }
 0x289   : > { %v3834_v41 = vadd.f32 %v3833_v26, %v3832_v36  ;;  %v3934_v44 = vrot.slane %v3933_v40, 4 }
 0x28b   : > { %v3835_v42 = vrot.slane %v3834_v41, 2  ;;  %v3935_v47 = vadd.f32 %v3934_v44, %v3933_v40 }
 0x28d   : > { %v3836_v49 = vadd.f32 %v3835_v42, %v3834_v41  ;;  %v3936_v48 = vrot.slane %v3935_v47, 2 }
 0x28f   : > { %v3937_v46 = vadd.f32 %v3936_v48, %v3935_v47  ;;  %v3837_v51 = vrot.slane %v3836_v49, 1 }
 0x291   : > { %v3938_v53 = vrot.slane %v3937_v46, 1  ;;  %v3838_v56 = vadd.f32 %v3837_v51, %v3836_v49 }
 0x293   : > { %v3939_v54 = vadd.f32 %v3938_v53, %v3937_v46 }
 0x295   : > { %v3944_v58 = vsel %vm3943_vm0, %v3939_v54, 0.0 }
 0x296   : > { %v3945_v0 = vsel %vm3942_vm1, %v3838_v56, %v3944_v58 }
 0x297   : > { %3946 = vst.msk [vmem:[%s203_s11] sm:$0xff] %vm3769_vm15, %v3945_v0 }
 0x298   : > { %4792 = shalt.err (!%p4789_p6)
}
 0x299   : > { %s4793_s30 = scalar_lea.hbm %s6249_s23, 128  ;;  %s4797_s6 = scalar_lea.hbm %s6300_s3, 256 }
 0x29a   : > { %p4794_p7 = scmp.ne.s32.totalorder %s6249_s23, %s4793_s30  ;;  %p4798_p11 = scmp.lt.u32.totalorder %s6249_s23, %s6300_s3 }
 0x29b   : > { %p4799_p12 = scmp.lt.u32.totalorder %s4797_s6, %s4793_s30  ;;  %p4801_p0 = scmp.lt.u32.totalorder %s4793_s30, %s6249_s23 }
 0x29c   : > { %p4795_p9 = pnand %p4794_p7, %p4928_p4 }
 0x29d   : > { %p4800_p13 = por %p4799_p12, %p4798_p11 }
 0x29e   : > { %p4796_p10 = pneg %p4795_p9 }
 0x29f   : > { %p4802_p1 = por %p4801_p0, %p4800_p13 }
 0x2a1   : > { %p4803_p2 = pnand %p4802_p1, %p4796_p10 }
 0x2a3   : > { %4806 = shalt.err (!%p4803_p2)
}
 0x2a4   : > { %4659 = dma.vmem_to_hbm [thread:$0]  (%p4928_p4), %s6251_s18, 128, %s6249_s23, %s3956_s15  }
 0x2a5 PF: > { %p4665_p3 = scmp.ge.s32.totalorder %s4857_s17, 2  ;;  %s3997_s9 = sand.u32 1, %s4837_s12  }
 0x2a6   : > { %s3998_s10 = scalar_lea.sflag [#allocation4], %s3997_s9 }
 0x2a7   : > { %p4662_p5 = pnand %p4665_p3, %p4935_p8 }
 0x2a9   : > { %4832 = dma.done.wait (!%p4662_p5), %s3998_s10, 128  }
 0x2aa   : > { %4834 = vsyncadd (!%p4662_p5), %s3998_s10, 4294967168  ;;  %s17_s17 = sadd.s32 1, %s4857_s17   ;;  %s6307_s12 = smov %s4841_s13 }
 0x2ab   : > { %p14_p6 = scmp.ge.s32.totalorder %s17_s17, 4   ;;  %s6308_s13 = smov %s4845_s14 }
 0x2ac   : > { %s6309_s14 = smov %s4941_s25  ;;  %s6310_s15 = smov %s4853_s16 }
 0x2ad   : > { %s6311_s16 = smov %s6313_s20  ;;  %16 = sbr.rel (!%p14_p6) target bundleno = 4 (0x4), region = 80 }
 0x2b4   :  { %4003 = vsyncpa [#allocation4], 1 }
 0x2b5   :  { %4005 = vsyncpa [#allocation4 + $0x1], 1 }

</bundles_post_ra>
